<compile_context>
chip_gen: v7x
topology: tpu7x:2x2x1
jax: 0.10.0
libtpu: 0.0.40
codegen_flags: <defaults>
</compile_context>

<pallas_src>
import jax
import jax.numpy as jnp
from jax.experimental import pallas as pl
from jax.experimental.pallas import tpu as pltpu

LATENT_DIM = 10
OUT_FEATURES = 3 * 84 * 84                       # 21168
HIDDEN = 1024
TILE_N = 2816                                    # 22 * 128
N_TILES = 8                                      # 8 * 2816 = 22528
OUT_PADDED = N_TILES * TILE_N                    # 22528 (same padding as rev 2)

SMALL_SIZES = [(LATENT_DIM, 128), (128, 256), (256, 512),   # encoder
               (512, 256), (256, 1024)]                     # decoder (head)


# ----------------------------------------------------------------------------
# Kernel: one TILE_N-wide slab of the int8-quantized 1024 -> 21168 Linear,
# dequant folded into the epilogue, followed by Tanh.
# ----------------------------------------------------------------------------
def out_layer_kernel(h_ref, w_ref, s_ref, b_ref, o_ref):
    # int8 -> bf16 is exact for values in [-127, 127]; MXU runs bf16 x bf16
    # with f32 accumulation.  Per-column scale + bias applied before tanh.
    w = w_ref[...].astype(jnp.bfloat16)
    y = jnp.dot(h_ref[...], w, preferred_element_type=jnp.float32)
    o_ref[...] = jnp.tanh(y * s_ref[...] + b_ref[...])


@jax.jit
def autoencoder_forward(x, prepared):
    small, w6_q, s6, b6 = prepared
    B = x.shape[0]

    # Tiny 5-layer MLP hoisted out of the weight-streaming kernel: ~2 MFLOP
    # at B=2, runs once in plain XLA; cast to bf16 for the MXU.
    h = x
    for (w, b) in small:
        h = jnp.maximum(jnp.dot(h, w) + b, 0.0)
    h = h.astype(jnp.bfloat16)

    cost = pl.CostEstimate(
        flops=2 * B * HIDDEN * OUT_PADDED,
        transcendentals=B * OUT_PADDED,
        bytes_accessed=(w6_q.size                         # int8 weight stream
                        + s6.size * 4 + b6.size * 4
                        + h.size * 2
                        + B * OUT_PADDED * 4),            # output
    )

    y = pl.pallas_call(
        out_layer_kernel,
        out_shape=jax.ShapeDtypeStruct((B, OUT_PADDED), jnp.float32),
        grid_spec=pltpu.PrefetchScalarGridSpec(
            num_scalar_prefetch=0,
            grid=(N_TILES,),
            in_specs=[
                pl.BlockSpec((B, HIDDEN), lambda j: (0, 0)),      # h (resident)
                pl.BlockSpec((HIDDEN, TILE_N), lambda j: (0, j)), # int8 W6 tile
                pl.BlockSpec((1, TILE_N), lambda j: (0, j)),      # per-col scale
                pl.BlockSpec((1, TILE_N), lambda j: (0, j)),      # bias
            ],
            out_specs=pl.BlockSpec((B, TILE_N), lambda j: (0, j)),
        ),
        compiler_params=pltpu.CompilerParams(
            dimension_semantics=("parallel",),   # 4/4 tile split on v7x's 2 TCs
            vmem_limit_bytes=32 << 20),
        cost_estimate=cost,
    )(h, w6_q, s6, b6)

    return y[:, :OUT_FEATURES].reshape(-1, 3, 84, 84)


# ----------------------------------------------------------------------------
# Parameter init (deterministic, synthetic) + one-time parameter preparation.
# ----------------------------------------------------------------------------
def init_params(key):
    sizes = SMALL_SIZES + [(HIDDEN, OUT_FEATURES)]
    params = []
    for (fan_in, fan_out) in sizes:
        kw, kb, key = jax.random.split(key, 3)
        bound = 1.0 / jnp.sqrt(fan_in)
        w = jax.random.uniform(kw, (fan_in, fan_out), jnp.float32, -bound, bound)
        b = jax.random.uniform(kb, (1, fan_out), jnp.float32, -bound, bound)
        params.append((w, b))
    return params


def prepare_params(params):
    """One-time (hoisted) preparation: pad W6/b6 to the tile-aligned width and
    quantize W6 to int8 with per-output-column f32 scales.  Padded columns get
    zero quantized weights and zero bias so tanh(0)=0 before the final slice."""
    small = [(w, b) for (w, b) in params[:5]]                 # tiny, stays f32
    w6, b6 = params[5]
    pad = OUT_PADDED - OUT_FEATURES
    w6p = jnp.pad(w6, ((0, 0), (0, pad)))                     # (1024, 22528)
    b6p = jnp.pad(b6, ((0, 0), (0, pad)))                     # (1, 22528) f32

    col_max = jnp.max(jnp.abs(w6p), axis=0, keepdims=True)    # (1, 22528)
    scale = col_max / 127.0
    scale_safe = jnp.where(scale == 0.0, 1.0, scale)          # padded cols
    w6_q = jnp.clip(jnp.round(w6p / scale_safe), -127, 127).astype(jnp.int8)
    return (small, w6_q, scale_safe.astype(jnp.float32), b6p)


if __name__ == "__main__":
    key = jax.random.PRNGKey(0)
    kx, kp = jax.random.split(key)
    B = 2
    x = jax.random.normal(kx, (B, LATENT_DIM), jnp.float32)
    params = init_params(kp)
    prepared = prepare_params(params)

    out = autoencoder_forward(x, prepared)
    out = jax.block_until_ready(out)
    assert out.shape == (B, 3, 84, 84), out.shape
    assert out.dtype == jnp.float32

    # Sanity check vs. plain-JAX f32 reference.  Tolerance accounts for the
    # accepted int8-per-column-scale W6 + bf16-h approximation (tanh-bounded
    # outputs; observed error is well below 1e-2).
    def ref(x, params):
        h = x
        for (w, b) in params[:5]:
            h = jnp.maximum(h @ w + b, 0.0)
        y = jnp.tanh(h @ params[5][0] + params[5][1])
        return y.reshape(-1, 3, 84, 84)

    r = ref(x, params)
    assert jnp.allclose(out, r, atol=1e-2, rtol=1e-2), \
        float(jnp.max(jnp.abs(out - r)))

    print("KERNEL_OK")
</pallas_src>

<mosaic_0001>
module attributes {stable_mosaic.version = 11 : i64} {
  func.func @out_layer_kernel(%arg0: i32, %arg1: memref<2x1024xbf16, #tpu.memory_space<vmem>>, %arg2: memref<1024x2816xi8, #tpu.memory_space<vmem>>, %arg3: memref<1x2816xf32, #tpu.memory_space<vmem>>, %arg4: memref<1x2816xf32, #tpu.memory_space<vmem>>, %arg5: memref<2x2816xf32, #tpu.memory_space<vmem>>) attributes {dimension_semantics = [#tpu.dimension_semantics<parallel>], iteration_bounds = array<i64: 8>, scalar_prefetch = 0 : i64, scratch_operands = 0 : i64, tpu.core_type = #tpu.core_type<tc>, window_params = [{pipeline_mode = #tpu.pipeline_mode<synchronous>, transform_indices = @transform_0, window_bounds = array<i64: 2, 1024>}, {transform_indices = @transform_1, window_bounds = array<i64: 1024, 2816>}, {transform_indices = @transform_2, window_bounds = array<i64: 1, 2816>}, {transform_indices = @transform_3, window_bounds = array<i64: 1, 2816>}, {transform_indices = @transform_4, window_bounds = array<i64: 2, 2816>}]} {
    %c0 = arith.constant 0 : index
    %c0_0 = arith.constant 0 : index
    %0 = vector.load %arg2[%c0, %c0_0] : memref<1024x2816xi8, #tpu.memory_space<vmem>>, vector<1024x2816xi8>
    %1 = arith.sitofp %0 : vector<1024x2816xi8> to vector<1024x2816xbf16>
    %c0_1 = arith.constant 0 : index
    %c0_2 = arith.constant 0 : index
    %2 = vector.load %arg1[%c0_1, %c0_2] : memref<2x1024xbf16, #tpu.memory_space<vmem>>, vector<2x1024xbf16>
    %cst = arith.constant dense<0.000000e+00> : vector<2x2816xf32>
    %3 = tpu.matmul %2, %1, %cst {dimension_numbers = #tpu.dot_dimension_numbers<[1], [0], [0], [1], [0, 0, 1, 1], [], []>} : vector<2x1024xbf16>, vector<1024x2816xbf16>, vector<2x2816xf32> -> vector<2x2816xf32>
    %c0_3 = arith.constant 0 : index
    %c0_4 = arith.constant 0 : index
    %4 = vector.load %arg3[%c0_3, %c0_4] : memref<1x2816xf32, #tpu.memory_space<vmem>>, vector<1x2816xf32>
    %5 = vector.broadcast %4 : vector<1x2816xf32> to vector<2x2816xf32>
    %6 = arith.mulf %3, %5 : vector<2x2816xf32>
    %c0_5 = arith.constant 0 : index
    %c0_6 = arith.constant 0 : index
    %7 = vector.load %arg4[%c0_5, %c0_6] : memref<1x2816xf32, #tpu.memory_space<vmem>>, vector<1x2816xf32>
    %8 = vector.broadcast %7 : vector<1x2816xf32> to vector<2x2816xf32>
    %9 = arith.addf %6, %8 : vector<2x2816xf32>
    %10 = math.tanh %9 : vector<2x2816xf32>
    %c0_7 = arith.constant 0 : index
    %c0_8 = arith.constant 0 : index
    %11 = vector.load %arg5[%c0_7, %c0_8] : memref<2x2816xf32, #tpu.memory_space<vmem>>, vector<2x2816xf32>
    tpu.vector_store %arg5[%c0_7, %c0_8], %10 {strides = array<i32>} : memref<2x2816xf32, #tpu.memory_space<vmem>>, vector<2x2816xf32>,
    return
  }
  func.func @transform_0(%arg0: i32) -> (i32, i32) {
    %c0_i32 = arith.constant 0 : i32
    %c0_i32_0 = arith.constant 0 : i32
    %c0_i32_1 = arith.constant 0 : i32
    return %c0_i32, %c0_i32_0 : i32, i32
  }
  func.func @transform_1(%arg0: i32) -> (i32, i32) {
    %c0_i32 = arith.constant 0 : i32
    %c0_i32_0 = arith.constant 0 : i32
    return %c0_i32, %arg0 : i32, i32
  }
  func.func @transform_2(%arg0: i32) -> (i32, i32) {
    %c0_i32 = arith.constant 0 : i32
    %c0_i32_0 = arith.constant 0 : i32
    return %c0_i32, %arg0 : i32, i32
  }
  func.func @transform_3(%arg0: i32) -> (i32, i32) {
    %c0_i32 = arith.constant 0 : i32
    %c0_i32_0 = arith.constant 0 : i32
    return %c0_i32, %arg0 : i32, i32
  }
  func.func @transform_4(%arg0: i32) -> (i32, i32) {
    %c0_i32 = arith.constant 0 : i32
    %c0_i32_0 = arith.constant 0 : i32
    return %c0_i32, %arg0 : i32, i32
  }
}

</mosaic_0001>

<bundles_post_ra>
// kernel: autoencoder_forward.1
= control target key start
LH: loop header
LB: loop body
LE: loop exit
PB: predicated region body
PF: predicated region fallthrough
CT: control target
= control target key end

     0   :  { %9 = vsyncpa [#allocation3], 0  ;;  %s6433_s0 = inlined_call_operand.vmem [shape: bf16[2,1024], index: 0, kind: input, shape index: {}]   ;;  %s6434_s1 = inlined_call_operand.hbm [shape: s8[1024,22528], index: 1, kind: input, shape index: {}]   ;;  %s6435_s2 = inlined_call_operand.hbm [shape: f32[1,22528], index: 2, kind: input, shape index: {}]   ;;  %s6436_s3 = inlined_call_operand.hbm [shape: f32[1,22528], index: 3, kind: input, shape index: {}]   ;;  %s6437_s4 = inlined_call_operand.vmem [shape: f32[2,22528], index: 4, kind: output, shape index: {}]  }
   0x1   :  { %11 = vsyncpa [#allocation3 + $0x1], 0 }
   0x2   :  { %12 = vsyncpa [#allocation5], 0 }
   0x3   :  { %14 = vsyncpa [#allocation5 + $0x1], 0  ;;  %s5225_s15 = smov 0   ;;  %s5227_s16 = smov 0  }
   0x4   :  { %s5229_s17 = smov 0   ;;  %s5231_s18 = smov 0  }
   0x5 LB: > { %s5244_s19 = sadd.s32 4294967295, %s5190_s18   ;;  %s5247_s20 = sadd.s32 1, %s5190_s18   ;;  %s5190_s18 = sphi %s5231_s18, %s6450_s18   ;;  %s5186_s17 = sphi %s5229_s17, %s6449_s17   ;;  %s5182_s16 = sphi %s5227_s16, %s6448_s16   ;;  %s5178_s15 = sphi %s5225_s15, %s6447_s15  }
   0x6   : > { %s45_s21 = ssub.s32 %s5190_s18, %s5247_s20  ;;  %s48_s22 = sadd.s32 1, %s5186_s17 }
   0x7   : > { %p46_p0 = scmp.eq.s32.totalorder %s45_s21, 0  ;;  %p55_p1 = scmp.ne.s32.totalorder %s5186_s17, %s5182_s16 }
   0x8   : > { %p56_p2 = scmp.eq.s32.totalorder %s5190_s18, 0  ;;  %p61_p3 = scmp.ne.s32.totalorder %s5182_s16, %s5178_s15 }
   0x9   : > { %s5257_s23 = scalar_select %p46_p0, %s5186_s17, %s48_s22  }
   0xa   : > { %p57_p4 = por %p56_p2, %p55_p1  ;;  %p62_p5 = scmp.eq.s32.totalorder %s5244_s19, 0 }
   0xb   : > { %p4971_p6 = scmp.lt.s32.totalorder %s5190_s18, 8  ;;  %s5266_s25 = sand.u32 1, %s5186_s17  }
   0xc   : > { %p5261_p7 = por %p62_p5, %p61_p3  ;;  %s4950_s26 = smul.u32 5632, %s5266_s25 }
   0xd   : > { %p5269_p8 = pnand %p4971_p6, %p57_p4  ;;  %s187_s28 = sand.u32 1, %s5190_s18  }
   0xe   : > { %s6440_s24 = scalar_select %p5261_p7, 1, 0 }
   0xf   : > { %s6441_s27 = scalar_select %p5269_p8, 1, 0 }
  0x10   : > { %s170_s29 = scalar_lea.vmem [#allocation2], %s4950_s26  ;;  %s4951_s5 = smul.u32 22, %s5266_s25 }
  0x11   : > { %s177_s30 = sshll.u32 %s170_s29, 4  ;;  %s4818_s6 = smul.u32 352, %s5190_s18  ;;  %s5274_s30 = int_to_ptr.vmem [resolvable:$true] %s177_s30 }
  0x12   : > { %p4812_p9 = scmp.ge.s32.totalorder %s5190_s18, 1  ;;  %p223_p10 = scmp.lt.s32.totalorder %s5190_s18, 9 }
  0x13   : > { %s5285_s9 = scalar_lea.hbm %s6435_s2, %s4818_s6  ;;  %s191_s10 = scalar_lea.vmem [#allocation4], %s4951_s5 }
  0x14   : > { %s199_s11 = sshll.u32 %s191_s10, 4  ;;  %p5291_p11 = pnand %p4812_p9, %p223_p10  ;;  %s5289_s11 = int_to_ptr.vmem [resolvable:$true] %s199_s11 }
  0x15   : > { %s5295_s13 = scalar_lea.sflag [#allocation5], %s187_s28  ;;  %s5062_s14 = scalar_lea.hbm %s5285_s9, 352 }
  0x16   : > { %s6442_s12 = scalar_select %p5291_p11, 1, 0 }
  0x17   : > { %p5063_p12 = scmp.ne.s32.totalorder %s5285_s9, %s5062_s14  ;;  %p5301_p13 = pneg %p5269_p8 }
  0x18   : > { %s5067_s26 = scalar_lea.hbm %s6435_s2, 2816  ;;  %p5068_p2 = scmp.lt.u32.totalorder %s5285_s9, %s6435_s2 }
  0x19   : > { %p5065_p0 = pnand %p5301_p13, %p5063_p12  ;;  %p5069_p3 = scmp.lt.u32.totalorder %s5067_s26, %s5062_s14 }
  0x1a   : > { %p5071_p5 = scmp.lt.u32.totalorder %s5062_s14, %s5285_s9 }
  0x1b   : > { %p5066_p1 = pneg %p5065_p0  ;;  %p5070_p4 = por %p5069_p3, %p5068_p2 }
  0x1d   : > { %p5072_p6 = por %p5071_p5, %p5070_p4 }
  0x1f   : > { %p5073_p9 = pnand %p5072_p6, %p5066_p1 }
  0x21   : > { %5076 = shalt.err (!%p5073_p9)
}
  0x22   : > { %s5077_s28 = scalar_lea.vmem %s5289_s11, 352  ;;  %s5192_s8 = smov [#allocation4]  }
  0x23   : > { %p5078_p10 = scmp.ne.s32.totalorder %s5289_s11, %s5077_s28  ;;  %s5082_s10 = sshll.u32 %s5192_s8, 4  ;;  %s5083_s10 = int_to_ptr.vmem [resolvable:$false] %s5082_s10 }
  0x24   : > { %s5084_s21 = scalar_lea.vmem %s5083_s10, 704  ;;  %p5085_p7 = scmp.lt.s32.totalorder %s5289_s11, %s5083_s10 }
  0x25   : > { %p5080_p12 = pnand %p5078_p10, %p5301_p13  ;;  %p5086_p11 = scmp.lt.s32.totalorder %s5084_s21, %s5077_s28 }
  0x27   : > { %p5081_p0 = pneg %p5080_p12  ;;  %p5087_p2 = por %p5086_p11, %p5085_p7 }
  0x29   : > { %p5088_p3 = pnand %p5087_p2, %p5081_p0 }
  0x2b   : > { %5091 = shalt.err (!%p5088_p3)
}
  0x2c   : > { %4967 = dma.hbm_to_vmem [thread:$0]  (!%p5269_p8), %s5285_s9, 352, %s5289_s11, %s5295_s13  }
  0x2d   : > { %s4817_s14 = smul.u32 2816, %s5190_s18  ;;  %s167_s7 = scalar_lea.sflag [#allocation3], %s5266_s25 }
  0x2e   : > { %s5097_s9 = scalar_lea.hbm %s6434_s1, 720896 }
  0x2f   : > { %s5329_s29 = scalar_lea.hbm %s6434_s1, %s4817_s14 }
  0x30   : > { %s5092_s28 = scalar_lea.hbm %s5329_s29, 90112  ;;  %p5098_p4 = scmp.lt.u32.totalorder %s5329_s29, %s6434_s1 }
  0x31   : > { %p5093_p7 = scmp.ne.s32.totalorder %s5329_s29, %s5092_s28  ;;  %p5099_p5 = scmp.lt.u32.totalorder %s5097_s9, %s5092_s28 }
  0x32   : > { %p5101_p9 = scmp.lt.u32.totalorder %s5092_s28, %s5329_s29 }
  0x33   : > { %p5095_p11 = pnand %p5093_p7, %p5301_p13  ;;  %p5100_p6 = por %p5099_p5, %p5098_p4 }
  0x35   : > { %p5096_p1 = pneg %p5095_p11  ;;  %p5102_p10 = por %p5101_p9, %p5100_p6 }
  0x37   : > { %p5103_p12 = pnand %p5102_p10, %p5096_p1 }
  0x39   : > { %5106 = shalt.err (!%p5103_p12)
}
  0x3a   : > { %s5107_s14 = scalar_lea.vmem %s5274_s30, 90112  ;;  %s5193_s22 = smov [#allocation2]  }
  0x3b   : > { %p5108_p0 = scmp.ne.s32.totalorder %s5274_s30, %s5107_s14  ;;  %s5112_s26 = sshll.u32 %s5193_s22, 4  ;;  %s5113_s26 = int_to_ptr.vmem [resolvable:$false] %s5112_s26 }
  0x3c   : > { %s5114_s8 = scalar_lea.vmem %s5113_s26, 180224  ;;  %p5115_p7 = scmp.lt.s32.totalorder %s5274_s30, %s5113_s26 }
  0x3d   : > { %p5110_p2 = pnand %p5108_p0, %p5301_p13  ;;  %p5116_p11 = scmp.lt.s32.totalorder %s5114_s8, %s5107_s14 }
  0x3f   : > { %p5111_p3 = pneg %p5110_p2  ;;  %p5117_p4 = por %p5116_p11, %p5115_p7 }
  0x41   : > { %p5118_p5 = pnand %p5117_p4, %p5111_p3 }
  0x43   : > { %5121 = shalt.err (!%p5118_p5)
}
  0x44   : > { %s5194_s28 = smov 22528   ;;  %s5195_s10 = smov 2816  }
  0x45   : > { %s5196_s9 = smov 176   ;;  %s5360_s14 = scalar_lea.hbm %s6436_s3, %s4818_s6 }
  0x46   : > { %4964 = dma.hbm_to_vmem [thread:$0]  (!%p5269_p8), %s5329_s29, 90112, %s5274_s30, %s167_s7, %s5194_s28, %s5195_s10, %s5196_s9  }
  0x47   : > { %s210_s22 = scalar_lea.vmem [#allocation6], %s4951_s5  ;;  %s5122_s8 = scalar_lea.hbm %s5360_s14, 352 }
  0x48   : > { %s218_s26 = sshll.u32 %s210_s22, 4  ;;  %p5123_p1 = scmp.ne.s32.totalorder %s5360_s14, %s5122_s8  ;;  %s219_s26 = int_to_ptr.vmem [resolvable:$true] %s218_s26 }
  0x49   : > { %s5127_s29 = scalar_lea.hbm %s6436_s3, 2816  ;;  %p5128_p10 = scmp.lt.u32.totalorder %s5360_s14, %s6436_s3 }
  0x4a   : > { %p5125_p6 = pnand %p5123_p1, %p5301_p13  ;;  %p5129_p12 = scmp.lt.u32.totalorder %s5127_s29, %s5122_s8 }
  0x4b   : > { %p5131_p2 = scmp.lt.u32.totalorder %s5122_s8, %s5360_s14 }
  0x4c   : > { %p5126_p9 = pneg %p5125_p6  ;;  %p5130_p0 = por %p5129_p12, %p5128_p10 }
  0x4e   : > { %p5132_p3 = por %p5131_p2, %p5130_p0 }
  0x50   : > { %p5133_p7 = pnand %p5132_p3, %p5126_p9 }
  0x52   : > { %5136 = shalt.err (!%p5133_p7)
}
  0x53   : > { %s5137_s25 = scalar_lea.vmem %s219_s26, 352  ;;  %s5197_s5 = smov [#allocation6]  }
  0x54   : > { %p5138_p11 = scmp.ne.s32.totalorder %s219_s26, %s5137_s25  ;;  %s5142_s28 = sshll.u32 %s5197_s5, 4  ;;  %s5143_s28 = int_to_ptr.vmem [resolvable:$false] %s5142_s28 }
  0x55   : > { %s5144_s10 = scalar_lea.vmem %s5143_s28, 704  ;;  %p5145_p1 = scmp.lt.s32.totalorder %s219_s26, %s5143_s28 }
  0x56   : > { %p5140_p4 = pnand %p5138_p11, %p5301_p13  ;;  %p5146_p6 = scmp.lt.s32.totalorder %s5144_s10, %s5137_s25 }
  0x58   : > { %p5141_p5 = pneg %p5140_p4  ;;  %p5147_p8 = por %p5146_p6, %p5145_p1 }
  0x5a   : > { %p5148_p10 = pnand %p5147_p8, %p5141_p5 }
  0x5c   : > { %5151 = shalt.err (!%p5148_p10)
}
  0x5d   : > { %p6444_p12 = scmp.ne.s32.totalorder %s6441_s27, 0  ;;  %p6445_p9 = scmp.ne.s32.totalorder %s6442_s12, 0 }
  0x5e   : > { %s5385_s15 = sand.u32 (!%p6445_p9), 1, %s5182_s16   ;;  %p6446_p8 = scmp.ne.s32.totalorder (!%p6445_p9), %s6440_s24, 0 }
  0x5f   : > { %4970 = dma.hbm_to_vmem [thread:$0]  (!%p6444_p12), %s5360_s14, 352, %s219_s26, %s5295_s13  }
  0x60   : > { %227 = sbr.rel (%p6445_p9) target bundleno = 1755 (0x6db), region = 36  ;;  %s230_s11 = scalar_lea.sflag (!%p6445_p9), [#allocation3], %s5385_s15 }
  0x61   : > { %s4953_s9 = smul.u32 (!%p6445_p9), 5632, %s5385_s15 }
  0x63   : > { %s5389_s21 = scalar_lea.vmem (!%p6445_p9), [#allocation2], %s4953_s9 }
  0x67   : > { %5169 = dma.done.wait (%p6446_p8), %s230_s11, 90112  }
  0x68   : > { %5171 = vsyncadd (%p6446_p8), %s230_s11, 4294877184  ;;  %s238_s27 = sand.u32 1, %s5244_s19   ;;  %s4954_s12 = smul.u32 22, %s5385_s15 }
  0x69   : > { %s239_s13 = scalar_lea.sflag [#allocation5], %s238_s27 }
  0x6a   : > { %s5399_s14 = scalar_lea.vmem [#allocation4], %s4954_s12 }
  0x6b   : > { %5173 = dma.done.wait (%p6446_p8), %s239_s13, 704  }
  0x6c   : > { %5175 = vsyncadd (%p6446_p8), %s239_s13, 4294966592  ;;  %v296_v0 = vld [vmem:[%s5389_s21 + $0x8] sm:$0xff]  ;;  %v295_v2 = vld [vmem:[%s5389_s21] sm:$0xff]  ;;  %v5198_v18 = vmov 1966171168   ;;  %v2413_v20 = vlaneseq  ;;  %s5658_s26 = scalar_lea.vmem [#allocation6], %s4954_s12 }
  0x6d   : > { %v648_v1 = vld [vmem:[%s5389_s21 + $0xb08] sm:$0xff]  ;;  %v1000_v3 = vunpack.c.l.s8.bf16 %v296_v0  ;;  %v1022_v4 = vunpack.c.h.s8.bf16 %v296_v0  ;;  %v647_v7 = vld [vmem:[%s5389_s21 + $0xb00] sm:$0xff]  ;;  %v999_v8 = vunpack.c.l.s8.bf16 %v295_v2  ;;  %v318_v10 = vld [vmem:[%s5389_s21 + $0xb8] sm:$0xff]  ;;  %v1021_v12 = vunpack.c.h.s8.bf16 %v295_v2  ;;  %s289_s8 = smul.u32 22, %s5244_s19 }
  0x6e   : > { %v1704_v5 = vunpack.c.l.s8.bf16 %v648_v1  ;;  %v1726_v6 = vunpack.c.h.s8.bf16 %v648_v1  ;;  %v1703_v9 = vunpack.c.l.s8.bf16 %v647_v7  ;;  %v670_v11 = vld [vmem:[%s5389_s21 + $0xbb8] sm:$0xff]  ;;  %v1725_v13 = vunpack.c.h.s8.bf16 %v647_v7  ;;  %v317_v16 = vld [vmem:[%s5389_s21 + $0xb0] sm:$0xff]  ;;  %v340_v27 = vld [vmem:[%s5389_s21 + $0x168] sm:$0xff] }
  0x6f   : > { %2466 = vmatprep.subr.bf16.mxu1 %v1000_v3  ;;  %v1044_v14 = vunpack.c.l.s8.bf16 %v318_v10  ;;  %v1748_v15 = vunpack.c.l.s8.bf16 %v670_v11  ;;  %v669_v17 = vld [vmem:[%s5389_s21 + $0xbb0] sm:$0xff]  ;;  %v2411_v19 = vunpack.c.l.s4 %v5198_v18  ;;  %v1043_v21 = vunpack.c.l.s8.bf16 %v317_v16  ;;  %v692_v28 = vld [vmem:[%s5389_s21 + $0xc68] sm:$0xff]  ;;  %v339_v33 = vld [vmem:[%s5389_s21 + $0x160] sm:$0xff]  ;;  %p290_p13 = scmp.lt.s32.totalorder %s289_s8, 175 }
  0x70   : > { %2548 = vmatprep.subr.bf16.mxu0 %v1704_v5  ;;  %2467 = vmatpush1.bf16.msra.mxu1 %v999_v8  ;;  %v1747_v22 = vunpack.c.l.s8.bf16 %v669_v17  ;;  %v1066_v23 = vunpack.c.h.s8.bf16 %v318_v10  ;;  %v1770_v24 = vunpack.c.h.s8.bf16 %v670_v11  ;;  %v5413_v26 = vshrl.u32 %v2413_v20, 7  ;;  %v691_v34 = vld [vmem:[%s5389_s21 + $0xc60] sm:$0xff]  ;;  %v362_v43 = vld [vmem:[%s5389_s21 + $0x218] sm:$0xff]  ;;  %v361_v51 = vld [vmem:[%s5389_s21 + $0x210] sm:$0xff] }
  0x71   : > { %2549 = vmatpush1.bf16.msra.mxu0 %v1703_v9  ;;  %2468 = vmatprep.subr.bf16.mxu1 %v1022_v4  ;;  %v2412_v25 = vunpack.c.0.s8 %v2411_v19  ;;  %v1065_v29 = vunpack.c.h.s8.bf16 %v317_v16  ;;  %v1769_v30 = vunpack.c.h.s8.bf16 %v669_v17  ;;  %v1088_v31 = vunpack.c.l.s8.bf16 %v340_v27  ;;  %v2407_v36 = vld [vmem:[%s6433_s0] sm:$0xff]  ;;  %v714_v44 = vld [vmem:[%s5389_s21 + $0xd18] sm:$0xff]  ;;  %v713_v52 = vld [vmem:[%s5389_s21 + $0xd10] sm:$0xff]  ;;  %s6452_s8 = smov (!%p290_p13, %s289_s8), 175 }
  0x72   : > { %2550 = vmatprep.subr.bf16.mxu0 %v1726_v6  ;;  %v1792_v32 = vunpack.c.l.s8.bf16 %v692_v28  ;;  %v1087_v37 = vunpack.c.l.s8.bf16 %v339_v33  ;;  %v1791_v38 = vunpack.c.l.s8.bf16 %v691_v34  ;;  %v1110_v39 = vunpack.c.h.s8.bf16 %v340_v27  ;;  %v384_v60 = vld [vmem:[%s5389_s21 + $0x2c8] sm:$0xff]  ;;  %v383_v2 = vld [vmem:[%s5389_s21 + $0x2c0] sm:$0xff]  ;;  %v406_v8 = vld [vmem:[%s5389_s21 + $0x378] sm:$0xff]  ;;  %s4813_s19 = sshll.u32 %s6452_s8, 1 }
  0x73   : > { %v5420_v35 = vsub.s32 %v2412_v25, %v5413_v26  ;;  %v1814_v40 = vunpack.c.h.s8.bf16 %v692_v28  ;;  %v2409_v42 = vcombine.high %v2407_v36, %v2407_v36  ;;  %v1109_v47 = vunpack.c.h.s8.bf16 %v339_v33  ;;  %v736_v61 = vld [vmem:[%s5389_s21 + $0xdc8] sm:$0xff]  ;;  %v735_v3 = vld [vmem:[%s5389_s21 + $0xdc0] sm:$0xff]  ;;  %v758_v9 = vld [vmem:[%s5389_s21 + $0xe78] sm:$0xff]  ;;  %s5870_s29 = scalar_lea.vmem %s6437_s4, %s4813_s19 }
  0x74   : > { %2469 = vmatpush1.bf16.msra.mxu1 %v1021_v12  ;;  %v1813_v48 = vunpack.c.h.s8.bf16 %v691_v34  ;;  %v1132_v49 = vunpack.c.l.s8.bf16 %v362_v43  ;;  %v1836_v50 = vunpack.c.l.s8.bf16 %v714_v44  ;;  %v1131_v56 = vunpack.c.l.s8.bf16 %v361_v51  ;;  %v428_v20 = vld [vmem:[%s5389_s21 + $0x428] sm:$0xff]  ;;  %v427_v27 = vld [vmem:[%s5389_s21 + $0x420] sm:$0xff]  ;;  %v450_v33 = vld [vmem:[%s5389_s21 + $0x4d8] sm:$0xff] }
  0x75   : > { %2551 = vmatpush1.bf16.msra.mxu0 %v1725_v13  ;;  %2470 = vmatprep.subr.bf16.mxu1 %v1044_v14  ;;  %v5426_v41 = vrot.slane %v2407_v36, %v5420_v35  ;;  %v5433_v46 = vrot.slane %v2409_v42, %v5420_v35  ;;  %v1835_v57 = vunpack.c.l.s8.bf16 %v713_v52  ;;  %v1154_v58 = vunpack.c.h.s8.bf16 %v362_v43  ;;  %v405_v14 = vld [vmem:[%s5389_s21 + $0x370] sm:$0xff]  ;;  %v779_v28 = vld [vmem:[%s5389_s21 + $0xf20] sm:$0xff]  ;;  %v802_v34 = vld [vmem:[%s5389_s21 + $0xfd8] sm:$0xff] }
  0x76   : > { %2552 = vmatprep.subr.bf16.mxu0 %v1748_v15  ;;  %v1858_v59 = vunpack.c.h.s8.bf16 %v714_v44  ;;  %v1153_v62 = vunpack.c.h.s8.bf16 %v361_v51  ;;  %v1857_v63 = vunpack.c.h.s8.bf16 %v713_v52  ;;  %v1176_v0 = vunpack.c.l.s8.bf16 %v384_v60  ;;  %v757_v15 = vld [vmem:[%s5389_s21 + $0xe70] sm:$0xff] }
  0x77   : > { %v2424_v45 = vcombine.high %v5426_v41, %v5426_v41  ;;  %v2425_v54 = vcombine.high %v5433_v46, %v5433_v46  ;;  %v1880_v1 = vunpack.c.l.s8.bf16 %v736_v61  ;;  %v1175_v4 = vunpack.c.l.s8.bf16 %v383_v2  ;;  %v801_v42 = vld [vmem:[%s5389_s21 + $0xfd0] sm:$0xff] }
  0x78   : > { %2471 = vmatpush1.bf16.msra.mxu1 %v1043_v21  ;;  %v1879_v5 = vunpack.c.l.s8.bf16 %v735_v3  ;;  %v1198_v6 = vunpack.c.h.s8.bf16 %v384_v60  ;;  %v1902_v7 = vunpack.c.h.s8.bf16 %v736_v61  ;;  %v1197_v10 = vunpack.c.h.s8.bf16 %v383_v2  ;;  %v780_v21 = vld [vmem:[%s5389_s21 + $0xf28] sm:$0xff] }
  0x79   : > { %2553 = vmatpush1.bf16.msra.mxu0 %v1747_v22  ;;  %2472 = vmatprep.subr.bf16.mxu1 %v1066_v23  ;;  %v5438_v53 = vrot.slane %v2424_v45, %v5420_v35  ;;  %v5444_v55 = vrot.slane %v2425_v54, %v5420_v35  ;;  %v1901_v11 = vunpack.c.h.s8.bf16 %v735_v3  ;;  %v1220_v12 = vunpack.c.l.s8.bf16 %v406_v8 }
  0x7a   : > { %2554 = vmatprep.subr.bf16.mxu0 %v1770_v24  ;;  %v1924_v13 = vunpack.c.l.s8.bf16 %v758_v9  ;;  %v1219_v16 = vunpack.c.l.s8.bf16 %v405_v14  ;;  %v1923_v17 = vunpack.c.l.s8.bf16 %v757_v15  ;;  %v1242_v18 = vunpack.c.h.s8.bf16 %v406_v8 }
  0x7b   : > { %2498 = vmatprep.mubr.bf16.mxu1 %v5438_v53  ;;  %2580 = vmatprep.mubr.bf16.mxu0 %v5444_v55  ;;  %v1946_v19 = vunpack.c.h.s8.bf16 %v758_v9  ;;  %v1241_v22 = vunpack.c.h.s8.bf16 %v405_v14  ;;  %v1945_v23 = vunpack.c.h.s8.bf16 %v757_v15  ;;  %v1264_v24 = vunpack.c.l.s8.bf16 %v428_v20 }
  0x7c   : > { %2473 = vmatpush1.bf16.msra.mxu1 %v1065_v29  ;;  %v1968_v25 = vunpack.c.l.s8.bf16 %v780_v21  ;;  %v1263_v29 = vunpack.c.l.s8.bf16 %v427_v27  ;;  %v1285_v36 = vunpack.c.h.s8.bf16 %v427_v27  ;;  %v2011_v44 = vunpack.c.l.s8.bf16 %v801_v42 }
  0x7d   : > { %2555 = vmatpush1.bf16.msra.mxu0 %v1769_v30  ;;  %2474 = vmatprep.subr.bf16.mxu1 %v1088_v31  ;;  %v1967_v30 = vunpack.c.l.s8.bf16 %v779_v28  ;;  %v1286_v31 = vunpack.c.h.s8.bf16 %v428_v20  ;;  %v1330_v45 = vunpack.c.h.s8.bf16 %v450_v33  ;;  %v2033_v51 = vunpack.c.h.s8.bf16 %v801_v42 }
  0x7e   : > { %2556 = vmatprep.subr.bf16.mxu0 %v1792_v32  ;;  %v1990_v32 = vunpack.c.h.s8.bf16 %v780_v21 }
  0x80   : > { %2475 = vmatpush1.bf16.msra.mxu1 %v1087_v37  ;;  %v1989_v37 = vunpack.c.h.s8.bf16 %v779_v28 }
  0x81   : > { %2557 = vmatpush1.bf16.msra.mxu0 %v1791_v38  ;;  %2476 = vmatprep.subr.bf16.mxu1 %v1110_v39  ;;  %v1308_v38 = vunpack.c.l.s8.bf16 %v450_v33  ;;  %v2012_v39 = vunpack.c.l.s8.bf16 %v802_v34 }
  0x82   : > { %2558 = vmatprep.subr.bf16.mxu0 %v1814_v40  ;;  %v449_v40 = vld [vmem:[%s5389_s21 + $0x4d0] sm:$0xff] }
  0x83   : > { %v1307_v43 = vunpack.c.l.s8.bf16 %v449_v40 }
  0x84   : > { %2477 = vmatpush1.bf16.msra.mxu1 %v1109_v47  ;;  %v2034_v47 = vunpack.c.h.s8.bf16 %v802_v34 }
  0x85   : > { %2559 = vmatpush1.bf16.msra.mxu0 %v1813_v48  ;;  %2478 = vmatprep.subr.bf16.mxu1 %v1132_v49  ;;  %v472_v48 = vld [vmem:[%s5389_s21 + $0x588] sm:$0xff] }
  0x86   : > { %2560 = vmatprep.subr.bf16.mxu0 %v1836_v50  ;;  %v824_v49 = vld [vmem:[%s5389_s21 + $0x1088] sm:$0xff]  ;;  %v1329_v50 = vunpack.c.h.s8.bf16 %v449_v40  ;;  %v1352_v52 = vunpack.c.l.s8.bf16 %v472_v48 }
  0x87   : > { %v2056_v54 = vunpack.c.l.s8.bf16 %v824_v49 }
  0x88   : > { %2479 = vmatpush1.bf16.msra.mxu1 %v1131_v56  ;;  %v471_v56 = vld [vmem:[%s5389_s21 + $0x580] sm:$0xff] }
  0x89   : > { %2561 = vmatpush1.bf16.msra.mxu0 %v1835_v57  ;;  %2480 = vmatprep.subr.bf16.mxu1 %v1154_v58  ;;  %v823_v57 = vld [vmem:[%s5389_s21 + $0x1080] sm:$0xff]  ;;  %v5469_v58 = vrot.slane %v5426_v41, %v5420_v35  ;;  %v1351_v60 = vunpack.c.l.s8.bf16 %v471_v56  ;;  %v5479_v41 = vcombine.high %v5438_v53, %v5438_v53 }
  0x8a   : > { %2562 = vmatprep.subr.bf16.mxu0 %v1858_v59  ;;  %v5473_v59 = vrot.slane %v5433_v46, %v5420_v35  ;;  %v2055_v61 = vunpack.c.l.s8.bf16 %v823_v57  ;;  %v5483_v35 = vcombine.high %v5444_v55, %v5444_v55  ;;  %v1373_v46 = vunpack.c.h.s8.bf16 %v471_v56 }
  0x8b   : > { %v2077_v2 = vunpack.c.h.s8.bf16 %v823_v57 }
  0x8c   : > { %2481 = vmatpush1.bf16.msra.mxu1 %v1153_v62  ;;  %v1374_v62 = vunpack.c.h.s8.bf16 %v472_v48 }
  0x8d   : > { %2563 = vmatpush1.bf16.msra.mxu0 %v1857_v63  ;;  %2482 = vmatprep.subr.bf16.mxu1 %v1176_v0  ;;  %v2078_v63 = vunpack.c.h.s8.bf16 %v824_v49  ;;  %v494_v0 = vld [vmem:[%s5389_s21 + $0x638] sm:$0xff] }
  0x8e   : > { %2564 = vmatprep.subr.bf16.mxu0 %v1880_v1  ;;  %v846_v1 = vld [vmem:[%s5389_s21 + $0x1138] sm:$0xff]  ;;  %v1396_v3 = vunpack.c.l.s8.bf16 %v494_v0  ;;  %v1418_v9 = vunpack.c.h.s8.bf16 %v494_v0 }
  0x90   : > { %2483 = vmatpush1.bf16.msra.mxu1 %v1175_v4  ;;  %v2100_v4 = vunpack.c.l.s8.bf16 %v846_v1 }
  0x91   : > { %2565 = vmatpush1.bf16.msra.mxu0 %v1879_v5  ;;  %2484 = vmatprep.subr.bf16.mxu1 %v1198_v6  ;;  %v493_v5 = vld [vmem:[%s5389_s21 + $0x630] sm:$0xff] }
  0x92   : > { %2566 = vmatprep.subr.bf16.mxu0 %v1902_v7  ;;  %v845_v6 = vld [vmem:[%s5389_s21 + $0x1130] sm:$0xff]  ;;  %v1395_v7 = vunpack.c.l.s8.bf16 %v493_v5 }
  0x93   : > { %v2099_v8 = vunpack.c.l.s8.bf16 %v845_v6  ;;  %v2121_v14 = vunpack.c.h.s8.bf16 %v845_v6 }
  0x94   : > { %2485 = vmatpush1.bf16.msra.mxu1 %v1197_v10  ;;  %v2122_v10 = vunpack.c.h.s8.bf16 %v846_v1 }
  0x95   : > { %2567 = vmatpush1.bf16.msra.mxu0 %v1901_v11  ;;  %2486 = vmatprep.subr.bf16.mxu1 %v1220_v12  ;;  %v516_v11 = vld [vmem:[%s5389_s21 + $0x6e8] sm:$0xff] }
  0x96   : > { %2568 = vmatprep.subr.bf16.mxu0 %v1924_v13  ;;  %v868_v12 = vld [vmem:[%s5389_s21 + $0x11e8] sm:$0xff]  ;;  %v1417_v13 = vunpack.c.h.s8.bf16 %v493_v5  ;;  %v1440_v15 = vunpack.c.l.s8.bf16 %v516_v11  ;;  %v1462_v21 = vunpack.c.h.s8.bf16 %v516_v11 }
  0x98   : > { %2487 = vmatpush1.bf16.msra.mxu1 %v1219_v16  ;;  %v2144_v16 = vunpack.c.l.s8.bf16 %v868_v12 }
  0x99   : > { %2569 = vmatpush1.bf16.msra.mxu0 %v1923_v17  ;;  %2488 = vmatprep.subr.bf16.mxu1 %v1242_v18  ;;  %v515_v17 = vld [vmem:[%s5389_s21 + $0x6e0] sm:$0xff] }
  0x9a   : > { %2570 = vmatprep.subr.bf16.mxu0 %v1946_v19  ;;  %v867_v18 = vld [vmem:[%s5389_s21 + $0x11e0] sm:$0xff]  ;;  %v1439_v19 = vunpack.c.l.s8.bf16 %v515_v17 }
  0x9b   : > { %v2143_v20 = vunpack.c.l.s8.bf16 %v867_v18  ;;  %v2165_v27 = vunpack.c.h.s8.bf16 %v867_v18 }
  0x9c   : > { %2489 = vmatpush1.bf16.msra.mxu1 %v1241_v22  ;;  %v2166_v22 = vunpack.c.h.s8.bf16 %v868_v12 }
  0x9d   : > { %2571 = vmatpush1.bf16.msra.mxu0 %v1945_v23  ;;  %2490 = vmatprep.subr.bf16.mxu1 %v1264_v24  ;;  %v538_v23 = vld [vmem:[%s5389_s21 + $0x798] sm:$0xff] }
  0x9e   : > { %2572 = vmatprep.subr.bf16.mxu0 %v1968_v25  ;;  %v890_v24 = vld [vmem:[%s5389_s21 + $0x1298] sm:$0xff]  ;;  %v1461_v25 = vunpack.c.h.s8.bf16 %v515_v17  ;;  %v1484_v28 = vunpack.c.l.s8.bf16 %v538_v23  ;;  %v1506_v34 = vunpack.c.h.s8.bf16 %v538_v23 }
  0xa0   : > { %2491 = vmatpush1.bf16.msra.mxu1 %v1263_v29  ;;  %v2188_v29 = vunpack.c.l.s8.bf16 %v890_v24 }
  0xa1   : > { %2573 = vmatpush1.bf16.msra.mxu0 %v1967_v30  ;;  %2492 = vmatprep.subr.bf16.mxu1 %v1286_v31  ;;  %v537_v30 = vld [vmem:[%s5389_s21 + $0x790] sm:$0xff] }
  0xa2   : > { %2574 = vmatprep.subr.bf16.mxu0 %v1990_v32  ;;  %v889_v31 = vld [vmem:[%s5389_s21 + $0x1290] sm:$0xff]  ;;  %v1483_v32 = vunpack.c.l.s8.bf16 %v537_v30 }
  0xa3   : > { %v2187_v33 = vunpack.c.l.s8.bf16 %v889_v31  ;;  %v2209_v40 = vunpack.c.h.s8.bf16 %v889_v31 }
  0xa4   : > { %2493 = vmatpush1.bf16.msra.mxu1 %v1285_v36  ;;  %v2210_v36 = vunpack.c.h.s8.bf16 %v890_v24 }
  0xa5   : > { %2575 = vmatpush1.bf16.msra.mxu0 %v1989_v37  ;;  %2494 = vmatprep.subr.bf16.mxu1 %v1308_v38  ;;  %v560_v37 = vld [vmem:[%s5389_s21 + $0x848] sm:$0xff] }
  0xa6   : > { %2576 = vmatprep.subr.bf16.mxu0 %v2012_v39  ;;  %v912_v38 = vld [vmem:[%s5389_s21 + $0x1348] sm:$0xff]  ;;  %v1505_v39 = vunpack.c.h.s8.bf16 %v537_v30  ;;  %v1528_v42 = vunpack.c.l.s8.bf16 %v560_v37  ;;  %v1550_v49 = vunpack.c.h.s8.bf16 %v560_v37  ;;  %v5525_v37 = vcombine.high %v5473_v59, %v5473_v59 }
  0xa8   : > { %2495 = vmatpush1.bf16.msra.mxu1 %v1307_v43  ;;  %v2232_v43 = vunpack.c.l.s8.bf16 %v912_v38 }
  0xa9   : > { %2577 = vmatpush1.bf16.msra.mxu0 %v2011_v44  ;;  %2496 = vmatprep.subr.bf16.mxu1 %v1330_v45  ;;  %v559_v44 = vld [vmem:[%s5389_s21 + $0x840] sm:$0xff] }
  0xaa   : > { %2578 = vmatprep.subr.bf16.mxu0 %v2034_v47  ;;  %v911_v45 = vld [vmem:[%s5389_s21 + $0x1340] sm:$0xff]  ;;  %v1527_v47 = vunpack.c.l.s8.bf16 %v559_v44 }
  0xab   : > { %v2231_v48 = vunpack.c.l.s8.bf16 %v911_v45  ;;  %v2253_v56 = vunpack.c.h.s8.bf16 %v911_v45 }
  0xac   : > { %2497 = vmatpush1.bf16.msra.mxu1 %v1329_v50  ;;  %v2254_v50 = vunpack.c.h.s8.bf16 %v912_v38 }
  0xad   : > { %2579 = vmatpush1.bf16.msra.mxu0 %v2033_v51  ;;  %2507 = vmatprep.subr.bf16.mxu1 %v1352_v52  ;;  %v582_v51 = vld [vmem:[%s5389_s21 + $0x8f8] sm:$0xff] }
  0xae   : > { %2589 = vmatprep.subr.bf16.mxu0 %v2056_v54  ;;  %v934_v52 = vld [vmem:[%s5389_s21 + $0x13f8] sm:$0xff]  ;;  %v1549_v54 = vunpack.c.h.s8.bf16 %v559_v44  ;;  %v1572_v57 = vunpack.c.l.s8.bf16 %v582_v51  ;;  %v1594_v1 = vunpack.c.h.s8.bf16 %v582_v51  ;;  %v321_v51 = vld [vmem:[%s5389_s21 + $0xd0] sm:$0xff] }
  0xaf   : > { %2499 = vmatmul.mubr.bf16.vlgmr.msra.gmra.mrb[0].mxu1 %v5469_v58  ;;  %v322_v44 = vld [vmem:[%s5389_s21 + $0xd8] sm:$0xff] }
  0xb0   : > { %2581 = vmatmul.mubr.bf16.vlgmr.msra.gmra.mrb[0].mxu0 %v5473_v59  ;;  %2508 = vmatpush1.bf16.msra.mxu1 %v1351_v60  ;;  %v2276_v60 = vunpack.c.l.s8.bf16 %v934_v52 }
  0xb1   : > { %2590 = vmatpush1.bf16.msra.mxu0 %v2055_v61  ;;  %2509 = vmatprep.subr.bf16.mxu1 %v1374_v62  ;;  %v581_v61 = vld [vmem:[%s5389_s21 + $0x8f0] sm:$0xff] }
  0xb2   : > { %2591 = vmatprep.subr.bf16.mxu0 %v2078_v63  ;;  %2539 = vmatprep.mubr.bf16.mxu1 %v5479_v41  ;;  %v933_v62 = vld [vmem:[%s5389_s21 + $0x13f0] sm:$0xff]  ;;  %v1571_v63 = vunpack.c.l.s8.bf16 %v581_v61 }
  0xb3   : > { %2621 = vmatprep.mubr.bf16.mxu0 %v5483_v35  ;;  %v2275_v0 = vunpack.c.l.s8.bf16 %v933_v62  ;;  %v2297_v5 = vunpack.c.h.s8.bf16 %v933_v62 }
  0xb4   : > { %2510 = vmatpush1.bf16.msra.mxu1 %v1373_v46  ;;  %v2298_v46 = vunpack.c.h.s8.bf16 %v934_v52 }
  0xb5   : > { %2592 = vmatpush1.bf16.msra.mxu0 %v2077_v2  ;;  %2511 = vmatprep.subr.bf16.mxu1 %v1396_v3  ;;  %v604_v2 = vld [vmem:[%s5389_s21 + $0x9a8] sm:$0xff] }
  0xb6   : > { %2593 = vmatprep.subr.bf16.mxu0 %v2100_v4  ;;  %v956_v3 = vld [vmem:[%s5389_s21 + $0x14a8] sm:$0xff]  ;;  %v1593_v4 = vunpack.c.h.s8.bf16 %v581_v61  ;;  %v1616_v6 = vunpack.c.l.s8.bf16 %v604_v2  ;;  %v1638_v12 = vunpack.c.h.s8.bf16 %v604_v2  ;;  %v343_v2 = vld [vmem:[%s5389_s21 + $0x180] sm:$0xff] }
  0xb7   : > { %v344_v61 = vld [vmem:[%s5389_s21 + $0x188] sm:$0xff] }
  0xb8   : > { %2512 = vmatpush1.bf16.msra.mxu1 %v1395_v7  ;;  %v2320_v7 = vunpack.c.l.s8.bf16 %v956_v3 }
  0xb9   : > { %2594 = vmatpush1.bf16.msra.mxu0 %v2099_v8  ;;  %2513 = vmatprep.subr.bf16.mxu1 %v1418_v9  ;;  %v603_v8 = vld [vmem:[%s5389_s21 + $0x9a0] sm:$0xff] }
  0xba   : > { %2595 = vmatprep.subr.bf16.mxu0 %v2122_v10  ;;  %v955_v9 = vld [vmem:[%s5389_s21 + $0x14a0] sm:$0xff]  ;;  %v1615_v10 = vunpack.c.l.s8.bf16 %v603_v8 }
  0xbb   : > { %v2319_v11 = vunpack.c.l.s8.bf16 %v955_v9  ;;  %v2341_v17 = vunpack.c.h.s8.bf16 %v955_v9 }
  0xbc   : > { %2514 = vmatpush1.bf16.msra.mxu1 %v1417_v13  ;;  %v2342_v13 = vunpack.c.h.s8.bf16 %v956_v3 }
  0xbd   : > { %2596 = vmatpush1.bf16.msra.mxu0 %v2121_v14  ;;  %2515 = vmatprep.subr.bf16.mxu1 %v1440_v15  ;;  %v626_v14 = vld [vmem:[%s5389_s21 + $0xa58] sm:$0xff] }
  0xbe   : > { %2597 = vmatprep.subr.bf16.mxu0 %v2144_v16  ;;  %v978_v15 = vld [vmem:[%s5389_s21 + $0x1558] sm:$0xff]  ;;  %v1637_v16 = vunpack.c.h.s8.bf16 %v603_v8  ;;  %v1660_v18 = vunpack.c.l.s8.bf16 %v626_v14  ;;  %v1682_v24 = vunpack.c.h.s8.bf16 %v626_v14  ;;  %v365_v14 = vld [vmem:[%s5389_s21 + $0x230] sm:$0xff] }
  0xbf   : > { %v366_v8 = vld [vmem:[%s5389_s21 + $0x238] sm:$0xff] }
  0xc0   : > { %2516 = vmatpush1.bf16.msra.mxu1 %v1439_v19  ;;  %v2364_v19 = vunpack.c.l.s8.bf16 %v978_v15 }
  0xc1   : > { %2598 = vmatpush1.bf16.msra.mxu0 %v2143_v20  ;;  %2517 = vmatprep.subr.bf16.mxu1 %v1462_v21  ;;  %v625_v20 = vld [vmem:[%s5389_s21 + $0xa50] sm:$0xff] }
  0xc2   : > { %2599 = vmatprep.subr.bf16.mxu0 %v2166_v22  ;;  %v977_v21 = vld [vmem:[%s5389_s21 + $0x1550] sm:$0xff]  ;;  %v1659_v22 = vunpack.c.l.s8.bf16 %v625_v20 }
  0xc3   : > { %v2363_v23 = vunpack.c.l.s8.bf16 %v977_v21  ;;  %v2385_v30 = vunpack.c.h.s8.bf16 %v977_v21 }
  0xc4   : > { %2518 = vmatpush1.bf16.msra.mxu1 %v1461_v25  ;;  %v2386_v25 = vunpack.c.h.s8.bf16 %v978_v15 }
  0xc5   : > { %2600 = vmatpush1.bf16.msra.mxu0 %v2165_v27  ;;  %2519 = vmatprep.subr.bf16.mxu1 %v1484_v28  ;;  %v298_v27 = vld [vmem:[%s5389_s21 + $0x18] sm:$0xff]  ;;  %v300_v28 = vld [vmem:[%s5389_s21 + $0x28] sm:$0xff] }
  0xc6   : > { %2601 = vmatprep.subr.bf16.mxu0 %v2188_v29  ;;  %v1681_v29 = vunpack.c.h.s8.bf16 %v625_v20  ;;  %v1002_v31 = vunpack.c.l.s8.bf16 %v298_v27  ;;  %v388_v20 = vld [vmem:[%s5389_s21 + $0x2e8] sm:$0xff] }
  0xc8   : > { %2520 = vmatpush1.bf16.msra.mxu1 %v1483_v32  ;;  %v1004_v32 = vunpack.c.l.s8.bf16 %v300_v28 }
  0xc9   : > { %2602 = vmatpush1.bf16.msra.mxu0 %v2187_v33  ;;  %2521 = vmatprep.subr.bf16.mxu1 %v1506_v34  ;;  %v297_v33 = vld [vmem:[%s5389_s21 + $0x10] sm:$0xff]  ;;  %v299_v34 = vld [vmem:[%s5389_s21 + $0x20] sm:$0xff] }
  0xca   : > { %2603 = vmatprep.subr.bf16.mxu0 %v2210_v36  ;;  %v5521_v36 = vcombine.high %v5469_v58, %v5469_v58  ;;  %v1001_v38 = vunpack.c.l.s8.bf16 %v297_v33  ;;  %v1023_v45 = vunpack.c.h.s8.bf16 %v297_v33  ;;  %v410_v33 = vld [vmem:[%s5389_s21 + $0x398] sm:$0xff] }
  0xcc   : > { %2522 = vmatpush1.bf16.msra.mxu1 %v1505_v39  ;;  %v1003_v39 = vunpack.c.l.s8.bf16 %v299_v34 }
  0xcd   : > { %2604 = vmatpush1.bf16.msra.mxu0 %v2209_v40  ;;  %2523 = vmatprep.subr.bf16.mxu1 %v1528_v42  ;;  %v1024_v40 = vunpack.c.h.s8.bf16 %v298_v27  ;;  %v1026_v42 = vunpack.c.h.s8.bf16 %v300_v28  ;;  %v387_v27 = vld [vmem:[%s5389_s21 + $0x2e0] sm:$0xff] }
  0xce   : > { %2605 = vmatprep.subr.bf16.mxu0 %v2232_v43  ;;  %v320_v43 = vld [vmem:[%s5389_s21 + $0xc8] sm:$0xff] }
  0xd0   : > { %2524 = vmatpush1.bf16.msra.mxu1 %v1527_v47  ;;  %v1025_v47 = vunpack.c.h.s8.bf16 %v299_v34 }
  0xd1   : > { %2606 = vmatpush1.bf16.msra.mxu0 %v2231_v48  ;;  %2525 = vmatprep.subr.bf16.mxu1 %v1550_v49  ;;  %v1046_v48 = vunpack.c.l.s8.bf16 %v320_v43  ;;  %v1048_v49 = vunpack.c.l.s8.bf16 %v322_v44 }
  0xd2   : > { %2607 = vmatprep.subr.bf16.mxu0 %v2254_v50  ;;  %v319_v50 = vld [vmem:[%s5389_s21 + $0xc0] sm:$0xff] }
  0xd3   : > { %v1045_v52 = vunpack.c.l.s8.bf16 %v319_v50  ;;  %v1067_v62 = vunpack.c.h.s8.bf16 %v319_v50  ;;  %v432_v50 = vld [vmem:[%s5389_s21 + $0x448] sm:$0xff] }
  0xd4   : > { %2526 = vmatpush1.bf16.msra.mxu1 %v1549_v54  ;;  %v1047_v54 = vunpack.c.l.s8.bf16 %v321_v51 }
  0xd5   : > { %2608 = vmatpush1.bf16.msra.mxu0 %v2253_v56  ;;  %2527 = vmatprep.subr.bf16.mxu1 %v1572_v57  ;;  %v1068_v56 = vunpack.c.h.s8.bf16 %v320_v43  ;;  %v1070_v57 = vunpack.c.h.s8.bf16 %v322_v44  ;;  %v409_v43 = vld [vmem:[%s5389_s21 + $0x390] sm:$0xff] }
  0xd6   : > { %2609 = vmatprep.subr.bf16.mxu0 %v2276_v60  ;;  %v342_v60 = vld [vmem:[%s5389_s21 + $0x178] sm:$0xff] }
  0xd8   : > { %2528 = vmatpush1.bf16.msra.mxu1 %v1571_v63  ;;  %v1069_v63 = vunpack.c.h.s8.bf16 %v321_v51 }
  0xd9   : > { %2610 = vmatpush1.bf16.msra.mxu0 %v2275_v0  ;;  %2529 = vmatprep.subr.bf16.mxu1 %v1594_v1  ;;  %v1090_v0 = vunpack.c.l.s8.bf16 %v342_v60  ;;  %v1092_v1 = vunpack.c.l.s8.bf16 %v344_v61 }
  0xda   : > { %2611 = vmatprep.subr.bf16.mxu0 %v2298_v46  ;;  %v341_v46 = vld [vmem:[%s5389_s21 + $0x170] sm:$0xff] }
  0xdb   : > { %v1089_v3 = vunpack.c.l.s8.bf16 %v341_v46  ;;  %v1111_v9 = vunpack.c.h.s8.bf16 %v341_v46  ;;  %v454_v46 = vld [vmem:[%s5389_s21 + $0x4f8] sm:$0xff] }
  0xdc   : > { %2530 = vmatpush1.bf16.msra.mxu1 %v1593_v4  ;;  %v1091_v4 = vunpack.c.l.s8.bf16 %v343_v2 }
  0xdd   : > { %2612 = vmatpush1.bf16.msra.mxu0 %v2297_v5  ;;  %2531 = vmatprep.subr.bf16.mxu1 %v1616_v6  ;;  %v1112_v5 = vunpack.c.h.s8.bf16 %v342_v60  ;;  %v1114_v6 = vunpack.c.h.s8.bf16 %v344_v61  ;;  %v431_v60 = vld [vmem:[%s5389_s21 + $0x440] sm:$0xff] }
  0xde   : > { %2613 = vmatprep.subr.bf16.mxu0 %v2320_v7  ;;  %v364_v7 = vld [vmem:[%s5389_s21 + $0x228] sm:$0xff] }
  0xe0   : > { %2532 = vmatpush1.bf16.msra.mxu1 %v1615_v10  ;;  %v1113_v10 = vunpack.c.h.s8.bf16 %v343_v2 }
  0xe1   : > { %2614 = vmatpush1.bf16.msra.mxu0 %v2319_v11  ;;  %2533 = vmatprep.subr.bf16.mxu1 %v1638_v12  ;;  %v1134_v11 = vunpack.c.l.s8.bf16 %v364_v7  ;;  %v1136_v12 = vunpack.c.l.s8.bf16 %v366_v8 }
  0xe2   : > { %2615 = vmatprep.subr.bf16.mxu0 %v2342_v13  ;;  %v363_v13 = vld [vmem:[%s5389_s21 + $0x220] sm:$0xff] }
  0xe3   : > { %v1133_v15 = vunpack.c.l.s8.bf16 %v363_v13  ;;  %v1155_v21 = vunpack.c.h.s8.bf16 %v363_v13  ;;  %v476_v13 = vld [vmem:[%s5389_s21 + $0x5a8] sm:$0xff] }
  0xe4   : > { %2534 = vmatpush1.bf16.msra.mxu1 %v1637_v16  ;;  %v1135_v16 = vunpack.c.l.s8.bf16 %v365_v14 }
  0xe5   : > { %2616 = vmatpush1.bf16.msra.mxu0 %v2341_v17  ;;  %2535 = vmatprep.subr.bf16.mxu1 %v1660_v18  ;;  %v1156_v17 = vunpack.c.h.s8.bf16 %v364_v7  ;;  %v1158_v18 = vunpack.c.h.s8.bf16 %v366_v8  ;;  %v453_v7 = vld [vmem:[%s5389_s21 + $0x4f0] sm:$0xff] }
  0xe6   : > { %2617 = vmatprep.subr.bf16.mxu0 %v2364_v19  ;;  %v386_v19 = vld [vmem:[%s5389_s21 + $0x2d8] sm:$0xff] }
  0xe8   : > { %2536 = vmatpush1.bf16.msra.mxu1 %v1659_v22  ;;  %v1157_v22 = vunpack.c.h.s8.bf16 %v365_v14 }
  0xe9   : > { %2618 = vmatpush1.bf16.msra.mxu0 %v2363_v23  ;;  %2537 = vmatprep.subr.bf16.mxu1 %v1682_v24  ;;  %v1178_v23 = vunpack.c.l.s8.bf16 %v386_v19  ;;  %v1180_v24 = vunpack.c.l.s8.bf16 %v388_v20 }
  0xea   : > { %2619 = vmatprep.subr.bf16.mxu0 %v2386_v25  ;;  %v385_v25 = vld [vmem:[%s5389_s21 + $0x2d0] sm:$0xff] }
  0xeb   : > { %v1177_v28 = vunpack.c.l.s8.bf16 %v385_v25  ;;  %v1199_v34 = vunpack.c.h.s8.bf16 %v385_v25  ;;  %v498_v25 = vld [vmem:[%s5389_s21 + $0x658] sm:$0xff] }
  0xec   : > { %2538 = vmatpush1.bf16.msra.mxu1 %v1681_v29  ;;  %v1179_v29 = vunpack.c.l.s8.bf16 %v387_v27 }
  0xed   : > { %2620 = vmatpush1.bf16.msra.mxu0 %v2385_v30  ;;  %2630 = vmatprep.subr.bf16.mxu1 %v1002_v31  ;;  %v1200_v30 = vunpack.c.h.s8.bf16 %v386_v19  ;;  %v1202_v31 = vunpack.c.h.s8.bf16 %v388_v20  ;;  %v475_v19 = vld [vmem:[%s5389_s21 + $0x5a0] sm:$0xff] }
  0xee   : > { %2794 = vmatprep.subr.bf16.mxu0 %v1004_v32  ;;  %v408_v32 = vld [vmem:[%s5389_s21 + $0x388] sm:$0xff] }
  0xef   : > { %2540 = vmatmul.mubr.bf16.vlgmr.msra.gmra.mrb[0].mxu1 %v5521_v36 }
  0xf0   : > { %2622 = vmatmul.mubr.bf16.vlgmr.msra.gmra.mrb[0].mxu0 %v5525_v37  ;;  %2631 = vmatpush1.bf16.msra.mxu1 %v1001_v38  ;;  %v1201_v38 = vunpack.c.h.s8.bf16 %v387_v27 }
  0xf1   : > { %2795 = vmatpush1.bf16.msra.mxu0 %v1003_v39  ;;  %2632 = vmatprep.subr.bf16.mxu1 %v1024_v40  ;;  %v1222_v39 = vunpack.c.l.s8.bf16 %v408_v32  ;;  %v1224_v40 = vunpack.c.l.s8.bf16 %v410_v33 }
  0xf2   : > { %2796 = vmatprep.subr.bf16.mxu0 %v1026_v42  ;;  %2662 = vmatprep.mubr.bf16.mxu1 %v5438_v53  ;;  %v407_v42 = vld [vmem:[%s5389_s21 + $0x380] sm:$0xff] }
  0xf3   : > { %2826 = vmatprep.mubr.bf16.mxu0 %v5438_v53  ;;  %v1221_v44 = vunpack.c.l.s8.bf16 %v407_v42  ;;  %v1243_v51 = vunpack.c.h.s8.bf16 %v407_v42  ;;  %v520_v42 = vld [vmem:[%s5389_s21 + $0x708] sm:$0xff] }
  0xf4   : > { %2633 = vmatpush1.bf16.msra.mxu1 %v1023_v45  ;;  %v1223_v45 = vunpack.c.l.s8.bf16 %v409_v43 }
  0xf5   : > { %2797 = vmatpush1.bf16.msra.mxu0 %v1025_v47  ;;  %2634 = vmatprep.subr.bf16.mxu1 %v1046_v48  ;;  %v1244_v47 = vunpack.c.h.s8.bf16 %v408_v32  ;;  %v1246_v48 = vunpack.c.h.s8.bf16 %v410_v33  ;;  %v497_v32 = vld [vmem:[%s5389_s21 + $0x650] sm:$0xff] }
  0xf6   : > { %2798 = vmatprep.subr.bf16.mxu0 %v1048_v49  ;;  %v430_v49 = vld [vmem:[%s5389_s21 + $0x438] sm:$0xff] }
  0xf8   : > { %2635 = vmatpush1.bf16.msra.mxu1 %v1045_v52  ;;  %v1245_v52 = vunpack.c.h.s8.bf16 %v409_v43 }
  0xf9   : > { %2799 = vmatpush1.bf16.msra.mxu0 %v1047_v54  ;;  %2636 = vmatprep.subr.bf16.mxu1 %v1068_v56  ;;  %v1266_v54 = vunpack.c.l.s8.bf16 %v430_v49  ;;  %v1268_v56 = vunpack.c.l.s8.bf16 %v432_v50 }
  0xfa   : > { %2800 = vmatprep.subr.bf16.mxu0 %v1070_v57  ;;  %v429_v57 = vld [vmem:[%s5389_s21 + $0x430] sm:$0xff] }
  0xfb   : > { %v1265_v61 = vunpack.c.l.s8.bf16 %v429_v57  ;;  %v1287_v2 = vunpack.c.h.s8.bf16 %v429_v57  ;;  %v542_v57 = vld [vmem:[%s5389_s21 + $0x7b8] sm:$0xff] }
  0xfc   : > { %2637 = vmatpush1.bf16.msra.mxu1 %v1067_v62  ;;  %v1267_v62 = vunpack.c.l.s8.bf16 %v431_v60 }
  0xfd   : > { %2801 = vmatpush1.bf16.msra.mxu0 %v1069_v63  ;;  %2638 = vmatprep.subr.bf16.mxu1 %v1090_v0  ;;  %v1288_v63 = vunpack.c.h.s8.bf16 %v430_v49  ;;  %v1290_v0 = vunpack.c.h.s8.bf16 %v432_v50  ;;  %v519_v49 = vld [vmem:[%s5389_s21 + $0x700] sm:$0xff] }
  0xfe   : > { %2802 = vmatprep.subr.bf16.mxu0 %v1092_v1  ;;  %v452_v1 = vld [vmem:[%s5389_s21 + $0x4e8] sm:$0xff] }
 0x100   : > { %2639 = vmatpush1.bf16.msra.mxu1 %v1089_v3  ;;  %v1289_v3 = vunpack.c.h.s8.bf16 %v431_v60 }
 0x101   : > { %2803 = vmatpush1.bf16.msra.mxu0 %v1091_v4  ;;  %2640 = vmatprep.subr.bf16.mxu1 %v1112_v5  ;;  %v1310_v4 = vunpack.c.l.s8.bf16 %v452_v1  ;;  %v1312_v5 = vunpack.c.l.s8.bf16 %v454_v46 }
 0x102   : > { %2804 = vmatprep.subr.bf16.mxu0 %v1114_v6  ;;  %v451_v6 = vld [vmem:[%s5389_s21 + $0x4e0] sm:$0xff] }
 0x103   : > { %v1309_v8 = vunpack.c.l.s8.bf16 %v451_v6  ;;  %v1331_v14 = vunpack.c.h.s8.bf16 %v451_v6  ;;  %v564_v6 = vld [vmem:[%s5389_s21 + $0x868] sm:$0xff] }
 0x104   : > { %2641 = vmatpush1.bf16.msra.mxu1 %v1111_v9  ;;  %v1311_v9 = vunpack.c.l.s8.bf16 %v453_v7 }
 0x105   : > { %2805 = vmatpush1.bf16.msra.mxu0 %v1113_v10  ;;  %2642 = vmatprep.subr.bf16.mxu1 %v1134_v11  ;;  %v1332_v10 = vunpack.c.h.s8.bf16 %v452_v1  ;;  %v1334_v11 = vunpack.c.h.s8.bf16 %v454_v46  ;;  %v541_v1 = vld [vmem:[%s5389_s21 + $0x7b0] sm:$0xff] }
 0x106   : > { %2806 = vmatprep.subr.bf16.mxu0 %v1136_v12  ;;  %v474_v12 = vld [vmem:[%s5389_s21 + $0x598] sm:$0xff] }
 0x108   : > { %2643 = vmatpush1.bf16.msra.mxu1 %v1133_v15  ;;  %v1333_v15 = vunpack.c.h.s8.bf16 %v453_v7 }
 0x109   : > { %2807 = vmatpush1.bf16.msra.mxu0 %v1135_v16  ;;  %2644 = vmatprep.subr.bf16.mxu1 %v1156_v17  ;;  %v1354_v16 = vunpack.c.l.s8.bf16 %v474_v12  ;;  %v1356_v17 = vunpack.c.l.s8.bf16 %v476_v13 }
 0x10a   : > { %2808 = vmatprep.subr.bf16.mxu0 %v1158_v18  ;;  %v473_v18 = vld [vmem:[%s5389_s21 + $0x590] sm:$0xff] }
 0x10b   : > { %v1353_v20 = vunpack.c.l.s8.bf16 %v473_v18  ;;  %v1375_v27 = vunpack.c.h.s8.bf16 %v473_v18  ;;  %v586_v18 = vld [vmem:[%s5389_s21 + $0x918] sm:$0xff] }
 0x10c   : > { %2645 = vmatpush1.bf16.msra.mxu1 %v1155_v21  ;;  %v1355_v21 = vunpack.c.l.s8.bf16 %v475_v19 }
 0x10d   : > { %2809 = vmatpush1.bf16.msra.mxu0 %v1157_v22  ;;  %2646 = vmatprep.subr.bf16.mxu1 %v1178_v23  ;;  %v1376_v22 = vunpack.c.h.s8.bf16 %v474_v12  ;;  %v1378_v23 = vunpack.c.h.s8.bf16 %v476_v13  ;;  %v563_v12 = vld [vmem:[%s5389_s21 + $0x860] sm:$0xff] }
 0x10e   : > { %2810 = vmatprep.subr.bf16.mxu0 %v1180_v24  ;;  %v496_v24 = vld [vmem:[%s5389_s21 + $0x648] sm:$0xff] }
 0x110   : > { %2647 = vmatpush1.bf16.msra.mxu1 %v1177_v28  ;;  %v1377_v28 = vunpack.c.h.s8.bf16 %v475_v19 }
 0x111   : > { %2811 = vmatpush1.bf16.msra.mxu0 %v1179_v29  ;;  %2648 = vmatprep.subr.bf16.mxu1 %v1200_v30  ;;  %v1398_v29 = vunpack.c.l.s8.bf16 %v496_v24  ;;  %v1400_v30 = vunpack.c.l.s8.bf16 %v498_v25 }
 0x112   : > { %2812 = vmatprep.subr.bf16.mxu0 %v1202_v31  ;;  %v495_v31 = vld [vmem:[%s5389_s21 + $0x640] sm:$0xff] }
 0x113   : > { %v1397_v33 = vunpack.c.l.s8.bf16 %v495_v31  ;;  %v1419_v43 = vunpack.c.h.s8.bf16 %v495_v31  ;;  %v608_v31 = vld [vmem:[%s5389_s21 + $0x9c8] sm:$0xff] }
 0x114   : > { %2649 = vmatpush1.bf16.msra.mxu1 %v1199_v34  ;;  %v1399_v34 = vunpack.c.l.s8.bf16 %v497_v32 }
 0x115   : > { %2813 = vmatpush1.bf16.msra.mxu0 %v1201_v38  ;;  %2650 = vmatprep.subr.bf16.mxu1 %v1222_v39  ;;  %v1420_v38 = vunpack.c.h.s8.bf16 %v496_v24  ;;  %v1422_v39 = vunpack.c.h.s8.bf16 %v498_v25  ;;  %v585_v24 = vld [vmem:[%s5389_s21 + $0x910] sm:$0xff] }
 0x116   : > { %2814 = vmatprep.subr.bf16.mxu0 %v1224_v40  ;;  %v518_v40 = vld [vmem:[%s5389_s21 + $0x6f8] sm:$0xff] }
 0x118   : > { %2651 = vmatpush1.bf16.msra.mxu1 %v1221_v44  ;;  %v1421_v44 = vunpack.c.h.s8.bf16 %v497_v32 }
 0x119   : > { %2815 = vmatpush1.bf16.msra.mxu0 %v1223_v45  ;;  %2652 = vmatprep.subr.bf16.mxu1 %v1244_v47  ;;  %v1442_v45 = vunpack.c.l.s8.bf16 %v518_v40  ;;  %v1444_v47 = vunpack.c.l.s8.bf16 %v520_v42 }
 0x11a   : > { %2816 = vmatprep.subr.bf16.mxu0 %v1246_v48  ;;  %v517_v48 = vld [vmem:[%s5389_s21 + $0x6f0] sm:$0xff] }
 0x11b   : > { %v1441_v50 = vunpack.c.l.s8.bf16 %v517_v48  ;;  %v1463_v60 = vunpack.c.h.s8.bf16 %v517_v48  ;;  %v630_v48 = vld [vmem:[%s5389_s21 + $0xa78] sm:$0xff] }
 0x11c   : > { %2653 = vmatpush1.bf16.msra.mxu1 %v1243_v51  ;;  %v1443_v51 = vunpack.c.l.s8.bf16 %v519_v49 }
 0x11d   : > { %2817 = vmatpush1.bf16.msra.mxu0 %v1245_v52  ;;  %2654 = vmatprep.subr.bf16.mxu1 %v1266_v54  ;;  %v1464_v52 = vunpack.c.h.s8.bf16 %v518_v40  ;;  %v1466_v54 = vunpack.c.h.s8.bf16 %v520_v42  ;;  %v607_v40 = vld [vmem:[%s5389_s21 + $0x9c0] sm:$0xff] }
 0x11e   : > { %2818 = vmatprep.subr.bf16.mxu0 %v1268_v56  ;;  %v540_v56 = vld [vmem:[%s5389_s21 + $0x7a8] sm:$0xff] }
 0x120   : > { %2655 = vmatpush1.bf16.msra.mxu1 %v1265_v61  ;;  %v1465_v61 = vunpack.c.h.s8.bf16 %v519_v49 }
 0x121   : > { %2819 = vmatpush1.bf16.msra.mxu0 %v1267_v62  ;;  %2656 = vmatprep.subr.bf16.mxu1 %v1288_v63  ;;  %v1486_v62 = vunpack.c.l.s8.bf16 %v540_v56  ;;  %v1488_v63 = vunpack.c.l.s8.bf16 %v542_v57 }
 0x122   : > { %2820 = vmatprep.subr.bf16.mxu0 %v1290_v0  ;;  %v539_v0 = vld [vmem:[%s5389_s21 + $0x7a0] sm:$0xff] }
 0x123   : > { %v1485_v46 = vunpack.c.l.s8.bf16 %v539_v0  ;;  %v1507_v7 = vunpack.c.h.s8.bf16 %v539_v0  ;;  %v652_v0 = vld [vmem:[%s5389_s21 + $0xb28] sm:$0xff] }
 0x124   : > { %2657 = vmatpush1.bf16.msra.mxu1 %v1287_v2  ;;  %v1487_v2 = vunpack.c.l.s8.bf16 %v541_v1 }
 0x125   : > { %2821 = vmatpush1.bf16.msra.mxu0 %v1289_v3  ;;  %2658 = vmatprep.subr.bf16.mxu1 %v1310_v4  ;;  %v1508_v3 = vunpack.c.h.s8.bf16 %v540_v56  ;;  %v1510_v4 = vunpack.c.h.s8.bf16 %v542_v57  ;;  %v629_v56 = vld [vmem:[%s5389_s21 + $0xa70] sm:$0xff] }
 0x126   : > { %2822 = vmatprep.subr.bf16.mxu0 %v1312_v5  ;;  %v562_v5 = vld [vmem:[%s5389_s21 + $0x858] sm:$0xff] }
 0x128   : > { %2659 = vmatpush1.bf16.msra.mxu1 %v1309_v8  ;;  %v1509_v8 = vunpack.c.h.s8.bf16 %v541_v1 }
 0x129   : > { %2823 = vmatpush1.bf16.msra.mxu0 %v1311_v9  ;;  %2660 = vmatprep.subr.bf16.mxu1 %v1332_v10  ;;  %v1530_v9 = vunpack.c.l.s8.bf16 %v562_v5  ;;  %v1532_v10 = vunpack.c.l.s8.bf16 %v564_v6 }
 0x12a   : > { %2824 = vmatprep.subr.bf16.mxu0 %v1334_v11  ;;  %v561_v11 = vld [vmem:[%s5389_s21 + $0x850] sm:$0xff] }
 0x12b   : > { %v1529_v13 = vunpack.c.l.s8.bf16 %v561_v11  ;;  %v1551_v19 = vunpack.c.h.s8.bf16 %v561_v11  ;;  %v674_v11 = vld [vmem:[%s5389_s21 + $0xbd8] sm:$0xff] }
 0x12c   : > { %2661 = vmatpush1.bf16.msra.mxu1 %v1331_v14  ;;  %v1531_v14 = vunpack.c.l.s8.bf16 %v563_v12 }
 0x12d   : > { %2825 = vmatpush1.bf16.msra.mxu0 %v1333_v15  ;;  %2671 = vmatprep.subr.bf16.mxu1 %v1354_v16  ;;  %v1552_v15 = vunpack.c.h.s8.bf16 %v562_v5  ;;  %v1554_v16 = vunpack.c.h.s8.bf16 %v564_v6  ;;  %v651_v5 = vld [vmem:[%s5389_s21 + $0xb20] sm:$0xff] }
 0x12e   : > { %2835 = vmatprep.subr.bf16.mxu0 %v1356_v17  ;;  %v584_v17 = vld [vmem:[%s5389_s21 + $0x908] sm:$0xff] }
 0x12f   : > { %2663 = vmatmul.mubr.bf16.vlgmr.msra.gmra.mrb[4].mxu1 %v5469_v58 }
 0x130   : > { %2827 = vmatmul.mubr.bf16.vlgmr.msra.gmra.mrb[4].mxu0 %v5469_v58  ;;  %2672 = vmatpush1.bf16.msra.mxu1 %v1353_v20  ;;  %v1553_v20 = vunpack.c.h.s8.bf16 %v563_v12 }
 0x131   : > { %2836 = vmatpush1.bf16.msra.mxu0 %v1355_v21  ;;  %2673 = vmatprep.subr.bf16.mxu1 %v1376_v22  ;;  %v1574_v21 = vunpack.c.l.s8.bf16 %v584_v17  ;;  %v1576_v22 = vunpack.c.l.s8.bf16 %v586_v18 }
 0x132   : > { %2837 = vmatprep.subr.bf16.mxu0 %v1378_v23  ;;  %2703 = vmatprep.mubr.bf16.mxu1 %v5479_v41  ;;  %v583_v23 = vld [vmem:[%s5389_s21 + $0x900] sm:$0xff] }
 0x133   : > { %2867 = vmatprep.mubr.bf16.mxu0 %v5479_v41  ;;  %v1573_v25 = vunpack.c.l.s8.bf16 %v583_v23  ;;  %v1595_v32 = vunpack.c.h.s8.bf16 %v583_v23  ;;  %v696_v23 = vld [vmem:[%s5389_s21 + $0xc88] sm:$0xff] }
 0x134   : > { %2674 = vmatpush1.bf16.msra.mxu1 %v1375_v27  ;;  %v1575_v27 = vunpack.c.l.s8.bf16 %v585_v24 }
 0x135   : > { %2838 = vmatpush1.bf16.msra.mxu0 %v1377_v28  ;;  %2675 = vmatprep.subr.bf16.mxu1 %v1398_v29  ;;  %v1596_v28 = vunpack.c.h.s8.bf16 %v584_v17  ;;  %v1598_v29 = vunpack.c.h.s8.bf16 %v586_v18  ;;  %v673_v17 = vld [vmem:[%s5389_s21 + $0xbd0] sm:$0xff] }
 0x136   : > { %2839 = vmatprep.subr.bf16.mxu0 %v1400_v30  ;;  %v606_v30 = vld [vmem:[%s5389_s21 + $0x9b8] sm:$0xff] }
 0x138   : > { %2676 = vmatpush1.bf16.msra.mxu1 %v1397_v33  ;;  %v1597_v33 = vunpack.c.h.s8.bf16 %v585_v24 }
 0x139   : > { %2840 = vmatpush1.bf16.msra.mxu0 %v1399_v34  ;;  %2677 = vmatprep.subr.bf16.mxu1 %v1420_v38  ;;  %v1618_v34 = vunpack.c.l.s8.bf16 %v606_v30  ;;  %v1620_v38 = vunpack.c.l.s8.bf16 %v608_v31 }
 0x13a   : > { %2841 = vmatprep.subr.bf16.mxu0 %v1422_v39  ;;  %v605_v39 = vld [vmem:[%s5389_s21 + $0x9b0] sm:$0xff] }
 0x13b   : > { %v1617_v42 = vunpack.c.l.s8.bf16 %v605_v39  ;;  %v1639_v49 = vunpack.c.h.s8.bf16 %v605_v39  ;;  %v718_v39 = vld [vmem:[%s5389_s21 + $0xd38] sm:$0xff] }
 0x13c   : > { %2678 = vmatpush1.bf16.msra.mxu1 %v1419_v43  ;;  %v1619_v43 = vunpack.c.l.s8.bf16 %v607_v40 }
 0x13d   : > { %2842 = vmatpush1.bf16.msra.mxu0 %v1421_v44  ;;  %2679 = vmatprep.subr.bf16.mxu1 %v1442_v45  ;;  %v1640_v44 = vunpack.c.h.s8.bf16 %v606_v30  ;;  %v1642_v45 = vunpack.c.h.s8.bf16 %v608_v31  ;;  %v695_v30 = vld [vmem:[%s5389_s21 + $0xc80] sm:$0xff] }
 0x13e   : > { %2843 = vmatprep.subr.bf16.mxu0 %v1444_v47  ;;  %v628_v47 = vld [vmem:[%s5389_s21 + $0xa68] sm:$0xff] }
 0x140   : > { %2680 = vmatpush1.bf16.msra.mxu1 %v1441_v50  ;;  %v1641_v50 = vunpack.c.h.s8.bf16 %v607_v40 }
 0x141   : > { %2844 = vmatpush1.bf16.msra.mxu0 %v1443_v51  ;;  %2681 = vmatprep.subr.bf16.mxu1 %v1464_v52  ;;  %v1662_v51 = vunpack.c.l.s8.bf16 %v628_v47  ;;  %v1664_v52 = vunpack.c.l.s8.bf16 %v630_v48 }
 0x142   : > { %2845 = vmatprep.subr.bf16.mxu0 %v1466_v54  ;;  %v627_v54 = vld [vmem:[%s5389_s21 + $0xa60] sm:$0xff] }
 0x143   : > { %v1661_v57 = vunpack.c.l.s8.bf16 %v627_v54  ;;  %v1683_v1 = vunpack.c.h.s8.bf16 %v627_v54  ;;  %v740_v54 = vld [vmem:[%s5389_s21 + $0xde8] sm:$0xff] }
 0x144   : > { %2682 = vmatpush1.bf16.msra.mxu1 %v1463_v60  ;;  %v1663_v60 = vunpack.c.l.s8.bf16 %v629_v56 }
 0x145   : > { %2846 = vmatpush1.bf16.msra.mxu0 %v1465_v61  ;;  %2683 = vmatprep.subr.bf16.mxu1 %v1486_v62  ;;  %v1684_v61 = vunpack.c.h.s8.bf16 %v628_v47  ;;  %v1686_v62 = vunpack.c.h.s8.bf16 %v630_v48  ;;  %v717_v47 = vld [vmem:[%s5389_s21 + $0xd30] sm:$0xff] }
 0x146   : > { %2847 = vmatprep.subr.bf16.mxu0 %v1488_v63  ;;  %v650_v63 = vld [vmem:[%s5389_s21 + $0xb18] sm:$0xff] }
 0x148   : > { %2684 = vmatpush1.bf16.msra.mxu1 %v1485_v46  ;;  %v1685_v46 = vunpack.c.h.s8.bf16 %v629_v56 }
 0x149   : > { %2848 = vmatpush1.bf16.msra.mxu0 %v1487_v2  ;;  %2685 = vmatprep.subr.bf16.mxu1 %v1508_v3  ;;  %v1706_v2 = vunpack.c.l.s8.bf16 %v650_v63  ;;  %v1708_v3 = vunpack.c.l.s8.bf16 %v652_v0 }
 0x14a   : > { %2849 = vmatprep.subr.bf16.mxu0 %v1510_v4  ;;  %v649_v4 = vld [vmem:[%s5389_s21 + $0xb10] sm:$0xff] }
 0x14b   : > { %v1705_v6 = vunpack.c.l.s8.bf16 %v649_v4  ;;  %v1727_v12 = vunpack.c.h.s8.bf16 %v649_v4  ;;  %v762_v4 = vld [vmem:[%s5389_s21 + $0xe98] sm:$0xff] }
 0x14c   : > { %2686 = vmatpush1.bf16.msra.mxu1 %v1507_v7  ;;  %v1707_v7 = vunpack.c.l.s8.bf16 %v651_v5 }
 0x14d   : > { %2850 = vmatpush1.bf16.msra.mxu0 %v1509_v8  ;;  %2687 = vmatprep.subr.bf16.mxu1 %v1530_v9  ;;  %v1728_v8 = vunpack.c.h.s8.bf16 %v650_v63  ;;  %v1730_v9 = vunpack.c.h.s8.bf16 %v652_v0  ;;  %v739_v63 = vld [vmem:[%s5389_s21 + $0xde0] sm:$0xff] }
 0x14e   : > { %2851 = vmatprep.subr.bf16.mxu0 %v1532_v10  ;;  %v672_v10 = vld [vmem:[%s5389_s21 + $0xbc8] sm:$0xff] }
 0x150   : > { %2688 = vmatpush1.bf16.msra.mxu1 %v1529_v13  ;;  %v1729_v13 = vunpack.c.h.s8.bf16 %v651_v5 }
 0x151   : > { %2852 = vmatpush1.bf16.msra.mxu0 %v1531_v14  ;;  %2689 = vmatprep.subr.bf16.mxu1 %v1552_v15  ;;  %v1750_v14 = vunpack.c.l.s8.bf16 %v672_v10  ;;  %v1752_v15 = vunpack.c.l.s8.bf16 %v674_v11 }
 0x152   : > { %2853 = vmatprep.subr.bf16.mxu0 %v1554_v16  ;;  %v671_v16 = vld [vmem:[%s5389_s21 + $0xbc0] sm:$0xff] }
 0x153   : > { %v1749_v18 = vunpack.c.l.s8.bf16 %v671_v16  ;;  %v1771_v24 = vunpack.c.h.s8.bf16 %v671_v16  ;;  %v784_v16 = vld [vmem:[%s5389_s21 + $0xf48] sm:$0xff] }
 0x154   : > { %2690 = vmatpush1.bf16.msra.mxu1 %v1551_v19  ;;  %v1751_v19 = vunpack.c.l.s8.bf16 %v673_v17 }
 0x155   : > { %2854 = vmatpush1.bf16.msra.mxu0 %v1553_v20  ;;  %2691 = vmatprep.subr.bf16.mxu1 %v1574_v21  ;;  %v1772_v20 = vunpack.c.h.s8.bf16 %v672_v10  ;;  %v1774_v21 = vunpack.c.h.s8.bf16 %v674_v11  ;;  %v761_v10 = vld [vmem:[%s5389_s21 + $0xe90] sm:$0xff] }
 0x156   : > { %2855 = vmatprep.subr.bf16.mxu0 %v1576_v22  ;;  %v694_v22 = vld [vmem:[%s5389_s21 + $0xc78] sm:$0xff] }
 0x158   : > { %2692 = vmatpush1.bf16.msra.mxu1 %v1573_v25  ;;  %v1773_v25 = vunpack.c.h.s8.bf16 %v673_v17 }
 0x159   : > { %2856 = vmatpush1.bf16.msra.mxu0 %v1575_v27  ;;  %2693 = vmatprep.subr.bf16.mxu1 %v1596_v28  ;;  %v1794_v27 = vunpack.c.l.s8.bf16 %v694_v22  ;;  %v1796_v28 = vunpack.c.l.s8.bf16 %v696_v23 }
 0x15a   : > { %2857 = vmatprep.subr.bf16.mxu0 %v1598_v29  ;;  %v693_v29 = vld [vmem:[%s5389_s21 + $0xc70] sm:$0xff] }
 0x15b   : > { %v1793_v31 = vunpack.c.l.s8.bf16 %v693_v29  ;;  %v1815_v40 = vunpack.c.h.s8.bf16 %v693_v29  ;;  %v806_v29 = vld [vmem:[%s5389_s21 + $0xff8] sm:$0xff] }
 0x15c   : > { %2694 = vmatpush1.bf16.msra.mxu1 %v1595_v32  ;;  %v1795_v32 = vunpack.c.l.s8.bf16 %v695_v30 }
 0x15d   : > { %2858 = vmatpush1.bf16.msra.mxu0 %v1597_v33  ;;  %2695 = vmatprep.subr.bf16.mxu1 %v1618_v34  ;;  %v1816_v33 = vunpack.c.h.s8.bf16 %v694_v22  ;;  %v1818_v34 = vunpack.c.h.s8.bf16 %v696_v23  ;;  %v783_v22 = vld [vmem:[%s5389_s21 + $0xf40] sm:$0xff] }
 0x15e   : > { %2859 = vmatprep.subr.bf16.mxu0 %v1620_v38  ;;  %v716_v38 = vld [vmem:[%s5389_s21 + $0xd28] sm:$0xff] }
 0x160   : > { %2696 = vmatpush1.bf16.msra.mxu1 %v1617_v42  ;;  %v1817_v42 = vunpack.c.h.s8.bf16 %v695_v30 }
 0x161   : > { %2860 = vmatpush1.bf16.msra.mxu0 %v1619_v43  ;;  %2697 = vmatprep.subr.bf16.mxu1 %v1640_v44  ;;  %v1838_v43 = vunpack.c.l.s8.bf16 %v716_v38  ;;  %v1840_v44 = vunpack.c.l.s8.bf16 %v718_v39 }
 0x162   : > { %2861 = vmatprep.subr.bf16.mxu0 %v1642_v45  ;;  %v715_v45 = vld [vmem:[%s5389_s21 + $0xd20] sm:$0xff] }
 0x163   : > { %v1837_v48 = vunpack.c.l.s8.bf16 %v715_v45  ;;  %v1859_v56 = vunpack.c.h.s8.bf16 %v715_v45  ;;  %v828_v45 = vld [vmem:[%s5389_s21 + $0x10a8] sm:$0xff] }
 0x164   : > { %2698 = vmatpush1.bf16.msra.mxu1 %v1639_v49  ;;  %v1839_v49 = vunpack.c.l.s8.bf16 %v717_v47 }
 0x165   : > { %2862 = vmatpush1.bf16.msra.mxu0 %v1641_v50  ;;  %2699 = vmatprep.subr.bf16.mxu1 %v1662_v51  ;;  %v1860_v50 = vunpack.c.h.s8.bf16 %v716_v38  ;;  %v1862_v51 = vunpack.c.h.s8.bf16 %v718_v39  ;;  %v805_v38 = vld [vmem:[%s5389_s21 + $0xff0] sm:$0xff] }
 0x166   : > { %2863 = vmatprep.subr.bf16.mxu0 %v1664_v52  ;;  %v738_v52 = vld [vmem:[%s5389_s21 + $0xdd8] sm:$0xff] }
 0x168   : > { %2700 = vmatpush1.bf16.msra.mxu1 %v1661_v57  ;;  %v1861_v57 = vunpack.c.h.s8.bf16 %v717_v47 }
 0x169   : > { %2864 = vmatpush1.bf16.msra.mxu0 %v1663_v60  ;;  %2701 = vmatprep.subr.bf16.mxu1 %v1684_v61  ;;  %v1882_v60 = vunpack.c.l.s8.bf16 %v738_v52  ;;  %v1884_v61 = vunpack.c.l.s8.bf16 %v740_v54 }
 0x16a   : > { %2865 = vmatprep.subr.bf16.mxu0 %v1686_v62  ;;  %v737_v62 = vld [vmem:[%s5389_s21 + $0xdd0] sm:$0xff] }
 0x16b   : > { %v1881_v0 = vunpack.c.l.s8.bf16 %v737_v62  ;;  %v1903_v5 = vunpack.c.h.s8.bf16 %v737_v62  ;;  %v850_v62 = vld [vmem:[%s5389_s21 + $0x1158] sm:$0xff] }
 0x16c   : > { %2702 = vmatpush1.bf16.msra.mxu1 %v1683_v1  ;;  %v1883_v1 = vunpack.c.l.s8.bf16 %v739_v63 }
 0x16d   : > { %2866 = vmatpush1.bf16.msra.mxu0 %v1685_v46  ;;  %2712 = vmatprep.subr.bf16.mxu1 %v1706_v2  ;;  %v1904_v46 = vunpack.c.h.s8.bf16 %v738_v52  ;;  %v1906_v2 = vunpack.c.h.s8.bf16 %v740_v54  ;;  %v827_v52 = vld [vmem:[%s5389_s21 + $0x10a0] sm:$0xff] }
 0x16e   : > { %2876 = vmatprep.subr.bf16.mxu0 %v1708_v3  ;;  %v760_v3 = vld [vmem:[%s5389_s21 + $0xe88] sm:$0xff] }
 0x16f   : > { %2704 = vmatmul.mubr.bf16.vlgmr.msra.gmra.mrb[4].mxu1 %v5521_v36 }
 0x170   : > { %2868 = vmatmul.mubr.bf16.vlgmr.msra.gmra.mrb[4].mxu0 %v5521_v36  ;;  %2713 = vmatpush1.bf16.msra.mxu1 %v1705_v6  ;;  %v1905_v6 = vunpack.c.h.s8.bf16 %v739_v63 }
 0x171   : > { %2877 = vmatpush1.bf16.msra.mxu0 %v1707_v7  ;;  %2714 = vmatprep.subr.bf16.mxu1 %v1728_v8  ;;  %v1926_v7 = vunpack.c.l.s8.bf16 %v760_v3  ;;  %v1928_v8 = vunpack.c.l.s8.bf16 %v762_v4 }
 0x172   : > { %2878 = vmatprep.subr.bf16.mxu0 %v1730_v9  ;;  %2744 = vmatprep.mubr.bf16.mxu1 %v5444_v55  ;;  %v759_v9 = vld [vmem:[%s5389_s21 + $0xe80] sm:$0xff] }
 0x173   : > { %2908 = vmatprep.mubr.bf16.mxu0 %v5444_v55  ;;  %v1925_v11 = vunpack.c.l.s8.bf16 %v759_v9  ;;  %v1947_v17 = vunpack.c.h.s8.bf16 %v759_v9  ;;  %v872_v9 = vld [vmem:[%s5389_s21 + $0x1208] sm:$0xff] }
 0x174   : > { %2715 = vmatpush1.bf16.msra.mxu1 %v1727_v12  ;;  %v1927_v12 = vunpack.c.l.s8.bf16 %v761_v10 }
 0x175   : > { %2879 = vmatpush1.bf16.msra.mxu0 %v1729_v13  ;;  %2716 = vmatprep.subr.bf16.mxu1 %v1750_v14  ;;  %v1948_v13 = vunpack.c.h.s8.bf16 %v760_v3  ;;  %v1950_v14 = vunpack.c.h.s8.bf16 %v762_v4  ;;  %v849_v3 = vld [vmem:[%s5389_s21 + $0x1150] sm:$0xff] }
 0x176   : > { %2880 = vmatprep.subr.bf16.mxu0 %v1752_v15  ;;  %v782_v15 = vld [vmem:[%s5389_s21 + $0xf38] sm:$0xff] }
 0x178   : > { %2717 = vmatpush1.bf16.msra.mxu1 %v1749_v18  ;;  %v1949_v18 = vunpack.c.h.s8.bf16 %v761_v10 }
 0x179   : > { %2881 = vmatpush1.bf16.msra.mxu0 %v1751_v19  ;;  %2718 = vmatprep.subr.bf16.mxu1 %v1772_v20  ;;  %v1970_v19 = vunpack.c.l.s8.bf16 %v782_v15  ;;  %v1972_v20 = vunpack.c.l.s8.bf16 %v784_v16 }
 0x17a   : > { %2882 = vmatprep.subr.bf16.mxu0 %v1774_v21  ;;  %v781_v21 = vld [vmem:[%s5389_s21 + $0xf30] sm:$0xff] }
 0x17b   : > { %v1969_v23 = vunpack.c.l.s8.bf16 %v781_v21  ;;  %v1991_v30 = vunpack.c.h.s8.bf16 %v781_v21  ;;  %v4270_v21 = vld [vmem:[%s5399_s14] sm:$0xff] }
 0x17c   : > { %2719 = vmatpush1.bf16.msra.mxu1 %v1771_v24  ;;  %v1971_v24 = vunpack.c.l.s8.bf16 %v783_v22 }
 0x17d   : > { %2883 = vmatpush1.bf16.msra.mxu0 %v1773_v25  ;;  %2720 = vmatprep.subr.bf16.mxu1 %v1794_v27  ;;  %v1992_v25 = vunpack.c.h.s8.bf16 %v782_v15  ;;  %v1994_v27 = vunpack.c.h.s8.bf16 %v784_v16  ;;  %v871_v15 = vld [vmem:[%s5389_s21 + $0x1200] sm:$0xff] }
 0x17e   : > { %2884 = vmatprep.subr.bf16.mxu0 %v1796_v28  ;;  %v804_v28 = vld [vmem:[%s5389_s21 + $0xfe8] sm:$0xff] }
 0x180   : > { %2721 = vmatpush1.bf16.msra.mxu1 %v1793_v31  ;;  %v1993_v31 = vunpack.c.h.s8.bf16 %v783_v22  ;;  %v5652_v22 = vsub.s32 1, %v5413_v26 }
 0x181   : > { %2885 = vmatpush1.bf16.msra.mxu0 %v1795_v32  ;;  %2722 = vmatprep.subr.bf16.mxu1 %v1816_v33  ;;  %v2014_v32 = vunpack.c.l.s8.bf16 %v804_v28  ;;  %v2016_v33 = vunpack.c.l.s8.bf16 %v806_v29 }
 0x182   : > { %2886 = vmatprep.subr.bf16.mxu0 %v1818_v34  ;;  %v803_v34 = vld [vmem:[%s5389_s21 + $0xfe0] sm:$0xff] }
 0x183   : > { %v2013_v39 = vunpack.c.l.s8.bf16 %v803_v34  ;;  %v2035_v47 = vunpack.c.h.s8.bf16 %v803_v34 }
 0x184   : > { %2723 = vmatpush1.bf16.msra.mxu1 %v1815_v40  ;;  %v2015_v40 = vunpack.c.l.s8.bf16 %v805_v38 }
 0x185   : > { %2887 = vmatpush1.bf16.msra.mxu0 %v1817_v42  ;;  %2724 = vmatprep.subr.bf16.mxu1 %v1838_v43  ;;  %v2036_v42 = vunpack.c.h.s8.bf16 %v804_v28  ;;  %v2038_v43 = vunpack.c.h.s8.bf16 %v806_v29  ;;  %v2169_v28 = vunpack.c.h.s8.bf16 %v871_v15 }
 0x186   : > { %2888 = vmatprep.subr.bf16.mxu0 %v1840_v44  ;;  %v826_v44 = vld [vmem:[%s5389_s21 + $0x1098] sm:$0xff] }
 0x188   : > { %2725 = vmatpush1.bf16.msra.mxu1 %v1837_v48  ;;  %v2037_v48 = vunpack.c.h.s8.bf16 %v805_v38 }
 0x189   : > { %2889 = vmatpush1.bf16.msra.mxu0 %v1839_v49  ;;  %2726 = vmatprep.subr.bf16.mxu1 %v1860_v50  ;;  %v2058_v49 = vunpack.c.l.s8.bf16 %v826_v44  ;;  %v2060_v50 = vunpack.c.l.s8.bf16 %v828_v45 }
 0x18a   : > { %2890 = vmatprep.subr.bf16.mxu0 %v1862_v51  ;;  %v825_v51 = vld [vmem:[%s5389_s21 + $0x1090] sm:$0xff] }
 0x18b   : > { %v2057_v54 = vunpack.c.l.s8.bf16 %v825_v51  ;;  %v2079_v63 = vunpack.c.h.s8.bf16 %v825_v51 }
 0x18c   : > { %2727 = vmatpush1.bf16.msra.mxu1 %v1859_v56  ;;  %v2059_v56 = vunpack.c.l.s8.bf16 %v827_v52 }
 0x18d   : > { %2891 = vmatpush1.bf16.msra.mxu0 %v1861_v57  ;;  %2728 = vmatprep.subr.bf16.mxu1 %v1882_v60  ;;  %v2080_v57 = vunpack.c.h.s8.bf16 %v826_v44  ;;  %v2082_v60 = vunpack.c.h.s8.bf16 %v828_v45 }
 0x18e   : > { %2892 = vmatprep.subr.bf16.mxu0 %v1884_v61  ;;  %v848_v61 = vld [vmem:[%s5389_s21 + $0x1148] sm:$0xff] }
 0x190   : > { %2729 = vmatpush1.bf16.msra.mxu1 %v1881_v0  ;;  %v2081_v0 = vunpack.c.h.s8.bf16 %v827_v52 }
 0x191   : > { %2893 = vmatpush1.bf16.msra.mxu0 %v1883_v1  ;;  %2730 = vmatprep.subr.bf16.mxu1 %v1904_v46  ;;  %v2102_v1 = vunpack.c.l.s8.bf16 %v848_v61  ;;  %v2104_v46 = vunpack.c.l.s8.bf16 %v850_v62 }
 0x192   : > { %2894 = vmatprep.subr.bf16.mxu0 %v1906_v2  ;;  %v847_v2 = vld [vmem:[%s5389_s21 + $0x1140] sm:$0xff] }
 0x193   : > { %v2101_v4 = vunpack.c.l.s8.bf16 %v847_v2  ;;  %v2123_v10 = vunpack.c.h.s8.bf16 %v847_v2 }
 0x194   : > { %2731 = vmatpush1.bf16.msra.mxu1 %v1903_v5  ;;  %v2103_v5 = vunpack.c.l.s8.bf16 %v849_v3 }
 0x195   : > { %2895 = vmatpush1.bf16.msra.mxu0 %v1905_v6  ;;  %2732 = vmatprep.subr.bf16.mxu1 %v1926_v7  ;;  %v2124_v6 = vunpack.c.h.s8.bf16 %v848_v61  ;;  %v2126_v7 = vunpack.c.h.s8.bf16 %v850_v62  ;;  %v914_v62 = vld [vmem:[%s5389_s21 + $0x1358] sm:$0xff] }
 0x196   : > { %2896 = vmatprep.subr.bf16.mxu0 %v1928_v8  ;;  %v870_v8 = vld [vmem:[%s5389_s21 + $0x11f8] sm:$0xff] }
 0x198   : > { %2733 = vmatpush1.bf16.msra.mxu1 %v1925_v11  ;;  %v2125_v11 = vunpack.c.h.s8.bf16 %v849_v3  ;;  %v2234_v3 = vunpack.c.l.s8.bf16 %v914_v62 }
 0x199   : > { %2897 = vmatpush1.bf16.msra.mxu0 %v1927_v12  ;;  %2734 = vmatprep.subr.bf16.mxu1 %v1948_v13  ;;  %v2146_v12 = vunpack.c.l.s8.bf16 %v870_v8  ;;  %v2148_v13 = vunpack.c.l.s8.bf16 %v872_v9 }
 0x19a   : > { %2898 = vmatprep.subr.bf16.mxu0 %v1950_v14  ;;  %v869_v14 = vld [vmem:[%s5389_s21 + $0x11f0] sm:$0xff] }
 0x19b   : > { %v2145_v16 = vunpack.c.l.s8.bf16 %v869_v14 }
 0x19c   : > { %2735 = vmatpush1.bf16.msra.mxu1 %v1947_v17  ;;  %v2147_v17 = vunpack.c.l.s8.bf16 %v871_v15 }
 0x19d   : > { %2899 = vmatpush1.bf16.msra.mxu0 %v1949_v18  ;;  %2736 = vmatprep.subr.bf16.mxu1 %v1970_v19  ;;  %v5648_v18 = vsub.s32 0, %v5413_v26  ;;  %v2168_v19 = vunpack.c.h.s8.bf16 %v870_v8 }
 0x19e   : > { %2900 = vmatprep.subr.bf16.mxu0 %v1972_v20  ;;  %v2170_v20 = vunpack.c.h.s8.bf16 %v872_v9  ;;  %v2256_v9 = vunpack.c.h.s8.bf16 %v914_v62  ;;  %v302_v62 = vld [vmem:[%s5389_s21 + $0x38] sm:$0xff] }
 0x19f   : > { %v4279_v29 = vrot.slane %v4270_v21, %v5648_v18 }
 0x1a0   : > { %2737 = vmatpush1.bf16.msra.mxu1 %v1969_v23  ;;  %v892_v23 = vld [vmem:[%s5389_s21 + $0x12a8] sm:$0xff] }
 0x1a1   : > { %2901 = vmatpush1.bf16.msra.mxu0 %v1971_v24  ;;  %2738 = vmatprep.subr.bf16.mxu1 %v1992_v25  ;;  %v894_v24 = vld [vmem:[%s5389_s21 + $0x12b8] sm:$0xff]  ;;  %v4408_v25 = vld [vmem:[%s5658_s26] sm:$0xff] }
 0x1a2   : > { %2902 = vmatprep.subr.bf16.mxu0 %v1994_v27  ;;  %v2167_v27 = vunpack.c.h.s8.bf16 %v869_v14 }
 0x1a4   : > { %2739 = vmatpush1.bf16.msra.mxu1 %v1991_v30  ;;  %v2190_v30 = vunpack.c.l.s8.bf16 %v892_v23 }
 0x1a5   : > { %2903 = vmatpush1.bf16.msra.mxu0 %v1993_v31  ;;  %2740 = vmatprep.subr.bf16.mxu1 %v2014_v32  ;;  %v2192_v31 = vunpack.c.l.s8.bf16 %v894_v24  ;;  %v891_v32 = vld [vmem:[%s5389_s21 + $0x12a0] sm:$0xff] }
 0x1a6   : > { %2904 = vmatprep.subr.bf16.mxu0 %v2016_v33  ;;  %v893_v33 = vld [vmem:[%s5389_s21 + $0x12b0] sm:$0xff] }
 0x1a7   : > { %v2191_v51 = vunpack.c.l.s8.bf16 %v893_v33  ;;  %v2213_v2 = vunpack.c.h.s8.bf16 %v893_v33 }
 0x1a8   : > { %2741 = vmatpush1.bf16.msra.mxu1 %v2013_v39  ;;  %v4283_v39 = vrot.slane %v4270_v21, %v5652_v22 }
 0x1a9   : > { %2905 = vmatpush1.bf16.msra.mxu0 %v2015_v40  ;;  %2742 = vmatprep.subr.bf16.mxu1 %v2036_v42  ;;  %v4417_v42 = vrot.slane %v4408_v25, %v5648_v18 }
 0x1aa   : > { %2906 = vmatprep.subr.bf16.mxu0 %v2038_v43 }
 0x1ac   : > { %2743 = vmatpush1.bf16.msra.mxu1 %v2035_v47  ;;  %v4421_v47 = vrot.slane %v4408_v25, %v5652_v22 }
 0x1ad   : > { %2907 = vmatpush1.bf16.msra.mxu0 %v2037_v48  ;;  %2753 = vmatprep.subr.bf16.mxu1 %v2058_v49 }
 0x1ae   : > { %2917 = vmatprep.subr.bf16.mxu0 %v2060_v50  ;;  %v2189_v50 = vunpack.c.l.s8.bf16 %v891_v32 }
 0x1af   : > { %2745 = vmatmul.mubr.bf16.vlgmr.msra.gmra.mrb[4].mxu1 %v5473_v59 }
 0x1b0   : > { %2909 = vmatmul.mubr.bf16.vlgmr.msra.gmra.mrb[4].mxu0 %v5473_v59  ;;  %2754 = vmatpush1.bf16.msra.mxu1 %v2057_v54 }
 0x1b1   : > { %2918 = vmatpush1.bf16.msra.mxu0 %v2059_v56  ;;  %2755 = vmatprep.subr.bf16.mxu1 %v2080_v57  ;;  %v2212_v57 = vunpack.c.h.s8.bf16 %v892_v23 }
 0x1b2   : > { %2919 = vmatprep.subr.bf16.mxu0 %v2082_v60  ;;  %2785 = vmatprep.mubr.bf16.mxu1 %v5483_v35  ;;  %v2214_v60 = vunpack.c.h.s8.bf16 %v894_v24 }
 0x1b3   : > { %2949 = vmatprep.mubr.bf16.mxu0 %v5483_v35 }
 0x1b4   : > { %2756 = vmatpush1.bf16.msra.mxu1 %v2079_v63  ;;  %v916_v63 = vld [vmem:[%s5389_s21 + $0x1368] sm:$0xff] }
 0x1b5   : > { %2920 = vmatpush1.bf16.msra.mxu0 %v2081_v0  ;;  %2757 = vmatprep.subr.bf16.mxu1 %v2102_v1 }
 0x1b6   : > { %2921 = vmatprep.subr.bf16.mxu0 %v2104_v46  ;;  %v2211_v46 = vunpack.c.h.s8.bf16 %v891_v32 }
 0x1b8   : > { %2758 = vmatpush1.bf16.msra.mxu1 %v2101_v4  ;;  %v2236_v4 = vunpack.c.l.s8.bf16 %v916_v63 }
 0x1b9   : > { %2922 = vmatpush1.bf16.msra.mxu0 %v2103_v5  ;;  %2759 = vmatprep.subr.bf16.mxu1 %v2124_v6  ;;  %v913_v5 = vld [vmem:[%s5389_s21 + $0x1350] sm:$0xff]  ;;  %v915_v6 = vld [vmem:[%s5389_s21 + $0x1360] sm:$0xff] }
 0x1ba   : > { %2923 = vmatprep.subr.bf16.mxu0 %v2126_v7  ;;  %v2233_v7 = vunpack.c.l.s8.bf16 %v913_v5  ;;  %v2235_v8 = vunpack.c.l.s8.bf16 %v915_v6  ;;  %v2257_v14 = vunpack.c.h.s8.bf16 %v915_v6 }
 0x1bc   : > { %2760 = vmatpush1.bf16.msra.mxu1 %v2123_v10  ;;  %v2258_v10 = vunpack.c.h.s8.bf16 %v916_v63  ;;  %v304_v63 = vld [vmem:[%s5389_s21 + $0x48] sm:$0xff] }
 0x1bd   : > { %2924 = vmatpush1.bf16.msra.mxu0 %v2125_v11  ;;  %2761 = vmatprep.subr.bf16.mxu1 %v2146_v12  ;;  %v936_v11 = vld [vmem:[%s5389_s21 + $0x1408] sm:$0xff]  ;;  %v938_v12 = vld [vmem:[%s5389_s21 + $0x1418] sm:$0xff] }
 0x1be   : > { %2925 = vmatprep.subr.bf16.mxu0 %v2148_v13  ;;  %v2255_v13 = vunpack.c.h.s8.bf16 %v913_v5  ;;  %v2278_v15 = vunpack.c.l.s8.bf16 %v936_v11 }
 0x1c0   : > { %2762 = vmatpush1.bf16.msra.mxu1 %v2145_v16  ;;  %v2280_v16 = vunpack.c.l.s8.bf16 %v938_v12 }
 0x1c1   : > { %2926 = vmatpush1.bf16.msra.mxu0 %v2147_v17  ;;  %2763 = vmatprep.subr.bf16.mxu1 %v2168_v19  ;;  %v935_v17 = vld [vmem:[%s5389_s21 + $0x1400] sm:$0xff]  ;;  %v937_v19 = vld [vmem:[%s5389_s21 + $0x1410] sm:$0xff] }
 0x1c2   : > { %2927 = vmatprep.subr.bf16.mxu0 %v2170_v20  ;;  %v2541_v34 = vpop.f32.mrb[0].mxu1  ;;  %v2277_v23 = vunpack.c.l.s8.bf16 %v935_v17  ;;  %v2279_v24 = vunpack.c.l.s8.bf16 %v937_v19  ;;  %v2301_v32 = vunpack.c.h.s8.bf16 %v937_v19 }
 0x1c3   : > { %v2623_v38 = vpop.f32.mrb[0].mxu0  ;;  %v2543_v43 = vpop.f32.mrb[1].mxu1 }
 0x1c4   : > { %v4820_v40 = vadd.f32 %v2623_v38, %v2541_v34  ;;  %v2625_v44 = vpop.f32.mrb[1].mxu0  ;;  %v2545_v48 = vpop.f32.mrb[2].mxu1  ;;  %2764 = vmatpush1.bf16.msra.mxu1 %v2167_v27  ;;  %v2300_v27 = vunpack.c.h.s8.bf16 %v936_v11  ;;  %v957_v38 = vld [vmem:[%s5389_s21 + $0x14b0] sm:$0xff] }
 0x1c5   : > { %v4821_v45 = vadd.f32 %v2625_v44, %v2543_v43  ;;  %v2627_v49 = vpop.f32.mrb[2].mxu0  ;;  %2928 = vmatpush1.bf16.msra.mxu0 %v2169_v28  ;;  %v2546_v54 = vpop.f32.mrb[3].mxu1  ;;  %2765 = vmatprep.subr.bf16.mxu1 %v2190_v30  ;;  %v2302_v28 = vunpack.c.h.s8.bf16 %v938_v12  ;;  %v960_v30 = vld [vmem:[%s5389_s21 + $0x14c8] sm:$0xff]  ;;  %v2343_v48 = vunpack.c.h.s8.bf16 %v957_v38 }
 0x1c6   : > { %v4386_v52 = vmul.f32 %v4820_v40, %v4279_v29  ;;  %v2628_v56 = vpop.f32.mrb[3].mxu0  ;;  %2929 = vmatprep.subr.bf16.mxu0 %v2192_v31  ;;  %v958_v29 = vld [vmem:[%s5389_s21 + $0x14b8] sm:$0xff]  ;;  %v2299_v31 = vunpack.c.h.s8.bf16 %v935_v17  ;;  %v2324_v34 = vunpack.c.l.s8.bf16 %v960_v30  ;;  %v2321_v40 = vunpack.c.l.s8.bf16 %v957_v38  ;;  %v981_v54 = vld [vmem:[%s5389_s21 + $0x1570] sm:$0xff] }
 0x1c7   : > { %v4387_v61 = vmul.f32 %v4821_v45, %v4283_v39  ;;  %v2322_v33 = vunpack.c.l.s8.bf16 %v958_v29  ;;  %v959_v39 = vld [vmem:[%s5389_s21 + $0x14c0] sm:$0xff]  ;;  %v2344_v43 = vunpack.c.h.s8.bf16 %v958_v29  ;;  %v2346_v44 = vunpack.c.h.s8.bf16 %v960_v30  ;;  %v980_v45 = vld [vmem:[%s5389_s21 + $0x1568] sm:$0xff] }
 0x1c8   : > { %v4524_v0 = vadd.f32 %v4417_v42, %v4386_v52  ;;  %2766 = vmatpush1.bf16.msra.mxu1 %v2189_v50  ;;  %v2323_v42 = vunpack.c.l.s8.bf16 %v959_v39  ;;  %v2345_v49 = vunpack.c.h.s8.bf16 %v959_v39  ;;  %v2366_v50 = vunpack.c.l.s8.bf16 %v980_v45  ;;  %v979_v52 = vld [vmem:[%s5389_s21 + $0x1560] sm:$0xff] }
 0x1c9   : > { %v4525_v1 = vadd.f32 %v4421_v47, %v4387_v61  ;;  %2930 = vmatpush1.bf16.msra.mxu0 %v2191_v51  ;;  %2767 = vmatprep.subr.bf16.mxu1 %v2212_v57  ;;  %v982_v47 = vld [vmem:[%s5389_s21 + $0x1578] sm:$0xff]  ;;  %v2365_v56 = vunpack.c.l.s8.bf16 %v979_v52  ;;  %v2367_v57 = vunpack.c.l.s8.bf16 %v981_v54 }
 0x1ca   : > { %5010 = vtanh.f32 %v4524_v0  ;;  %2931 = vmatprep.subr.bf16.mxu0 %v2214_v60  ;;  %v2368_v51 = vunpack.c.l.s8.bf16 %v982_v47  ;;  %v2388_v60 = vunpack.c.h.s8.bf16 %v980_v45  ;;  %v2390_v61 = vunpack.c.h.s8.bf16 %v982_v47 }
 0x1cb   : > { %5012 = vtanh.f32 %v4525_v1  ;;  %v2387_v0 = vunpack.c.h.s8.bf16 %v979_v52  ;;  %v2389_v1 = vunpack.c.h.s8.bf16 %v981_v54 }
 0x1cc   : > { %2768 = vmatpush1.bf16.msra.mxu1 %v2211_v46  ;;  %v1006_v46 = vunpack.c.l.s8.bf16 %v302_v62 }
 0x1cd   : > { %2932 = vmatpush1.bf16.msra.mxu0 %v2213_v2  ;;  %2769 = vmatprep.subr.bf16.mxu1 %v2234_v3  ;;  %v1008_v2 = vunpack.c.l.s8.bf16 %v304_v63  ;;  %v301_v3 = vld [vmem:[%s5389_s21 + $0x30] sm:$0xff] }
 0x1ce   : > { %2933 = vmatprep.subr.bf16.mxu0 %v2236_v4  ;;  %v303_v4 = vld [vmem:[%s5389_s21 + $0x40] sm:$0xff]  ;;  %v1005_v5 = vunpack.c.l.s8.bf16 %v301_v3  ;;  %v1027_v11 = vunpack.c.h.s8.bf16 %v301_v3 }
 0x1cf   : > { %v1007_v6 = vunpack.c.l.s8.bf16 %v303_v4  ;;  %v1029_v12 = vunpack.c.h.s8.bf16 %v303_v4 }
 0x1d0   : > { %2770 = vmatpush1.bf16.msra.mxu1 %v2233_v7  ;;  %v1028_v7 = vunpack.c.h.s8.bf16 %v302_v62 }
 0x1d1   : > { %2934 = vmatpush1.bf16.msra.mxu0 %v2235_v8  ;;  %2771 = vmatprep.subr.bf16.mxu1 %v2256_v9  ;;  %v1030_v8 = vunpack.c.h.s8.bf16 %v304_v63  ;;  %v324_v9 = vld [vmem:[%s5389_s21 + $0xe8] sm:$0xff] }
 0x1d2   : > { %2935 = vmatprep.subr.bf16.mxu0 %v2258_v10  ;;  %v326_v10 = vld [vmem:[%s5389_s21 + $0xf8] sm:$0xff] }
 0x1d4   : > { %v5675_v20 = vpop.eup %5010  ;;  %2772 = vmatpush1.bf16.msra.mxu1 %v2255_v13  ;;  %v1050_v13 = vunpack.c.l.s8.bf16 %v324_v9 }
 0x1d5   : > { %v5677_v21 = vpop.eup %5012  ;;  %2936 = vmatpush1.bf16.msra.mxu0 %v2257_v14  ;;  %2773 = vmatprep.subr.bf16.mxu1 %v2278_v15  ;;  %v1052_v14 = vunpack.c.l.s8.bf16 %v326_v10  ;;  %v323_v15 = vld [vmem:[%s5389_s21 + $0xe0] sm:$0xff] }
 0x1d6   : > { %v4590_v25 = vcombine.low %v5675_v20, %v5677_v21  ;;  %2937 = vmatprep.subr.bf16.mxu0 %v2280_v16  ;;  %v325_v16 = vld [vmem:[%s5389_s21 + $0xf0] sm:$0xff]  ;;  %v1049_v17 = vunpack.c.l.s8.bf16 %v323_v15  ;;  %v1071_v29 = vunpack.c.h.s8.bf16 %v323_v15 }
 0x1d7   : > { %v1051_v19 = vunpack.c.l.s8.bf16 %v325_v16  ;;  %v1073_v30 = vunpack.c.h.s8.bf16 %v325_v16 }
 0x1d8   : > { %2774 = vmatpush1.bf16.msra.mxu1 %v2277_v23  ;;  %v1072_v23 = vunpack.c.h.s8.bf16 %v324_v9 }
 0x1d9   : > { %2938 = vmatpush1.bf16.msra.mxu0 %v2279_v24  ;;  %2775 = vmatprep.subr.bf16.mxu1 %v2300_v27  ;;  %v1074_v24 = vunpack.c.h.s8.bf16 %v326_v10  ;;  %v346_v27 = vld [vmem:[%s5389_s21 + $0x198] sm:$0xff] }
 0x1da   : > { %2939 = vmatprep.subr.bf16.mxu0 %v2302_v28  ;;  %v348_v28 = vld [vmem:[%s5389_s21 + $0x1a8] sm:$0xff] }
 0x1dc   : > { %2776 = vmatpush1.bf16.msra.mxu1 %v2299_v31  ;;  %v1094_v31 = vunpack.c.l.s8.bf16 %v346_v27 }
 0x1dd   : > { %2940 = vmatpush1.bf16.msra.mxu0 %v2301_v32  ;;  %2777 = vmatprep.subr.bf16.mxu1 %v2322_v33  ;;  %v1096_v32 = vunpack.c.l.s8.bf16 %v348_v28  ;;  %v345_v33 = vld [vmem:[%s5389_s21 + $0x190] sm:$0xff] }
 0x1de   : > { %2941 = vmatprep.subr.bf16.mxu0 %v2324_v34  ;;  %v347_v34 = vld [vmem:[%s5389_s21 + $0x1a0] sm:$0xff]  ;;  %v1093_v38 = vunpack.c.l.s8.bf16 %v345_v33  ;;  %v1115_v45 = vunpack.c.h.s8.bf16 %v345_v33 }
 0x1df   : > { %v1095_v39 = vunpack.c.l.s8.bf16 %v347_v34  ;;  %v1117_v47 = vunpack.c.h.s8.bf16 %v347_v34 }
 0x1e0   : > { %2778 = vmatpush1.bf16.msra.mxu1 %v2321_v40  ;;  %v1116_v40 = vunpack.c.h.s8.bf16 %v346_v27 }
 0x1e1   : > { %2942 = vmatpush1.bf16.msra.mxu0 %v2323_v42  ;;  %2779 = vmatprep.subr.bf16.mxu1 %v2344_v43  ;;  %v1118_v42 = vunpack.c.h.s8.bf16 %v348_v28  ;;  %v368_v43 = vld [vmem:[%s5389_s21 + $0x248] sm:$0xff] }
 0x1e2   : > { %2943 = vmatprep.subr.bf16.mxu0 %v2346_v44  ;;  %v370_v44 = vld [vmem:[%s5389_s21 + $0x258] sm:$0xff] }
 0x1e4   : > { %2780 = vmatpush1.bf16.msra.mxu1 %v2343_v48  ;;  %v1138_v48 = vunpack.c.l.s8.bf16 %v368_v43 }
 0x1e5   : > { %2944 = vmatpush1.bf16.msra.mxu0 %v2345_v49  ;;  %2781 = vmatprep.subr.bf16.mxu1 %v2366_v50  ;;  %v1140_v49 = vunpack.c.l.s8.bf16 %v370_v44  ;;  %v367_v50 = vld [vmem:[%s5389_s21 + $0x240] sm:$0xff] }
 0x1e6   : > { %2945 = vmatprep.subr.bf16.mxu0 %v2368_v51  ;;  %v369_v51 = vld [vmem:[%s5389_s21 + $0x250] sm:$0xff]  ;;  %v1137_v52 = vunpack.c.l.s8.bf16 %v367_v50  ;;  %v1159_v62 = vunpack.c.h.s8.bf16 %v367_v50 }
 0x1e7   : > { %v1139_v54 = vunpack.c.l.s8.bf16 %v369_v51  ;;  %v1161_v63 = vunpack.c.h.s8.bf16 %v369_v51 }
 0x1e8   : > { %2782 = vmatpush1.bf16.msra.mxu1 %v2365_v56  ;;  %v1160_v56 = vunpack.c.h.s8.bf16 %v368_v43 }
 0x1e9   : > { %2946 = vmatpush1.bf16.msra.mxu0 %v2367_v57  ;;  %2783 = vmatprep.subr.bf16.mxu1 %v2388_v60  ;;  %v1162_v57 = vunpack.c.h.s8.bf16 %v370_v44  ;;  %v390_v60 = vld [vmem:[%s5389_s21 + $0x2f8] sm:$0xff] }
 0x1ea   : > { %2947 = vmatprep.subr.bf16.mxu0 %v2390_v61  ;;  %v392_v61 = vld [vmem:[%s5389_s21 + $0x308] sm:$0xff] }
 0x1ec   : > { %2784 = vmatpush1.bf16.msra.mxu1 %v2387_v0  ;;  %v1182_v0 = vunpack.c.l.s8.bf16 %v390_v60 }
 0x1ed   : > { %2948 = vmatpush1.bf16.msra.mxu0 %v2389_v1  ;;  %2958 = vmatprep.subr.bf16.mxu1 %v1006_v46  ;;  %v1184_v1 = vunpack.c.l.s8.bf16 %v392_v61  ;;  %v389_v46 = vld [vmem:[%s5389_s21 + $0x2f0] sm:$0xff] }
 0x1ee   : > { %3122 = vmatprep.subr.bf16.mxu0 %v1008_v2  ;;  %v391_v2 = vld [vmem:[%s5389_s21 + $0x300] sm:$0xff]  ;;  %v1181_v3 = vunpack.c.l.s8.bf16 %v389_v46  ;;  %v1203_v9 = vunpack.c.h.s8.bf16 %v389_v46 }
 0x1ef   : > { %2786 = vmatmul.mubr.bf16.vlgmr.msra.gmra.mrb[4].mxu1 %v5525_v37  ;;  %v1183_v4 = vunpack.c.l.s8.bf16 %v391_v2  ;;  %v1205_v10 = vunpack.c.h.s8.bf16 %v391_v2 }
 0x1f0   : > { %2950 = vmatmul.mubr.bf16.vlgmr.msra.gmra.mrb[4].mxu0 %v5525_v37  ;;  %2959 = vmatpush1.bf16.msra.mxu1 %v1005_v5  ;;  %v1204_v5 = vunpack.c.h.s8.bf16 %v390_v60 }
 0x1f1   : > { %3123 = vmatpush1.bf16.msra.mxu0 %v1007_v6  ;;  %2960 = vmatprep.subr.bf16.mxu1 %v1028_v7  ;;  %v1206_v6 = vunpack.c.h.s8.bf16 %v392_v61  ;;  %v412_v7 = vld [vmem:[%s5389_s21 + $0x3a8] sm:$0xff] }
 0x1f2   : > { %3124 = vmatprep.subr.bf16.mxu0 %v1030_v8  ;;  %2990 = vmatprep.mubr.bf16.mxu1 %v5438_v53  ;;  %v414_v8 = vld [vmem:[%s5389_s21 + $0x3b8] sm:$0xff] }
 0x1f3   : > { %3154 = vmatprep.mubr.bf16.mxu0 %v5438_v53 }
 0x1f4   : > { %2961 = vmatpush1.bf16.msra.mxu1 %v1027_v11  ;;  %v1226_v11 = vunpack.c.l.s8.bf16 %v412_v7 }
 0x1f5   : > { %3125 = vmatpush1.bf16.msra.mxu0 %v1029_v12  ;;  %2962 = vmatprep.subr.bf16.mxu1 %v1050_v13  ;;  %v1228_v12 = vunpack.c.l.s8.bf16 %v414_v8  ;;  %v411_v13 = vld [vmem:[%s5389_s21 + $0x3a0] sm:$0xff] }
 0x1f6   : > { %3126 = vmatprep.subr.bf16.mxu0 %v1052_v14  ;;  %v413_v14 = vld [vmem:[%s5389_s21 + $0x3b0] sm:$0xff]  ;;  %v1225_v15 = vunpack.c.l.s8.bf16 %v411_v13  ;;  %v1247_v27 = vunpack.c.h.s8.bf16 %v411_v13 }
 0x1f7   : > { %v1227_v16 = vunpack.c.l.s8.bf16 %v413_v14  ;;  %v1249_v28 = vunpack.c.h.s8.bf16 %v413_v14 }
 0x1f8   : > { %2963 = vmatpush1.bf16.msra.mxu1 %v1049_v17  ;;  %v1248_v17 = vunpack.c.h.s8.bf16 %v412_v7 }
 0x1f9   : > { %3127 = vmatpush1.bf16.msra.mxu0 %v1051_v19  ;;  %2964 = vmatprep.subr.bf16.mxu1 %v1072_v23  ;;  %v1250_v19 = vunpack.c.h.s8.bf16 %v414_v8  ;;  %v434_v23 = vld [vmem:[%s5389_s21 + $0x458] sm:$0xff] }
 0x1fa   : > { %3128 = vmatprep.subr.bf16.mxu0 %v1074_v24  ;;  %v436_v24 = vld [vmem:[%s5389_s21 + $0x468] sm:$0xff] }
 0x1fc   : > { %2965 = vmatpush1.bf16.msra.mxu1 %v1071_v29  ;;  %v1270_v29 = vunpack.c.l.s8.bf16 %v434_v23 }
 0x1fd   : > { %3129 = vmatpush1.bf16.msra.mxu0 %v1073_v30  ;;  %2966 = vmatprep.subr.bf16.mxu1 %v1094_v31  ;;  %v1272_v30 = vunpack.c.l.s8.bf16 %v436_v24  ;;  %v433_v31 = vld [vmem:[%s5389_s21 + $0x450] sm:$0xff] }
 0x1fe   : > { %3130 = vmatprep.subr.bf16.mxu0 %v1096_v32  ;;  %v435_v32 = vld [vmem:[%s5389_s21 + $0x460] sm:$0xff]  ;;  %v1269_v33 = vunpack.c.l.s8.bf16 %v433_v31  ;;  %v1291_v43 = vunpack.c.h.s8.bf16 %v433_v31 }
 0x1ff   : > { %v1271_v34 = vunpack.c.l.s8.bf16 %v435_v32  ;;  %v1293_v44 = vunpack.c.h.s8.bf16 %v435_v32 }
 0x200   : > { %2967 = vmatpush1.bf16.msra.mxu1 %v1093_v38  ;;  %v1292_v38 = vunpack.c.h.s8.bf16 %v434_v23 }
 0x201   : > { %3131 = vmatpush1.bf16.msra.mxu0 %v1095_v39  ;;  %2968 = vmatprep.subr.bf16.mxu1 %v1116_v40  ;;  %v1294_v39 = vunpack.c.h.s8.bf16 %v436_v24  ;;  %v456_v40 = vld [vmem:[%s5389_s21 + $0x508] sm:$0xff] }
 0x202   : > { %3132 = vmatprep.subr.bf16.mxu0 %v1118_v42  ;;  %v458_v42 = vld [vmem:[%s5389_s21 + $0x518] sm:$0xff] }
 0x204   : > { %2969 = vmatpush1.bf16.msra.mxu1 %v1115_v45  ;;  %v1314_v45 = vunpack.c.l.s8.bf16 %v456_v40 }
 0x205   : > { %3133 = vmatpush1.bf16.msra.mxu0 %v1117_v47  ;;  %2970 = vmatprep.subr.bf16.mxu1 %v1138_v48  ;;  %v1316_v47 = vunpack.c.l.s8.bf16 %v458_v42  ;;  %v455_v48 = vld [vmem:[%s5389_s21 + $0x500] sm:$0xff] }
 0x206   : > { %3134 = vmatprep.subr.bf16.mxu0 %v1140_v49  ;;  %v457_v49 = vld [vmem:[%s5389_s21 + $0x510] sm:$0xff]  ;;  %v1313_v50 = vunpack.c.l.s8.bf16 %v455_v48  ;;  %v1335_v60 = vunpack.c.h.s8.bf16 %v455_v48 }
 0x207   : > { %v1315_v51 = vunpack.c.l.s8.bf16 %v457_v49  ;;  %v1337_v61 = vunpack.c.h.s8.bf16 %v457_v49 }
 0x208   : > { %2971 = vmatpush1.bf16.msra.mxu1 %v1137_v52  ;;  %v1336_v52 = vunpack.c.h.s8.bf16 %v456_v40 }
 0x209   : > { %3135 = vmatpush1.bf16.msra.mxu0 %v1139_v54  ;;  %2972 = vmatprep.subr.bf16.mxu1 %v1160_v56  ;;  %v1338_v54 = vunpack.c.h.s8.bf16 %v458_v42  ;;  %v478_v56 = vld [vmem:[%s5389_s21 + $0x5b8] sm:$0xff] }
 0x20a   : > { %3136 = vmatprep.subr.bf16.mxu0 %v1162_v57  ;;  %v480_v57 = vld [vmem:[%s5389_s21 + $0x5c8] sm:$0xff] }
 0x20c   : > { %2973 = vmatpush1.bf16.msra.mxu1 %v1159_v62  ;;  %v1358_v62 = vunpack.c.l.s8.bf16 %v478_v56 }
 0x20d   : > { %3137 = vmatpush1.bf16.msra.mxu0 %v1161_v63  ;;  %2974 = vmatprep.subr.bf16.mxu1 %v1182_v0  ;;  %v1360_v63 = vunpack.c.l.s8.bf16 %v480_v57  ;;  %v477_v0 = vld [vmem:[%s5389_s21 + $0x5b0] sm:$0xff] }
 0x20e   : > { %3138 = vmatprep.subr.bf16.mxu0 %v1184_v1  ;;  %v479_v1 = vld [vmem:[%s5389_s21 + $0x5c0] sm:$0xff]  ;;  %v1357_v46 = vunpack.c.l.s8.bf16 %v477_v0  ;;  %v1379_v7 = vunpack.c.h.s8.bf16 %v477_v0 }
 0x20f   : > { %v1359_v2 = vunpack.c.l.s8.bf16 %v479_v1  ;;  %v1381_v8 = vunpack.c.h.s8.bf16 %v479_v1 }
 0x210   : > { %2975 = vmatpush1.bf16.msra.mxu1 %v1181_v3  ;;  %v1380_v3 = vunpack.c.h.s8.bf16 %v478_v56 }
 0x211   : > { %3139 = vmatpush1.bf16.msra.mxu0 %v1183_v4  ;;  %2976 = vmatprep.subr.bf16.mxu1 %v1204_v5  ;;  %v1382_v4 = vunpack.c.h.s8.bf16 %v480_v57  ;;  %v500_v5 = vld [vmem:[%s5389_s21 + $0x668] sm:$0xff] }
 0x212   : > { %3140 = vmatprep.subr.bf16.mxu0 %v1206_v6  ;;  %v502_v6 = vld [vmem:[%s5389_s21 + $0x678] sm:$0xff] }
 0x214   : > { %2977 = vmatpush1.bf16.msra.mxu1 %v1203_v9  ;;  %v1402_v9 = vunpack.c.l.s8.bf16 %v500_v5 }
 0x215   : > { %3141 = vmatpush1.bf16.msra.mxu0 %v1205_v10  ;;  %2978 = vmatprep.subr.bf16.mxu1 %v1226_v11  ;;  %v1404_v10 = vunpack.c.l.s8.bf16 %v502_v6  ;;  %v499_v11 = vld [vmem:[%s5389_s21 + $0x660] sm:$0xff] }
 0x216   : > { %3142 = vmatprep.subr.bf16.mxu0 %v1228_v12  ;;  %v501_v12 = vld [vmem:[%s5389_s21 + $0x670] sm:$0xff]  ;;  %v1401_v13 = vunpack.c.l.s8.bf16 %v499_v11  ;;  %v1423_v23 = vunpack.c.h.s8.bf16 %v499_v11 }
 0x217   : > { %v1403_v14 = vunpack.c.l.s8.bf16 %v501_v12  ;;  %v1425_v24 = vunpack.c.h.s8.bf16 %v501_v12 }
 0x218   : > { %2979 = vmatpush1.bf16.msra.mxu1 %v1225_v15  ;;  %v1424_v15 = vunpack.c.h.s8.bf16 %v500_v5 }
 0x219   : > { %3143 = vmatpush1.bf16.msra.mxu0 %v1227_v16  ;;  %2980 = vmatprep.subr.bf16.mxu1 %v1248_v17  ;;  %v1426_v16 = vunpack.c.h.s8.bf16 %v502_v6  ;;  %v522_v17 = vld [vmem:[%s5389_s21 + $0x718] sm:$0xff] }
 0x21a   : > { %3144 = vmatprep.subr.bf16.mxu0 %v1250_v19  ;;  %v524_v19 = vld [vmem:[%s5389_s21 + $0x728] sm:$0xff] }
 0x21c   : > { %2981 = vmatpush1.bf16.msra.mxu1 %v1247_v27  ;;  %v1446_v27 = vunpack.c.l.s8.bf16 %v522_v17 }
 0x21d   : > { %3145 = vmatpush1.bf16.msra.mxu0 %v1249_v28  ;;  %2982 = vmatprep.subr.bf16.mxu1 %v1270_v29  ;;  %v1448_v28 = vunpack.c.l.s8.bf16 %v524_v19  ;;  %v521_v29 = vld [vmem:[%s5389_s21 + $0x710] sm:$0xff] }
 0x21e   : > { %3146 = vmatprep.subr.bf16.mxu0 %v1272_v30  ;;  %v523_v30 = vld [vmem:[%s5389_s21 + $0x720] sm:$0xff]  ;;  %v1445_v31 = vunpack.c.l.s8.bf16 %v521_v29  ;;  %v1467_v40 = vunpack.c.h.s8.bf16 %v521_v29 }
 0x21f   : > { %v1447_v32 = vunpack.c.l.s8.bf16 %v523_v30  ;;  %v1469_v42 = vunpack.c.h.s8.bf16 %v523_v30 }
 0x220   : > { %2983 = vmatpush1.bf16.msra.mxu1 %v1269_v33  ;;  %v1468_v33 = vunpack.c.h.s8.bf16 %v522_v17 }
 0x221   : > { %3147 = vmatpush1.bf16.msra.mxu0 %v1271_v34  ;;  %2984 = vmatprep.subr.bf16.mxu1 %v1292_v38  ;;  %v1470_v34 = vunpack.c.h.s8.bf16 %v524_v19  ;;  %v544_v38 = vld [vmem:[%s5389_s21 + $0x7c8] sm:$0xff] }
 0x222   : > { %3148 = vmatprep.subr.bf16.mxu0 %v1294_v39  ;;  %v546_v39 = vld [vmem:[%s5389_s21 + $0x7d8] sm:$0xff] }
 0x224   : > { %2985 = vmatpush1.bf16.msra.mxu1 %v1291_v43  ;;  %v1490_v43 = vunpack.c.l.s8.bf16 %v544_v38 }
 0x225   : > { %3149 = vmatpush1.bf16.msra.mxu0 %v1293_v44  ;;  %2986 = vmatprep.subr.bf16.mxu1 %v1314_v45  ;;  %v1492_v44 = vunpack.c.l.s8.bf16 %v546_v39  ;;  %v543_v45 = vld [vmem:[%s5389_s21 + $0x7c0] sm:$0xff] }
 0x226   : > { %3150 = vmatprep.subr.bf16.mxu0 %v1316_v47  ;;  %v545_v47 = vld [vmem:[%s5389_s21 + $0x7d0] sm:$0xff]  ;;  %v1489_v48 = vunpack.c.l.s8.bf16 %v543_v45  ;;  %v1511_v56 = vunpack.c.h.s8.bf16 %v543_v45 }
 0x227   : > { %v1491_v49 = vunpack.c.l.s8.bf16 %v545_v47  ;;  %v1513_v57 = vunpack.c.h.s8.bf16 %v545_v47 }
 0x228   : > { %2987 = vmatpush1.bf16.msra.mxu1 %v1313_v50  ;;  %v1512_v50 = vunpack.c.h.s8.bf16 %v544_v38 }
 0x229   : > { %3151 = vmatpush1.bf16.msra.mxu0 %v1315_v51  ;;  %2988 = vmatprep.subr.bf16.mxu1 %v1336_v52  ;;  %v1514_v51 = vunpack.c.h.s8.bf16 %v546_v39  ;;  %v566_v52 = vld [vmem:[%s5389_s21 + $0x878] sm:$0xff] }
 0x22a   : > { %3152 = vmatprep.subr.bf16.mxu0 %v1338_v54  ;;  %v568_v54 = vld [vmem:[%s5389_s21 + $0x888] sm:$0xff] }
 0x22c   : > { %2989 = vmatpush1.bf16.msra.mxu1 %v1335_v60  ;;  %v1534_v60 = vunpack.c.l.s8.bf16 %v566_v52 }
 0x22d   : > { %3153 = vmatpush1.bf16.msra.mxu0 %v1337_v61  ;;  %2999 = vmatprep.subr.bf16.mxu1 %v1358_v62  ;;  %v1536_v61 = vunpack.c.l.s8.bf16 %v568_v54  ;;  %v565_v62 = vld [vmem:[%s5389_s21 + $0x870] sm:$0xff] }
 0x22e   : > { %3163 = vmatprep.subr.bf16.mxu0 %v1360_v63  ;;  %v567_v63 = vld [vmem:[%s5389_s21 + $0x880] sm:$0xff]  ;;  %v1533_v0 = vunpack.c.l.s8.bf16 %v565_v62  ;;  %v1555_v5 = vunpack.c.h.s8.bf16 %v565_v62 }
 0x22f   : > { %2991 = vmatmul.mubr.bf16.vlgmr.msra.gmra.mrb[8].mxu1 %v5469_v58  ;;  %v1535_v1 = vunpack.c.l.s8.bf16 %v567_v63  ;;  %v1557_v6 = vunpack.c.h.s8.bf16 %v567_v63 }
 0x230   : > { %3155 = vmatmul.mubr.bf16.vlgmr.msra.gmra.mrb[8].mxu0 %v5469_v58  ;;  %3000 = vmatpush1.bf16.msra.mxu1 %v1357_v46  ;;  %v1556_v46 = vunpack.c.h.s8.bf16 %v566_v52 }
 0x231   : > { %3164 = vmatpush1.bf16.msra.mxu0 %v1359_v2  ;;  %3001 = vmatprep.subr.bf16.mxu1 %v1380_v3  ;;  %v1558_v2 = vunpack.c.h.s8.bf16 %v568_v54  ;;  %v588_v3 = vld [vmem:[%s5389_s21 + $0x928] sm:$0xff] }
 0x232   : > { %3165 = vmatprep.subr.bf16.mxu0 %v1382_v4  ;;  %3031 = vmatprep.mubr.bf16.mxu1 %v5479_v41  ;;  %v590_v4 = vld [vmem:[%s5389_s21 + $0x938] sm:$0xff] }
 0x233   : > { %3195 = vmatprep.mubr.bf16.mxu0 %v5479_v41 }
 0x234   : > { %3002 = vmatpush1.bf16.msra.mxu1 %v1379_v7  ;;  %v1578_v7 = vunpack.c.l.s8.bf16 %v588_v3 }
 0x235   : > { %3166 = vmatpush1.bf16.msra.mxu0 %v1381_v8  ;;  %3003 = vmatprep.subr.bf16.mxu1 %v1402_v9  ;;  %v1580_v8 = vunpack.c.l.s8.bf16 %v590_v4  ;;  %v587_v9 = vld [vmem:[%s5389_s21 + $0x920] sm:$0xff] }
 0x236   : > { %3167 = vmatprep.subr.bf16.mxu0 %v1404_v10  ;;  %v589_v10 = vld [vmem:[%s5389_s21 + $0x930] sm:$0xff]  ;;  %v1577_v11 = vunpack.c.l.s8.bf16 %v587_v9  ;;  %v1599_v17 = vunpack.c.h.s8.bf16 %v587_v9 }
 0x237   : > { %v1579_v12 = vunpack.c.l.s8.bf16 %v589_v10  ;;  %v1601_v19 = vunpack.c.h.s8.bf16 %v589_v10 }
 0x238   : > { %3004 = vmatpush1.bf16.msra.mxu1 %v1401_v13  ;;  %v1600_v13 = vunpack.c.h.s8.bf16 %v588_v3 }
 0x239   : > { %3168 = vmatpush1.bf16.msra.mxu0 %v1403_v14  ;;  %3005 = vmatprep.subr.bf16.mxu1 %v1424_v15  ;;  %v1602_v14 = vunpack.c.h.s8.bf16 %v590_v4  ;;  %v610_v15 = vld [vmem:[%s5389_s21 + $0x9d8] sm:$0xff] }
 0x23a   : > { %3169 = vmatprep.subr.bf16.mxu0 %v1426_v16  ;;  %v612_v16 = vld [vmem:[%s5389_s21 + $0x9e8] sm:$0xff] }
 0x23c   : > { %3006 = vmatpush1.bf16.msra.mxu1 %v1423_v23  ;;  %v1622_v23 = vunpack.c.l.s8.bf16 %v610_v15 }
 0x23d   : > { %3170 = vmatpush1.bf16.msra.mxu0 %v1425_v24  ;;  %3007 = vmatprep.subr.bf16.mxu1 %v1446_v27  ;;  %v1624_v24 = vunpack.c.l.s8.bf16 %v612_v16  ;;  %v609_v27 = vld [vmem:[%s5389_s21 + $0x9d0] sm:$0xff] }
 0x23e   : > { %3171 = vmatprep.subr.bf16.mxu0 %v1448_v28  ;;  %v611_v28 = vld [vmem:[%s5389_s21 + $0x9e0] sm:$0xff]  ;;  %v1621_v29 = vunpack.c.l.s8.bf16 %v609_v27  ;;  %v1643_v38 = vunpack.c.h.s8.bf16 %v609_v27 }
 0x23f   : > { %v1623_v30 = vunpack.c.l.s8.bf16 %v611_v28  ;;  %v1645_v39 = vunpack.c.h.s8.bf16 %v611_v28 }
 0x240   : > { %3008 = vmatpush1.bf16.msra.mxu1 %v1445_v31  ;;  %v1644_v31 = vunpack.c.h.s8.bf16 %v610_v15 }
 0x241   : > { %3172 = vmatpush1.bf16.msra.mxu0 %v1447_v32  ;;  %3009 = vmatprep.subr.bf16.mxu1 %v1468_v33  ;;  %v1646_v32 = vunpack.c.h.s8.bf16 %v612_v16  ;;  %v632_v33 = vld [vmem:[%s5389_s21 + $0xa88] sm:$0xff] }
 0x242   : > { %3173 = vmatprep.subr.bf16.mxu0 %v1470_v34  ;;  %v634_v34 = vld [vmem:[%s5389_s21 + $0xa98] sm:$0xff] }
 0x244   : > { %3010 = vmatpush1.bf16.msra.mxu1 %v1467_v40  ;;  %v1666_v40 = vunpack.c.l.s8.bf16 %v632_v33 }
 0x245   : > { %3174 = vmatpush1.bf16.msra.mxu0 %v1469_v42  ;;  %3011 = vmatprep.subr.bf16.mxu1 %v1490_v43  ;;  %v1668_v42 = vunpack.c.l.s8.bf16 %v634_v34  ;;  %v631_v43 = vld [vmem:[%s5389_s21 + $0xa80] sm:$0xff] }
 0x246   : > { %3175 = vmatprep.subr.bf16.mxu0 %v1492_v44  ;;  %v633_v44 = vld [vmem:[%s5389_s21 + $0xa90] sm:$0xff]  ;;  %v1665_v45 = vunpack.c.l.s8.bf16 %v631_v43  ;;  %v1687_v52 = vunpack.c.h.s8.bf16 %v631_v43 }
 0x247   : > { %v1667_v47 = vunpack.c.l.s8.bf16 %v633_v44  ;;  %v1689_v54 = vunpack.c.h.s8.bf16 %v633_v44 }
 0x248   : > { %3012 = vmatpush1.bf16.msra.mxu1 %v1489_v48  ;;  %v1688_v48 = vunpack.c.h.s8.bf16 %v632_v33 }
 0x249   : > { %3176 = vmatpush1.bf16.msra.mxu0 %v1491_v49  ;;  %3013 = vmatprep.subr.bf16.mxu1 %v1512_v50  ;;  %v1690_v49 = vunpack.c.h.s8.bf16 %v634_v34  ;;  %v654_v50 = vld [vmem:[%s5389_s21 + $0xb38] sm:$0xff] }
 0x24a   : > { %3177 = vmatprep.subr.bf16.mxu0 %v1514_v51  ;;  %v656_v51 = vld [vmem:[%s5389_s21 + $0xb48] sm:$0xff] }
 0x24c   : > { %3014 = vmatpush1.bf16.msra.mxu1 %v1511_v56  ;;  %v1710_v56 = vunpack.c.l.s8.bf16 %v654_v50 }
 0x24d   : > { %3178 = vmatpush1.bf16.msra.mxu0 %v1513_v57  ;;  %3015 = vmatprep.subr.bf16.mxu1 %v1534_v60  ;;  %v1712_v57 = vunpack.c.l.s8.bf16 %v656_v51  ;;  %v653_v60 = vld [vmem:[%s5389_s21 + $0xb30] sm:$0xff] }
 0x24e   : > { %3179 = vmatprep.subr.bf16.mxu0 %v1536_v61  ;;  %v655_v61 = vld [vmem:[%s5389_s21 + $0xb40] sm:$0xff]  ;;  %v1709_v62 = vunpack.c.l.s8.bf16 %v653_v60  ;;  %v1731_v3 = vunpack.c.h.s8.bf16 %v653_v60 }
 0x24f   : > { %v1711_v63 = vunpack.c.l.s8.bf16 %v655_v61  ;;  %v1733_v4 = vunpack.c.h.s8.bf16 %v655_v61 }
 0x250   : > { %3016 = vmatpush1.bf16.msra.mxu1 %v1533_v0  ;;  %v1732_v0 = vunpack.c.h.s8.bf16 %v654_v50 }
 0x251   : > { %3180 = vmatpush1.bf16.msra.mxu0 %v1535_v1  ;;  %3017 = vmatprep.subr.bf16.mxu1 %v1556_v46  ;;  %v1734_v1 = vunpack.c.h.s8.bf16 %v656_v51  ;;  %v676_v46 = vld [vmem:[%s5389_s21 + $0xbe8] sm:$0xff] }
 0x252   : > { %3181 = vmatprep.subr.bf16.mxu0 %v1558_v2  ;;  %v678_v2 = vld [vmem:[%s5389_s21 + $0xbf8] sm:$0xff] }
 0x254   : > { %3018 = vmatpush1.bf16.msra.mxu1 %v1555_v5  ;;  %v1754_v5 = vunpack.c.l.s8.bf16 %v676_v46 }
 0x255   : > { %3182 = vmatpush1.bf16.msra.mxu0 %v1557_v6  ;;  %3019 = vmatprep.subr.bf16.mxu1 %v1578_v7  ;;  %v1756_v6 = vunpack.c.l.s8.bf16 %v678_v2  ;;  %v675_v7 = vld [vmem:[%s5389_s21 + $0xbe0] sm:$0xff] }
 0x256   : > { %3183 = vmatprep.subr.bf16.mxu0 %v1580_v8  ;;  %v677_v8 = vld [vmem:[%s5389_s21 + $0xbf0] sm:$0xff]  ;;  %v1753_v9 = vunpack.c.l.s8.bf16 %v675_v7  ;;  %v1775_v15 = vunpack.c.h.s8.bf16 %v675_v7 }
 0x257   : > { %v1755_v10 = vunpack.c.l.s8.bf16 %v677_v8  ;;  %v1777_v16 = vunpack.c.h.s8.bf16 %v677_v8 }
 0x258   : > { %3020 = vmatpush1.bf16.msra.mxu1 %v1577_v11  ;;  %v1776_v11 = vunpack.c.h.s8.bf16 %v676_v46 }
 0x259   : > { %3184 = vmatpush1.bf16.msra.mxu0 %v1579_v12  ;;  %3021 = vmatprep.subr.bf16.mxu1 %v1600_v13  ;;  %v1778_v12 = vunpack.c.h.s8.bf16 %v678_v2  ;;  %v698_v13 = vld [vmem:[%s5389_s21 + $0xc98] sm:$0xff] }
 0x25a   : > { %3185 = vmatprep.subr.bf16.mxu0 %v1602_v14  ;;  %v700_v14 = vld [vmem:[%s5389_s21 + $0xca8] sm:$0xff] }
 0x25c   : > { %3022 = vmatpush1.bf16.msra.mxu1 %v1599_v17  ;;  %v1798_v17 = vunpack.c.l.s8.bf16 %v698_v13 }
 0x25d   : > { %3186 = vmatpush1.bf16.msra.mxu0 %v1601_v19  ;;  %3023 = vmatprep.subr.bf16.mxu1 %v1622_v23  ;;  %v1800_v19 = vunpack.c.l.s8.bf16 %v700_v14  ;;  %v697_v23 = vld [vmem:[%s5389_s21 + $0xc90] sm:$0xff] }
 0x25e   : > { %3187 = vmatprep.subr.bf16.mxu0 %v1624_v24  ;;  %v699_v24 = vld [vmem:[%s5389_s21 + $0xca0] sm:$0xff]  ;;  %v1797_v27 = vunpack.c.l.s8.bf16 %v697_v23  ;;  %v1819_v33 = vunpack.c.h.s8.bf16 %v697_v23 }
 0x25f   : > { %v1799_v28 = vunpack.c.l.s8.bf16 %v699_v24  ;;  %v1821_v34 = vunpack.c.h.s8.bf16 %v699_v24 }
 0x260   : > { %3024 = vmatpush1.bf16.msra.mxu1 %v1621_v29  ;;  %v1820_v29 = vunpack.c.h.s8.bf16 %v698_v13 }
 0x261   : > { %3188 = vmatpush1.bf16.msra.mxu0 %v1623_v30  ;;  %3025 = vmatprep.subr.bf16.mxu1 %v1644_v31  ;;  %v1822_v30 = vunpack.c.h.s8.bf16 %v700_v14  ;;  %v720_v31 = vld [vmem:[%s5389_s21 + $0xd48] sm:$0xff] }
 0x262   : > { %3189 = vmatprep.subr.bf16.mxu0 %v1646_v32  ;;  %v722_v32 = vld [vmem:[%s5389_s21 + $0xd58] sm:$0xff] }
 0x264   : > { %3026 = vmatpush1.bf16.msra.mxu1 %v1643_v38  ;;  %v1842_v38 = vunpack.c.l.s8.bf16 %v720_v31 }
 0x265   : > { %3190 = vmatpush1.bf16.msra.mxu0 %v1645_v39  ;;  %3027 = vmatprep.subr.bf16.mxu1 %v1666_v40  ;;  %v1844_v39 = vunpack.c.l.s8.bf16 %v722_v32  ;;  %v719_v40 = vld [vmem:[%s5389_s21 + $0xd40] sm:$0xff] }
 0x266   : > { %3191 = vmatprep.subr.bf16.mxu0 %v1668_v42  ;;  %v721_v42 = vld [vmem:[%s5389_s21 + $0xd50] sm:$0xff]  ;;  %v1841_v43 = vunpack.c.l.s8.bf16 %v719_v40  ;;  %v1863_v50 = vunpack.c.h.s8.bf16 %v719_v40 }
 0x267   : > { %v1843_v44 = vunpack.c.l.s8.bf16 %v721_v42  ;;  %v1865_v51 = vunpack.c.h.s8.bf16 %v721_v42 }
 0x268   : > { %3028 = vmatpush1.bf16.msra.mxu1 %v1665_v45  ;;  %v1864_v45 = vunpack.c.h.s8.bf16 %v720_v31 }
 0x269   : > { %3192 = vmatpush1.bf16.msra.mxu0 %v1667_v47  ;;  %3029 = vmatprep.subr.bf16.mxu1 %v1688_v48  ;;  %v1866_v47 = vunpack.c.h.s8.bf16 %v722_v32  ;;  %v742_v48 = vld [vmem:[%s5389_s21 + $0xdf8] sm:$0xff] }
 0x26a   : > { %3193 = vmatprep.subr.bf16.mxu0 %v1690_v49  ;;  %v744_v49 = vld [vmem:[%s5389_s21 + $0xe08] sm:$0xff] }
 0x26c   : > { %3030 = vmatpush1.bf16.msra.mxu1 %v1687_v52  ;;  %v1886_v52 = vunpack.c.l.s8.bf16 %v742_v48 }
 0x26d   : > { %3194 = vmatpush1.bf16.msra.mxu0 %v1689_v54  ;;  %3040 = vmatprep.subr.bf16.mxu1 %v1710_v56  ;;  %v1888_v54 = vunpack.c.l.s8.bf16 %v744_v49  ;;  %v741_v56 = vld [vmem:[%s5389_s21 + $0xdf0] sm:$0xff] }
 0x26e   : > { %3204 = vmatprep.subr.bf16.mxu0 %v1712_v57  ;;  %v743_v57 = vld [vmem:[%s5389_s21 + $0xe00] sm:$0xff]  ;;  %v1885_v60 = vunpack.c.l.s8.bf16 %v741_v56  ;;  %v1907_v46 = vunpack.c.h.s8.bf16 %v741_v56 }
 0x26f   : > { %3032 = vmatmul.mubr.bf16.vlgmr.msra.gmra.mrb[8].mxu1 %v5521_v36  ;;  %v1887_v61 = vunpack.c.l.s8.bf16 %v743_v57  ;;  %v1909_v2 = vunpack.c.h.s8.bf16 %v743_v57 }
 0x270   : > { %3196 = vmatmul.mubr.bf16.vlgmr.msra.gmra.mrb[8].mxu0 %v5521_v36  ;;  %3041 = vmatpush1.bf16.msra.mxu1 %v1709_v62  ;;  %v1908_v62 = vunpack.c.h.s8.bf16 %v742_v48 }
 0x271   : > { %3205 = vmatpush1.bf16.msra.mxu0 %v1711_v63  ;;  %3042 = vmatprep.subr.bf16.mxu1 %v1732_v0  ;;  %v1910_v63 = vunpack.c.h.s8.bf16 %v744_v49  ;;  %v764_v0 = vld [vmem:[%s5389_s21 + $0xea8] sm:$0xff] }
 0x272   : > { %3206 = vmatprep.subr.bf16.mxu0 %v1734_v1  ;;  %3072 = vmatprep.mubr.bf16.mxu1 %v5444_v55  ;;  %v766_v1 = vld [vmem:[%s5389_s21 + $0xeb8] sm:$0xff] }
 0x273   : > { %3236 = vmatprep.mubr.bf16.mxu0 %v5444_v55 }
 0x274   : > { %3043 = vmatpush1.bf16.msra.mxu1 %v1731_v3  ;;  %v1930_v3 = vunpack.c.l.s8.bf16 %v764_v0 }
 0x275   : > { %3207 = vmatpush1.bf16.msra.mxu0 %v1733_v4  ;;  %3044 = vmatprep.subr.bf16.mxu1 %v1754_v5  ;;  %v1932_v4 = vunpack.c.l.s8.bf16 %v766_v1  ;;  %v763_v5 = vld [vmem:[%s5389_s21 + $0xea0] sm:$0xff] }
 0x276   : > { %3208 = vmatprep.subr.bf16.mxu0 %v1756_v6  ;;  %v765_v6 = vld [vmem:[%s5389_s21 + $0xeb0] sm:$0xff]  ;;  %v1929_v7 = vunpack.c.l.s8.bf16 %v763_v5  ;;  %v1951_v13 = vunpack.c.h.s8.bf16 %v763_v5 }
 0x277   : > { %v1931_v8 = vunpack.c.l.s8.bf16 %v765_v6  ;;  %v1953_v14 = vunpack.c.h.s8.bf16 %v765_v6 }
 0x278   : > { %3045 = vmatpush1.bf16.msra.mxu1 %v1753_v9  ;;  %v1952_v9 = vunpack.c.h.s8.bf16 %v764_v0 }
 0x279   : > { %3209 = vmatpush1.bf16.msra.mxu0 %v1755_v10  ;;  %3046 = vmatprep.subr.bf16.mxu1 %v1776_v11  ;;  %v1954_v10 = vunpack.c.h.s8.bf16 %v766_v1  ;;  %v786_v11 = vld [vmem:[%s5389_s21 + $0xf58] sm:$0xff] }
 0x27a   : > { %3210 = vmatprep.subr.bf16.mxu0 %v1778_v12  ;;  %v788_v12 = vld [vmem:[%s5389_s21 + $0xf68] sm:$0xff] }
 0x27c   : > { %3047 = vmatpush1.bf16.msra.mxu1 %v1775_v15  ;;  %v1974_v15 = vunpack.c.l.s8.bf16 %v786_v11 }
 0x27d   : > { %3211 = vmatpush1.bf16.msra.mxu0 %v1777_v16  ;;  %3048 = vmatprep.subr.bf16.mxu1 %v1798_v17  ;;  %v1976_v16 = vunpack.c.l.s8.bf16 %v788_v12  ;;  %v785_v17 = vld [vmem:[%s5389_s21 + $0xf50] sm:$0xff] }
 0x27e   : > { %3212 = vmatprep.subr.bf16.mxu0 %v1800_v19  ;;  %v787_v19 = vld [vmem:[%s5389_s21 + $0xf60] sm:$0xff]  ;;  %v1973_v23 = vunpack.c.l.s8.bf16 %v785_v17  ;;  %v1995_v31 = vunpack.c.h.s8.bf16 %v785_v17  ;;  %v5814_v17 = vsub.s32 2, %v5413_v26 }
 0x27f   : > { %v1975_v24 = vunpack.c.l.s8.bf16 %v787_v19  ;;  %v1997_v32 = vunpack.c.h.s8.bf16 %v787_v19  ;;  %v5817_v19 = vsub.s32 4, %v5413_v26 }
 0x280   : > { %3049 = vmatpush1.bf16.msra.mxu1 %v1797_v27  ;;  %v1996_v27 = vunpack.c.h.s8.bf16 %v786_v11 }
 0x281   : > { %3213 = vmatpush1.bf16.msra.mxu0 %v1799_v28  ;;  %3050 = vmatprep.subr.bf16.mxu1 %v1820_v29  ;;  %v1998_v28 = vunpack.c.h.s8.bf16 %v788_v12  ;;  %v808_v29 = vld [vmem:[%s5389_s21 + $0x1008] sm:$0xff] }
 0x282   : > { %3214 = vmatprep.subr.bf16.mxu0 %v1822_v30  ;;  %v810_v30 = vld [vmem:[%s5389_s21 + $0x1018] sm:$0xff] }
 0x284   : > { %3051 = vmatpush1.bf16.msra.mxu1 %v1819_v33  ;;  %v2018_v33 = vunpack.c.l.s8.bf16 %v808_v29 }
 0x285   : > { %3215 = vmatpush1.bf16.msra.mxu0 %v1821_v34  ;;  %3052 = vmatprep.subr.bf16.mxu1 %v1842_v38  ;;  %v2020_v34 = vunpack.c.l.s8.bf16 %v810_v30  ;;  %v807_v38 = vld [vmem:[%s5389_s21 + $0x1000] sm:$0xff] }
 0x286   : > { %3216 = vmatprep.subr.bf16.mxu0 %v1844_v39  ;;  %v809_v39 = vld [vmem:[%s5389_s21 + $0x1010] sm:$0xff]  ;;  %v2017_v40 = vunpack.c.l.s8.bf16 %v807_v38  ;;  %v2039_v48 = vunpack.c.h.s8.bf16 %v807_v38 }
 0x287   : > { %v2019_v42 = vunpack.c.l.s8.bf16 %v809_v39  ;;  %v2041_v49 = vunpack.c.h.s8.bf16 %v809_v39 }
 0x288   : > { %3053 = vmatpush1.bf16.msra.mxu1 %v1841_v43  ;;  %v2040_v43 = vunpack.c.h.s8.bf16 %v808_v29 }
 0x289   : > { %3217 = vmatpush1.bf16.msra.mxu0 %v1843_v44  ;;  %3054 = vmatprep.subr.bf16.mxu1 %v1864_v45  ;;  %v2042_v44 = vunpack.c.h.s8.bf16 %v810_v30  ;;  %v830_v45 = vld [vmem:[%s5389_s21 + $0x10b8] sm:$0xff] }
 0x28a   : > { %3218 = vmatprep.subr.bf16.mxu0 %v1866_v47  ;;  %v832_v47 = vld [vmem:[%s5389_s21 + $0x10c8] sm:$0xff] }
 0x28c   : > { %3055 = vmatpush1.bf16.msra.mxu1 %v1863_v50  ;;  %v2062_v50 = vunpack.c.l.s8.bf16 %v830_v45 }
 0x28d   : > { %3219 = vmatpush1.bf16.msra.mxu0 %v1865_v51  ;;  %3056 = vmatprep.subr.bf16.mxu1 %v1886_v52  ;;  %v2064_v51 = vunpack.c.l.s8.bf16 %v832_v47  ;;  %v829_v52 = vld [vmem:[%s5389_s21 + $0x10b0] sm:$0xff] }
 0x28e   : > { %3220 = vmatprep.subr.bf16.mxu0 %v1888_v54  ;;  %v831_v54 = vld [vmem:[%s5389_s21 + $0x10c0] sm:$0xff]  ;;  %v2061_v56 = vunpack.c.l.s8.bf16 %v829_v52  ;;  %v2083_v0 = vunpack.c.h.s8.bf16 %v829_v52 }
 0x28f   : > { %v2063_v57 = vunpack.c.l.s8.bf16 %v831_v54  ;;  %v2085_v1 = vunpack.c.h.s8.bf16 %v831_v54 }
 0x290   : > { %3057 = vmatpush1.bf16.msra.mxu1 %v1885_v60  ;;  %v2084_v60 = vunpack.c.h.s8.bf16 %v830_v45 }
 0x291   : > { %3221 = vmatpush1.bf16.msra.mxu0 %v1887_v61  ;;  %3058 = vmatprep.subr.bf16.mxu1 %v1908_v62  ;;  %v2086_v61 = vunpack.c.h.s8.bf16 %v832_v47  ;;  %v852_v62 = vld [vmem:[%s5389_s21 + $0x1168] sm:$0xff] }
 0x292   : > { %3222 = vmatprep.subr.bf16.mxu0 %v1910_v63  ;;  %v854_v63 = vld [vmem:[%s5389_s21 + $0x1178] sm:$0xff] }
 0x294   : > { %3059 = vmatpush1.bf16.msra.mxu1 %v1907_v46  ;;  %v2106_v46 = vunpack.c.l.s8.bf16 %v852_v62 }
 0x295   : > { %3223 = vmatpush1.bf16.msra.mxu0 %v1909_v2  ;;  %3060 = vmatprep.subr.bf16.mxu1 %v1930_v3  ;;  %v2108_v2 = vunpack.c.l.s8.bf16 %v854_v63  ;;  %v851_v3 = vld [vmem:[%s5389_s21 + $0x1160] sm:$0xff] }
 0x296   : > { %3224 = vmatprep.subr.bf16.mxu0 %v1932_v4  ;;  %v853_v4 = vld [vmem:[%s5389_s21 + $0x1170] sm:$0xff]  ;;  %v2105_v5 = vunpack.c.l.s8.bf16 %v851_v3  ;;  %v2127_v11 = vunpack.c.h.s8.bf16 %v851_v3 }
 0x297   : > { %v2107_v6 = vunpack.c.l.s8.bf16 %v853_v4  ;;  %v2129_v12 = vunpack.c.h.s8.bf16 %v853_v4 }
 0x298   : > { %3061 = vmatpush1.bf16.msra.mxu1 %v1929_v7  ;;  %v2128_v7 = vunpack.c.h.s8.bf16 %v852_v62 }
 0x299   : > { %3225 = vmatpush1.bf16.msra.mxu0 %v1931_v8  ;;  %3062 = vmatprep.subr.bf16.mxu1 %v1952_v9  ;;  %v2130_v8 = vunpack.c.h.s8.bf16 %v854_v63  ;;  %v874_v9 = vld [vmem:[%s5389_s21 + $0x1218] sm:$0xff] }
 0x29a   : > { %3226 = vmatprep.subr.bf16.mxu0 %v1954_v10  ;;  %v876_v10 = vld [vmem:[%s5389_s21 + $0x1228] sm:$0xff]  ;;  %v2172_v29 = vunpack.c.h.s8.bf16 %v874_v9 }
 0x29b   : > { %v2174_v30 = vunpack.c.h.s8.bf16 %v876_v10 }
 0x29c   : > { %3063 = vmatpush1.bf16.msra.mxu1 %v1951_v13  ;;  %v2150_v13 = vunpack.c.l.s8.bf16 %v874_v9 }
 0x29d   : > { %3227 = vmatpush1.bf16.msra.mxu0 %v1953_v14  ;;  %3064 = vmatprep.subr.bf16.mxu1 %v1974_v15  ;;  %v2152_v14 = vunpack.c.l.s8.bf16 %v876_v10  ;;  %v873_v15 = vld [vmem:[%s5389_s21 + $0x1210] sm:$0xff] }
 0x29e   : > { %3228 = vmatprep.subr.bf16.mxu0 %v1976_v16  ;;  %v875_v16 = vld [vmem:[%s5389_s21 + $0x1220] sm:$0xff] }
 0x2a0   : > { %3065 = vmatpush1.bf16.msra.mxu1 %v1973_v23  ;;  %v2149_v23 = vunpack.c.l.s8.bf16 %v873_v15 }
 0x2a1   : > { %3229 = vmatpush1.bf16.msra.mxu0 %v1975_v24  ;;  %3066 = vmatprep.subr.bf16.mxu1 %v1996_v27  ;;  %v2151_v24 = vunpack.c.l.s8.bf16 %v875_v16  ;;  %v5820_v27 = vsub.s32 3, %v5413_v26 }
 0x2a2   : > { %3230 = vmatprep.subr.bf16.mxu0 %v1998_v28  ;;  %v5823_v28 = vsub.s32 5, %v5413_v26 }
 0x2a4   : > { %3067 = vmatpush1.bf16.msra.mxu1 %v1995_v31  ;;  %v896_v31 = vld [vmem:[%s5389_s21 + $0x12c8] sm:$0xff] }
 0x2a5   : > { %3231 = vmatpush1.bf16.msra.mxu0 %v1997_v32  ;;  %3068 = vmatprep.subr.bf16.mxu1 %v2018_v33  ;;  %v898_v32 = vld [vmem:[%s5389_s21 + $0x12d8] sm:$0xff]  ;;  %v2216_v9 = vunpack.c.h.s8.bf16 %v896_v31 }
 0x2a6   : > { %3232 = vmatprep.subr.bf16.mxu0 %v2020_v34  ;;  %v5054_v33 = vld [vmem:[%s5399_s14] sm:$0xff]  ;;  %v2218_v10 = vunpack.c.h.s8.bf16 %v898_v32 }
 0x2a7   : > { %v4287_v34 = vrot.slane %v5054_v33, %v5814_v17  ;;  %v4295_v38 = vrot.slane %v5054_v33, %v5817_v19  ;;  %v4291_v39 = vrot.slane %v5054_v33, %v5820_v27 }
 0x2a8   : > { %3069 = vmatpush1.bf16.msra.mxu1 %v2017_v40  ;;  %v4299_v40 = vrot.slane %v5054_v33, %v5823_v28 }
 0x2a9   : > { %3233 = vmatpush1.bf16.msra.mxu0 %v2019_v42  ;;  %3070 = vmatprep.subr.bf16.mxu1 %v2040_v43  ;;  %v2171_v42 = vunpack.c.h.s8.bf16 %v873_v15  ;;  %v2173_v43 = vunpack.c.h.s8.bf16 %v875_v16 }
 0x2aa   : > { %3234 = vmatprep.subr.bf16.mxu0 %v2042_v44  ;;  %v5055_v44 = vld [vmem:[%s5658_s26] sm:$0xff] }
 0x2ab   : > { %v4425_v45 = vrot.slane %v5055_v44, %v5814_v17  ;;  %v4433_v47 = vrot.slane %v5055_v44, %v5817_v19 }
 0x2ac   : > { %3071 = vmatpush1.bf16.msra.mxu1 %v2039_v48  ;;  %v2194_v48 = vunpack.c.l.s8.bf16 %v896_v31  ;;  %v5199_v31 = vmov 1983009808  }
 0x2ad   : > { %3235 = vmatpush1.bf16.msra.mxu0 %v2041_v49  ;;  %3081 = vmatprep.subr.bf16.mxu1 %v2062_v50  ;;  %v2196_v49 = vunpack.c.l.s8.bf16 %v898_v32  ;;  %v895_v50 = vld [vmem:[%s5389_s21 + $0x12c0] sm:$0xff]  ;;  %v4593_v32 = vunpack.c.l.s4 %v5199_v31 }
 0x2ae   : > { %3245 = vmatprep.subr.bf16.mxu0 %v2064_v51  ;;  %v897_v51 = vld [vmem:[%s5389_s21 + $0x12d0] sm:$0xff]  ;;  %v2193_v3 = vunpack.c.l.s8.bf16 %v895_v50  ;;  %v2215_v15 = vunpack.c.h.s8.bf16 %v895_v50  ;;  %v939_v50 = vld [vmem:[%s5389_s21 + $0x1420] sm:$0xff] }
 0x2af   : > { %3073 = vmatmul.mubr.bf16.vlgmr.msra.gmra.mrb[8].mxu1 %v5473_v59  ;;  %v2195_v4 = vunpack.c.l.s8.bf16 %v897_v51  ;;  %v2217_v16 = vunpack.c.h.s8.bf16 %v897_v51  ;;  %v941_v51 = vld [vmem:[%s5389_s21 + $0x1430] sm:$0xff] }
 0x2b0   : > { %3237 = vmatmul.mubr.bf16.vlgmr.msra.gmra.mrb[8].mxu0 %v5473_v59  ;;  %3082 = vmatpush1.bf16.msra.mxu1 %v2061_v56  ;;  %v4429_v56 = vrot.slane %v5055_v44, %v5820_v27 }
 0x2b1   : > { %3246 = vmatpush1.bf16.msra.mxu0 %v2063_v57  ;;  %3083 = vmatprep.subr.bf16.mxu1 %v2084_v60  ;;  %v4437_v57 = vrot.slane %v5055_v44, %v5823_v28 }
 0x2b2   : > { %3247 = vmatprep.subr.bf16.mxu0 %v2086_v61  ;;  %3113 = vmatprep.mubr.bf16.mxu1 %v5483_v35 }
 0x2b3   : > { %3277 = vmatprep.mubr.bf16.mxu0 %v5483_v35 }
 0x2b4   : > { %3084 = vmatpush1.bf16.msra.mxu1 %v2083_v0 }
 0x2b5   : > { %3248 = vmatpush1.bf16.msra.mxu0 %v2085_v1  ;;  %3085 = vmatprep.subr.bf16.mxu1 %v2106_v46 }
 0x2b6   : > { %3249 = vmatprep.subr.bf16.mxu0 %v2108_v2 }
 0x2b8   : > { %3086 = vmatpush1.bf16.msra.mxu1 %v2105_v5 }
 0x2b9   : > { %3250 = vmatpush1.bf16.msra.mxu0 %v2107_v6  ;;  %3087 = vmatprep.subr.bf16.mxu1 %v2128_v7 }
 0x2ba   : > { %3251 = vmatprep.subr.bf16.mxu0 %v2130_v8 }
 0x2bc   : > { %3088 = vmatpush1.bf16.msra.mxu1 %v2127_v11 }
 0x2bd   : > { %3252 = vmatpush1.bf16.msra.mxu0 %v2129_v12  ;;  %3089 = vmatprep.subr.bf16.mxu1 %v2150_v13  ;;  %v918_v13 = vld [vmem:[%s5389_s21 + $0x1378] sm:$0xff] }
 0x2be   : > { %3253 = vmatprep.subr.bf16.mxu0 %v2152_v14  ;;  %v920_v14 = vld [vmem:[%s5389_s21 + $0x1388] sm:$0xff] }
 0x2c0   : > { %3090 = vmatpush1.bf16.msra.mxu1 %v2149_v23  ;;  %v2238_v23 = vunpack.c.l.s8.bf16 %v918_v13 }
 0x2c1   : > { %3254 = vmatpush1.bf16.msra.mxu0 %v2151_v24  ;;  %3091 = vmatprep.subr.bf16.mxu1 %v2172_v29  ;;  %v2240_v24 = vunpack.c.l.s8.bf16 %v920_v14  ;;  %v917_v29 = vld [vmem:[%s5389_s21 + $0x1370] sm:$0xff] }
 0x2c2   : > { %3255 = vmatprep.subr.bf16.mxu0 %v2174_v30  ;;  %v2787_v52 = vpop.f32.mrb[4].mxu1  ;;  %v919_v30 = vld [vmem:[%s5389_s21 + $0x1380] sm:$0xff]  ;;  %v2237_v33 = vunpack.c.l.s8.bf16 %v917_v29  ;;  %v2259_v44 = vunpack.c.h.s8.bf16 %v917_v29 }
 0x2c3   : > { %v2951_v54 = vpop.f32.mrb[4].mxu0  ;;  %v4388_v60 = vmul.f32 %v4287_v34, %v2787_v52  ;;  %v2789_v62 = vpop.f32.mrb[5].mxu1  ;;  %v2239_v34 = vunpack.c.l.s8.bf16 %v919_v30  ;;  %v983_v29 = vld [vmem:[%s5389_s21 + $0x1580] sm:$0xff] }
 0x2c4   : > { %v4390_v61 = vmul.f32 %v4295_v38, %v2951_v54  ;;  %v2953_v63 = vpop.f32.mrb[5].mxu0  ;;  %v4389_v0 = vmul.f32 %v4291_v39, %v2789_v62  ;;  %v2791_v46 = vpop.f32.mrb[6].mxu1  ;;  %3092 = vmatpush1.bf16.msra.mxu1 %v2171_v42  ;;  %v2260_v38 = vunpack.c.h.s8.bf16 %v918_v13  ;;  %v2262_v39 = vunpack.c.h.s8.bf16 %v920_v14  ;;  %v940_v42 = vld [vmem:[%s5389_s21 + $0x1428] sm:$0xff]  ;;  %v986_v14 = vld [vmem:[%s5389_s21 + $0x1598] sm:$0xff] }
 0x2c5   : > { %v4391_v1 = vmul.f32 %v4299_v40, %v2953_v63  ;;  %v2955_v2 = vpop.f32.mrb[6].mxu0  ;;  %3256 = vmatpush1.bf16.msra.mxu0 %v2173_v43  ;;  %v4526_v5 = vadd.f32 %v4425_v45, %v4388_v60  ;;  %v2792_v7 = vpop.f32.mrb[7].mxu1  ;;  %3093 = vmatprep.subr.bf16.mxu1 %v2194_v48  ;;  %v4594_v40 = vunpack.c.0.s8 %v4593_v32  ;;  %v942_v43 = vld [vmem:[%s5389_s21 + $0x1438] sm:$0xff]  ;;  %v2261_v45 = vunpack.c.h.s8.bf16 %v919_v30  ;;  %v984_v13 = vld [vmem:[%s5389_s21 + $0x1588] sm:$0xff]  ;;  %v985_v30 = vld [vmem:[%s5389_s21 + $0x1590] sm:$0xff] }
 0x2c6   : > { %v4528_v6 = vadd.f32 %v4433_v47, %v4390_v61  ;;  %v2956_v8 = vpop.f32.mrb[7].mxu0  ;;  %3257 = vmatprep.subr.bf16.mxu0 %v2196_v49  ;;  %v4527_v11 = vadd.f32 %v4429_v56, %v4389_v0  ;;  %v2282_v48 = vunpack.c.l.s8.bf16 %v940_v42  ;;  %v2284_v49 = vunpack.c.l.s8.bf16 %v942_v43 }
 0x2c7   : > { %v4529_v12 = vadd.f32 %v4437_v57, %v4391_v1  ;;  %5014 = vtanh.f32 %v4526_v5  ;;  %v5853_v54 = vsub.s32 %v4594_v40, %v5413_v26  ;;  %v2281_v61 = vunpack.c.l.s8.bf16 %v939_v50  ;;  %v963_v8 = vld [vmem:[%s5389_s21 + $0x14e0] sm:$0xff] }
 0x2c8   : > { %5016 = vtanh.f32 %v4528_v6  ;;  %3094 = vmatpush1.bf16.msra.mxu1 %v2193_v3  ;;  %v2283_v62 = vunpack.c.l.s8.bf16 %v941_v51  ;;  %v2304_v0 = vunpack.c.h.s8.bf16 %v940_v42  ;;  %v2306_v1 = vunpack.c.h.s8.bf16 %v942_v43  ;;  %v962_v3 = vld [vmem:[%s5389_s21 + $0x14d8] sm:$0xff] }
 0x2c9   : > { %3258 = vmatpush1.bf16.msra.mxu0 %v2195_v4  ;;  %5018 = vtanh.f32 %v4527_v11  ;;  %3095 = vmatprep.subr.bf16.mxu1 %v2216_v9  ;;  %v4598_v46 = vrot.slane %v4590_v25, %v5853_v54  ;;  %v964_v4 = vld [vmem:[%s5389_s21 + $0x14e8] sm:$0xff]  ;;  %v2303_v6 = vunpack.c.h.s8.bf16 %v939_v50  ;;  %v2305_v7 = vunpack.c.h.s8.bf16 %v941_v51  ;;  %v961_v25 = vld [vmem:[%s5389_s21 + $0x14d0] sm:$0xff] }
 0x2ca   : > { %3259 = vmatprep.subr.bf16.mxu0 %v2218_v10  ;;  %5020 = vtanh.f32 %v4529_v12  ;;  %v2326_v20 = vunpack.c.l.s8.bf16 %v962_v3  ;;  %v2328_v21 = vunpack.c.l.s8.bf16 %v964_v4  ;;  %v2325_v9 = vunpack.c.l.s8.bf16 %v961_v25 }
 0x2cb   : > { %v2327_v10 = vunpack.c.l.s8.bf16 %v963_v8  ;;  %v2348_v11 = vunpack.c.h.s8.bf16 %v962_v3  ;;  %v2350_v12 = vunpack.c.h.s8.bf16 %v964_v4  ;;  %v2369_v31 = vunpack.c.l.s8.bf16 %v983_v29 }
 0x2cc   : > { %3096 = vmatpush1.bf16.msra.mxu1 %v2215_v15  ;;  %v2347_v15 = vunpack.c.h.s8.bf16 %v961_v25  ;;  %v2371_v32 = vunpack.c.l.s8.bf16 %v985_v30  ;;  %v2391_v40 = vunpack.c.h.s8.bf16 %v983_v29  ;;  %v2393_v42 = vunpack.c.h.s8.bf16 %v985_v30 }
 0x2cd   : > { %3260 = vmatpush1.bf16.msra.mxu0 %v2217_v16  ;;  %3097 = vmatprep.subr.bf16.mxu1 %v2238_v23  ;;  %v2349_v16 = vunpack.c.h.s8.bf16 %v963_v8  ;;  %v2370_v23 = vunpack.c.l.s8.bf16 %v984_v13 }
 0x2ce   : > { %3261 = vmatprep.subr.bf16.mxu0 %v2240_v24  ;;  %v2372_v24 = vunpack.c.l.s8.bf16 %v986_v14 }
 0x2d0   : > { %3098 = vmatpush1.bf16.msra.mxu1 %v2237_v33  ;;  %v2392_v33 = vunpack.c.h.s8.bf16 %v984_v13 }
 0x2d1   : > { %3262 = vmatpush1.bf16.msra.mxu0 %v2239_v34  ;;  %v5015_v47 = vpop.eup %5014  ;;  %3099 = vmatprep.subr.bf16.mxu1 %v2260_v38  ;;  %v2394_v34 = vunpack.c.h.s8.bf16 %v986_v14  ;;  %v306_v38 = vld [vmem:[%s5389_s21 + $0x58] sm:$0xff] }
 0x2d2   : > { %3263 = vmatprep.subr.bf16.mxu0 %v2262_v39  ;;  %v5850_v52 = vpop.eup %5016  ;;  %v308_v39 = vld [vmem:[%s5389_s21 + $0x68] sm:$0xff]  ;;  %v1010_v43 = vunpack.c.l.s8.bf16 %v306_v38  ;;  %v1032_v50 = vunpack.c.h.s8.bf16 %v306_v38 }
 0x2d3   : > { %v5019_v56 = vpop.eup %5018  ;;  %v1034_v51 = vunpack.c.h.s8.bf16 %v308_v39 }
 0x2d4   : > { %v5855_v57 = vpop.eup %5020  ;;  %v4591_v60 = vcombine.low %v5015_v47, %v5019_v56  ;;  %3100 = vmatpush1.bf16.msra.mxu1 %v2259_v44  ;;  %v1012_v44 = vunpack.c.l.s8.bf16 %v308_v39  ;;  %v307_v47 = vld [vmem:[%s5389_s21 + $0x60] sm:$0xff]  ;;  %v328_v56 = vld [vmem:[%s5389_s21 + $0x108] sm:$0xff] }
 0x2d5   : > { %3264 = vmatpush1.bf16.msra.mxu0 %v2261_v45  ;;  %v4607_v63 = vcombine.low %v5850_v52, %v5855_v57  ;;  %3101 = vmatprep.subr.bf16.mxu1 %v2282_v48  ;;  %v305_v45 = vld [vmem:[%s5389_s21 + $0x50] sm:$0xff] }
 0x2d6   : > { %3265 = vmatprep.subr.bf16.mxu0 %v2284_v49  ;;  %v4605_v2 = vrot.slane %v4591_v60, %v5853_v54  ;;  %v1009_v48 = vunpack.c.l.s8.bf16 %v305_v45  ;;  %v1011_v49 = vunpack.c.l.s8.bf16 %v307_v47  ;;  %v330_v60 = vld [vmem:[%s5389_s21 + $0x118] sm:$0xff] }
 0x2d8   : > { %v4606_v5 = vcombine.low %v4598_v46, %v4605_v2  ;;  %3102 = vmatpush1.bf16.msra.mxu1 %v2281_v61  ;;  %v1031_v61 = vunpack.c.h.s8.bf16 %v305_v45  ;;  %v327_v46 = vld [vmem:[%s5389_s21 + $0x100] sm:$0xff]  ;;  %v329_v2 = vld [vmem:[%s5389_s21 + $0x110] sm:$0xff] }
 0x2d9   : > { %3266 = vmatpush1.bf16.msra.mxu0 %v2283_v62  ;;  %3103 = vmatprep.subr.bf16.mxu1 %v2304_v0  ;;  %v1033_v62 = vunpack.c.h.s8.bf16 %v307_v47  ;;  %v1054_v0 = vunpack.c.l.s8.bf16 %v328_v56  ;;  %v1053_v3 = vunpack.c.l.s8.bf16 %v327_v46  ;;  %v1055_v4 = vunpack.c.l.s8.bf16 %v329_v2 }
 0x2da   : > { %3267 = vmatprep.subr.bf16.mxu0 %v2306_v1  ;;  %4689 = vst [vmem:[%s5870_s29] sm:$0xff] %v4606_v5  ;;  %v1056_v1 = vunpack.c.l.s8.bf16 %v330_v60  ;;  %v1076_v5 = vunpack.c.h.s8.bf16 %v328_v56  ;;  %v1077_v25 = vunpack.c.h.s8.bf16 %v329_v2 }
 0x2dc   : > { %3104 = vmatpush1.bf16.msra.mxu1 %v2303_v6  ;;  %v1078_v6 = vunpack.c.h.s8.bf16 %v330_v60 }
 0x2dd   : > { %3268 = vmatpush1.bf16.msra.mxu0 %v2305_v7  ;;  %3105 = vmatprep.subr.bf16.mxu1 %v2326_v20  ;;  %v350_v7 = vld [vmem:[%s5389_s21 + $0x1b8] sm:$0xff]  ;;  %v352_v20 = vld [vmem:[%s5389_s21 + $0x1c8] sm:$0xff] }
 0x2de   : > { %3269 = vmatprep.subr.bf16.mxu0 %v2328_v21  ;;  %v1075_v21 = vunpack.c.h.s8.bf16 %v327_v46  ;;  %v1098_v8 = vunpack.c.l.s8.bf16 %v350_v7  ;;  %v1120_v14 = vunpack.c.h.s8.bf16 %v350_v7 }
 0x2e0   : > { %3106 = vmatpush1.bf16.msra.mxu1 %v2325_v9  ;;  %v1100_v9 = vunpack.c.l.s8.bf16 %v352_v20 }
 0x2e1   : > { %3270 = vmatpush1.bf16.msra.mxu0 %v2327_v10  ;;  %3107 = vmatprep.subr.bf16.mxu1 %v2348_v11  ;;  %v349_v10 = vld [vmem:[%s5389_s21 + $0x1b0] sm:$0xff]  ;;  %v351_v11 = vld [vmem:[%s5389_s21 + $0x1c0] sm:$0xff] }
 0x2e2   : > { %3271 = vmatprep.subr.bf16.mxu0 %v2350_v12  ;;  %v1097_v12 = vunpack.c.l.s8.bf16 %v349_v10  ;;  %v1099_v13 = vunpack.c.l.s8.bf16 %v351_v11  ;;  %v1121_v29 = vunpack.c.h.s8.bf16 %v351_v11 }
 0x2e4   : > { %3108 = vmatpush1.bf16.msra.mxu1 %v2347_v15  ;;  %v1122_v15 = vunpack.c.h.s8.bf16 %v352_v20 }
 0x2e5   : > { %3272 = vmatpush1.bf16.msra.mxu0 %v2349_v16  ;;  %3109 = vmatprep.subr.bf16.mxu1 %v2370_v23  ;;  %v372_v16 = vld [vmem:[%s5389_s21 + $0x268] sm:$0xff]  ;;  %v374_v23 = vld [vmem:[%s5389_s21 + $0x278] sm:$0xff] }
 0x2e6   : > { %3273 = vmatprep.subr.bf16.mxu0 %v2372_v24  ;;  %v1119_v24 = vunpack.c.h.s8.bf16 %v349_v10  ;;  %v1142_v30 = vunpack.c.l.s8.bf16 %v372_v16  ;;  %v1164_v39 = vunpack.c.h.s8.bf16 %v372_v16 }
 0x2e8   : > { %3110 = vmatpush1.bf16.msra.mxu1 %v2369_v31  ;;  %v1144_v31 = vunpack.c.l.s8.bf16 %v374_v23 }
 0x2e9   : > { %3274 = vmatpush1.bf16.msra.mxu0 %v2371_v32  ;;  %3111 = vmatprep.subr.bf16.mxu1 %v2392_v33  ;;  %v371_v32 = vld [vmem:[%s5389_s21 + $0x260] sm:$0xff]  ;;  %v373_v33 = vld [vmem:[%s5389_s21 + $0x270] sm:$0xff] }
 0x2ea   : > { %3275 = vmatprep.subr.bf16.mxu0 %v2394_v34  ;;  %v1141_v34 = vunpack.c.l.s8.bf16 %v371_v32  ;;  %v1143_v38 = vunpack.c.l.s8.bf16 %v373_v33  ;;  %v1165_v45 = vunpack.c.h.s8.bf16 %v373_v33 }
 0x2ec   : > { %3112 = vmatpush1.bf16.msra.mxu1 %v2391_v40  ;;  %v1166_v40 = vunpack.c.h.s8.bf16 %v374_v23 }
 0x2ed   : > { %3276 = vmatpush1.bf16.msra.mxu0 %v2393_v42  ;;  %3286 = vmatprep.subr.bf16.mxu1 %v1010_v43  ;;  %v394_v42 = vld [vmem:[%s5389_s21 + $0x318] sm:$0xff]  ;;  %v396_v43 = vld [vmem:[%s5389_s21 + $0x328] sm:$0xff] }
 0x2ee   : > { %3450 = vmatprep.subr.bf16.mxu0 %v1012_v44  ;;  %v1163_v44 = vunpack.c.h.s8.bf16 %v371_v32  ;;  %v1186_v47 = vunpack.c.l.s8.bf16 %v394_v42  ;;  %v1208_v60 = vunpack.c.h.s8.bf16 %v394_v42 }
 0x2ef   : > { %3114 = vmatmul.mubr.bf16.vlgmr.msra.gmra.mrb[8].mxu1 %v5525_v37 }
 0x2f0   : > { %3278 = vmatmul.mubr.bf16.vlgmr.msra.gmra.mrb[8].mxu0 %v5525_v37  ;;  %3287 = vmatpush1.bf16.msra.mxu1 %v1009_v48  ;;  %v1188_v48 = vunpack.c.l.s8.bf16 %v396_v43 }
 0x2f1   : > { %3451 = vmatpush1.bf16.msra.mxu0 %v1011_v49  ;;  %3288 = vmatprep.subr.bf16.mxu1 %v1032_v50  ;;  %v393_v49 = vld [vmem:[%s5389_s21 + $0x310] sm:$0xff]  ;;  %v395_v50 = vld [vmem:[%s5389_s21 + $0x320] sm:$0xff] }
 0x2f2   : > { %3452 = vmatprep.subr.bf16.mxu0 %v1034_v51  ;;  %3318 = vmatprep.mubr.bf16.mxu1 %v5438_v53  ;;  %v1185_v51 = vunpack.c.l.s8.bf16 %v393_v49  ;;  %v1187_v56 = vunpack.c.l.s8.bf16 %v395_v50  ;;  %v1209_v46 = vunpack.c.h.s8.bf16 %v395_v50 }
 0x2f3   : > { %3482 = vmatprep.mubr.bf16.mxu0 %v5438_v53 }
 0x2f4   : > { %3289 = vmatpush1.bf16.msra.mxu1 %v1031_v61  ;;  %v1210_v61 = vunpack.c.h.s8.bf16 %v396_v43 }
 0x2f5   : > { %3453 = vmatpush1.bf16.msra.mxu0 %v1033_v62  ;;  %3290 = vmatprep.subr.bf16.mxu1 %v1054_v0  ;;  %v416_v62 = vld [vmem:[%s5389_s21 + $0x3c8] sm:$0xff]  ;;  %v418_v0 = vld [vmem:[%s5389_s21 + $0x3d8] sm:$0xff] }
 0x2f6   : > { %3454 = vmatprep.subr.bf16.mxu0 %v1056_v1  ;;  %v1207_v1 = vunpack.c.h.s8.bf16 %v393_v49  ;;  %v1230_v2 = vunpack.c.l.s8.bf16 %v416_v62  ;;  %v1252_v20 = vunpack.c.h.s8.bf16 %v416_v62 }
 0x2f8   : > { %3291 = vmatpush1.bf16.msra.mxu1 %v1053_v3  ;;  %v1232_v3 = vunpack.c.l.s8.bf16 %v418_v0 }
 0x2f9   : > { %3455 = vmatpush1.bf16.msra.mxu0 %v1055_v4  ;;  %3292 = vmatprep.subr.bf16.mxu1 %v1076_v5  ;;  %v415_v4 = vld [vmem:[%s5389_s21 + $0x3c0] sm:$0xff]  ;;  %v417_v5 = vld [vmem:[%s5389_s21 + $0x3d0] sm:$0xff] }
 0x2fa   : > { %3456 = vmatprep.subr.bf16.mxu0 %v1078_v6  ;;  %v1229_v6 = vunpack.c.l.s8.bf16 %v415_v4  ;;  %v1231_v7 = vunpack.c.l.s8.bf16 %v417_v5  ;;  %v1253_v10 = vunpack.c.h.s8.bf16 %v417_v5 }
 0x2fc   : > { %3293 = vmatpush1.bf16.msra.mxu1 %v1075_v21  ;;  %v1254_v21 = vunpack.c.h.s8.bf16 %v418_v0 }
 0x2fd   : > { %3457 = vmatpush1.bf16.msra.mxu0 %v1077_v25  ;;  %3294 = vmatprep.subr.bf16.mxu1 %v1098_v8  ;;  %v438_v25 = vld [vmem:[%s5389_s21 + $0x478] sm:$0xff]  ;;  %v440_v8 = vld [vmem:[%s5389_s21 + $0x488] sm:$0xff] }
 0x2fe   : > { %3458 = vmatprep.subr.bf16.mxu0 %v1100_v9  ;;  %v1251_v9 = vunpack.c.h.s8.bf16 %v415_v4  ;;  %v1274_v11 = vunpack.c.l.s8.bf16 %v438_v25  ;;  %v1296_v23 = vunpack.c.h.s8.bf16 %v438_v25 }
 0x300   : > { %3295 = vmatpush1.bf16.msra.mxu1 %v1097_v12  ;;  %v1276_v12 = vunpack.c.l.s8.bf16 %v440_v8 }
 0x301   : > { %3459 = vmatpush1.bf16.msra.mxu0 %v1099_v13  ;;  %3296 = vmatprep.subr.bf16.mxu1 %v1120_v14  ;;  %v437_v13 = vld [vmem:[%s5389_s21 + $0x470] sm:$0xff]  ;;  %v439_v14 = vld [vmem:[%s5389_s21 + $0x480] sm:$0xff] }
 0x302   : > { %3460 = vmatprep.subr.bf16.mxu0 %v1122_v15  ;;  %v1273_v15 = vunpack.c.l.s8.bf16 %v437_v13  ;;  %v1275_v16 = vunpack.c.l.s8.bf16 %v439_v14  ;;  %v1297_v32 = vunpack.c.h.s8.bf16 %v439_v14 }
 0x304   : > { %3297 = vmatpush1.bf16.msra.mxu1 %v1119_v24  ;;  %v1298_v24 = vunpack.c.h.s8.bf16 %v440_v8 }
 0x305   : > { %3461 = vmatpush1.bf16.msra.mxu0 %v1121_v29  ;;  %3298 = vmatprep.subr.bf16.mxu1 %v1142_v30  ;;  %v460_v29 = vld [vmem:[%s5389_s21 + $0x528] sm:$0xff]  ;;  %v462_v30 = vld [vmem:[%s5389_s21 + $0x538] sm:$0xff] }
 0x306   : > { %3462 = vmatprep.subr.bf16.mxu0 %v1144_v31  ;;  %v1295_v31 = vunpack.c.h.s8.bf16 %v437_v13  ;;  %v1318_v33 = vunpack.c.l.s8.bf16 %v460_v29  ;;  %v1340_v43 = vunpack.c.h.s8.bf16 %v460_v29 }
 0x308   : > { %3299 = vmatpush1.bf16.msra.mxu1 %v1141_v34  ;;  %v1320_v34 = vunpack.c.l.s8.bf16 %v462_v30 }
 0x309   : > { %3463 = vmatpush1.bf16.msra.mxu0 %v1143_v38  ;;  %3300 = vmatprep.subr.bf16.mxu1 %v1164_v39  ;;  %v459_v38 = vld [vmem:[%s5389_s21 + $0x520] sm:$0xff]  ;;  %v461_v39 = vld [vmem:[%s5389_s21 + $0x530] sm:$0xff] }
 0x30a   : > { %3464 = vmatprep.subr.bf16.mxu0 %v1166_v40  ;;  %v1317_v40 = vunpack.c.l.s8.bf16 %v459_v38  ;;  %v1319_v42 = vunpack.c.l.s8.bf16 %v461_v39  ;;  %v1341_v49 = vunpack.c.h.s8.bf16 %v461_v39 }
 0x30c   : > { %3301 = vmatpush1.bf16.msra.mxu1 %v1163_v44  ;;  %v1342_v44 = vunpack.c.h.s8.bf16 %v462_v30 }
 0x30d   : > { %3465 = vmatpush1.bf16.msra.mxu0 %v1165_v45  ;;  %3302 = vmatprep.subr.bf16.mxu1 %v1186_v47  ;;  %v482_v45 = vld [vmem:[%s5389_s21 + $0x5d8] sm:$0xff]  ;;  %v484_v47 = vld [vmem:[%s5389_s21 + $0x5e8] sm:$0xff] }
 0x30e   : > { %3466 = vmatprep.subr.bf16.mxu0 %v1188_v48  ;;  %v1339_v48 = vunpack.c.h.s8.bf16 %v459_v38  ;;  %v1362_v50 = vunpack.c.l.s8.bf16 %v482_v45  ;;  %v1384_v0 = vunpack.c.h.s8.bf16 %v482_v45 }
 0x310   : > { %3303 = vmatpush1.bf16.msra.mxu1 %v1185_v51  ;;  %v1364_v51 = vunpack.c.l.s8.bf16 %v484_v47 }
 0x311   : > { %3467 = vmatpush1.bf16.msra.mxu0 %v1187_v56  ;;  %3304 = vmatprep.subr.bf16.mxu1 %v1208_v60  ;;  %v481_v56 = vld [vmem:[%s5389_s21 + $0x5d0] sm:$0xff]  ;;  %v483_v60 = vld [vmem:[%s5389_s21 + $0x5e0] sm:$0xff] }
 0x312   : > { %3468 = vmatprep.subr.bf16.mxu0 %v1210_v61  ;;  %v1361_v61 = vunpack.c.l.s8.bf16 %v481_v56  ;;  %v1363_v62 = vunpack.c.l.s8.bf16 %v483_v60  ;;  %v1385_v4 = vunpack.c.h.s8.bf16 %v483_v60 }
 0x314   : > { %3305 = vmatpush1.bf16.msra.mxu1 %v1207_v1  ;;  %v1386_v1 = vunpack.c.h.s8.bf16 %v484_v47 }
 0x315   : > { %3469 = vmatpush1.bf16.msra.mxu0 %v1209_v46  ;;  %3306 = vmatprep.subr.bf16.mxu1 %v1230_v2  ;;  %v504_v46 = vld [vmem:[%s5389_s21 + $0x688] sm:$0xff]  ;;  %v506_v2 = vld [vmem:[%s5389_s21 + $0x698] sm:$0xff] }
 0x316   : > { %3470 = vmatprep.subr.bf16.mxu0 %v1232_v3  ;;  %v1383_v3 = vunpack.c.h.s8.bf16 %v481_v56  ;;  %v1406_v5 = vunpack.c.l.s8.bf16 %v504_v46  ;;  %v1428_v8 = vunpack.c.h.s8.bf16 %v504_v46 }
 0x318   : > { %3307 = vmatpush1.bf16.msra.mxu1 %v1229_v6  ;;  %v1408_v6 = vunpack.c.l.s8.bf16 %v506_v2 }
 0x319   : > { %3471 = vmatpush1.bf16.msra.mxu0 %v1231_v7  ;;  %3308 = vmatprep.subr.bf16.mxu1 %v1252_v20  ;;  %v503_v7 = vld [vmem:[%s5389_s21 + $0x680] sm:$0xff]  ;;  %v505_v20 = vld [vmem:[%s5389_s21 + $0x690] sm:$0xff] }
 0x31a   : > { %3472 = vmatprep.subr.bf16.mxu0 %v1254_v21  ;;  %v1405_v21 = vunpack.c.l.s8.bf16 %v503_v7  ;;  %v1407_v25 = vunpack.c.l.s8.bf16 %v505_v20  ;;  %v1429_v13 = vunpack.c.h.s8.bf16 %v505_v20 }
 0x31c   : > { %3309 = vmatpush1.bf16.msra.mxu1 %v1251_v9  ;;  %v1430_v9 = vunpack.c.h.s8.bf16 %v506_v2 }
 0x31d   : > { %3473 = vmatpush1.bf16.msra.mxu0 %v1253_v10  ;;  %3310 = vmatprep.subr.bf16.mxu1 %v1274_v11  ;;  %v526_v10 = vld [vmem:[%s5389_s21 + $0x738] sm:$0xff]  ;;  %v528_v11 = vld [vmem:[%s5389_s21 + $0x748] sm:$0xff] }
 0x31e   : > { %3474 = vmatprep.subr.bf16.mxu0 %v1276_v12  ;;  %v1427_v12 = vunpack.c.h.s8.bf16 %v503_v7  ;;  %v1450_v14 = vunpack.c.l.s8.bf16 %v526_v10  ;;  %v1472_v30 = vunpack.c.h.s8.bf16 %v526_v10 }
 0x320   : > { %3311 = vmatpush1.bf16.msra.mxu1 %v1273_v15  ;;  %v1452_v15 = vunpack.c.l.s8.bf16 %v528_v11 }
 0x321   : > { %3475 = vmatpush1.bf16.msra.mxu0 %v1275_v16  ;;  %3312 = vmatprep.subr.bf16.mxu1 %v1296_v23  ;;  %v525_v16 = vld [vmem:[%s5389_s21 + $0x730] sm:$0xff]  ;;  %v527_v23 = vld [vmem:[%s5389_s21 + $0x740] sm:$0xff] }
 0x322   : > { %3476 = vmatprep.subr.bf16.mxu0 %v1298_v24  ;;  %v1449_v24 = vunpack.c.l.s8.bf16 %v525_v16  ;;  %v1451_v29 = vunpack.c.l.s8.bf16 %v527_v23  ;;  %v1473_v38 = vunpack.c.h.s8.bf16 %v527_v23 }
 0x324   : > { %3313 = vmatpush1.bf16.msra.mxu1 %v1295_v31  ;;  %v1474_v31 = vunpack.c.h.s8.bf16 %v528_v11 }
 0x325   : > { %3477 = vmatpush1.bf16.msra.mxu0 %v1297_v32  ;;  %3314 = vmatprep.subr.bf16.mxu1 %v1318_v33  ;;  %v548_v32 = vld [vmem:[%s5389_s21 + $0x7e8] sm:$0xff]  ;;  %v550_v33 = vld [vmem:[%s5389_s21 + $0x7f8] sm:$0xff] }
 0x326   : > { %3478 = vmatprep.subr.bf16.mxu0 %v1320_v34  ;;  %v1471_v34 = vunpack.c.h.s8.bf16 %v525_v16  ;;  %v1494_v39 = vunpack.c.l.s8.bf16 %v548_v32  ;;  %v1516_v47 = vunpack.c.h.s8.bf16 %v548_v32 }
 0x328   : > { %3315 = vmatpush1.bf16.msra.mxu1 %v1317_v40  ;;  %v1496_v40 = vunpack.c.l.s8.bf16 %v550_v33 }
 0x329   : > { %3479 = vmatpush1.bf16.msra.mxu0 %v1319_v42  ;;  %3316 = vmatprep.subr.bf16.mxu1 %v1340_v43  ;;  %v547_v42 = vld [vmem:[%s5389_s21 + $0x7e0] sm:$0xff]  ;;  %v549_v43 = vld [vmem:[%s5389_s21 + $0x7f0] sm:$0xff] }
 0x32a   : > { %3480 = vmatprep.subr.bf16.mxu0 %v1342_v44  ;;  %v1493_v44 = vunpack.c.l.s8.bf16 %v547_v42  ;;  %v1495_v45 = vunpack.c.l.s8.bf16 %v549_v43  ;;  %v1517_v56 = vunpack.c.h.s8.bf16 %v549_v43 }
 0x32c   : > { %3317 = vmatpush1.bf16.msra.mxu1 %v1339_v48  ;;  %v1518_v48 = vunpack.c.h.s8.bf16 %v550_v33 }
 0x32d   : > { %3481 = vmatpush1.bf16.msra.mxu0 %v1341_v49  ;;  %3327 = vmatprep.subr.bf16.mxu1 %v1362_v50  ;;  %v570_v49 = vld [vmem:[%s5389_s21 + $0x898] sm:$0xff]  ;;  %v572_v50 = vld [vmem:[%s5389_s21 + $0x8a8] sm:$0xff] }
 0x32e   : > { %3491 = vmatprep.subr.bf16.mxu0 %v1364_v51  ;;  %v1515_v51 = vunpack.c.h.s8.bf16 %v547_v42  ;;  %v1538_v60 = vunpack.c.l.s8.bf16 %v570_v49  ;;  %v1560_v2 = vunpack.c.h.s8.bf16 %v570_v49 }
 0x32f   : > { %3319 = vmatmul.mubr.bf16.vlgmr.msra.gmra.mrb[12].mxu1 %v5469_v58 }
 0x330   : > { %3483 = vmatmul.mubr.bf16.vlgmr.msra.gmra.mrb[12].mxu0 %v5469_v58  ;;  %3328 = vmatpush1.bf16.msra.mxu1 %v1361_v61  ;;  %v1540_v61 = vunpack.c.l.s8.bf16 %v572_v50 }
 0x331   : > { %3492 = vmatpush1.bf16.msra.mxu0 %v1363_v62  ;;  %3329 = vmatprep.subr.bf16.mxu1 %v1384_v0  ;;  %v569_v62 = vld [vmem:[%s5389_s21 + $0x890] sm:$0xff]  ;;  %v571_v0 = vld [vmem:[%s5389_s21 + $0x8a0] sm:$0xff] }
 0x332   : > { %3493 = vmatprep.subr.bf16.mxu0 %v1386_v1  ;;  %3359 = vmatprep.mubr.bf16.mxu1 %v5479_v41  ;;  %v1537_v1 = vunpack.c.l.s8.bf16 %v569_v62  ;;  %v1539_v46 = vunpack.c.l.s8.bf16 %v571_v0  ;;  %v1561_v7 = vunpack.c.h.s8.bf16 %v571_v0 }
 0x333   : > { %3523 = vmatprep.mubr.bf16.mxu0 %v5479_v41 }
 0x334   : > { %3330 = vmatpush1.bf16.msra.mxu1 %v1383_v3  ;;  %v1562_v3 = vunpack.c.h.s8.bf16 %v572_v50 }
 0x335   : > { %3494 = vmatpush1.bf16.msra.mxu0 %v1385_v4  ;;  %3331 = vmatprep.subr.bf16.mxu1 %v1406_v5  ;;  %v592_v4 = vld [vmem:[%s5389_s21 + $0x948] sm:$0xff]  ;;  %v594_v5 = vld [vmem:[%s5389_s21 + $0x958] sm:$0xff] }
 0x336   : > { %3495 = vmatprep.subr.bf16.mxu0 %v1408_v6  ;;  %v1559_v6 = vunpack.c.h.s8.bf16 %v569_v62  ;;  %v1582_v20 = vunpack.c.l.s8.bf16 %v592_v4  ;;  %v1604_v11 = vunpack.c.h.s8.bf16 %v592_v4 }
 0x338   : > { %3332 = vmatpush1.bf16.msra.mxu1 %v1405_v21  ;;  %v1584_v21 = vunpack.c.l.s8.bf16 %v594_v5 }
 0x339   : > { %3496 = vmatpush1.bf16.msra.mxu0 %v1407_v25  ;;  %3333 = vmatprep.subr.bf16.mxu1 %v1428_v8  ;;  %v591_v25 = vld [vmem:[%s5389_s21 + $0x940] sm:$0xff]  ;;  %v593_v8 = vld [vmem:[%s5389_s21 + $0x950] sm:$0xff] }
 0x33a   : > { %3497 = vmatprep.subr.bf16.mxu0 %v1430_v9  ;;  %v1581_v9 = vunpack.c.l.s8.bf16 %v591_v25  ;;  %v1583_v10 = vunpack.c.l.s8.bf16 %v593_v8  ;;  %v1605_v16 = vunpack.c.h.s8.bf16 %v593_v8 }
 0x33c   : > { %3334 = vmatpush1.bf16.msra.mxu1 %v1427_v12  ;;  %v1606_v12 = vunpack.c.h.s8.bf16 %v594_v5 }
 0x33d   : > { %3498 = vmatpush1.bf16.msra.mxu0 %v1429_v13  ;;  %3335 = vmatprep.subr.bf16.mxu1 %v1450_v14  ;;  %v614_v13 = vld [vmem:[%s5389_s21 + $0x9f8] sm:$0xff]  ;;  %v616_v14 = vld [vmem:[%s5389_s21 + $0xa08] sm:$0xff] }
 0x33e   : > { %3499 = vmatprep.subr.bf16.mxu0 %v1452_v15  ;;  %v1603_v15 = vunpack.c.h.s8.bf16 %v591_v25  ;;  %v1626_v23 = vunpack.c.l.s8.bf16 %v614_v13  ;;  %v1648_v33 = vunpack.c.h.s8.bf16 %v614_v13 }
 0x340   : > { %3336 = vmatpush1.bf16.msra.mxu1 %v1449_v24  ;;  %v1628_v24 = vunpack.c.l.s8.bf16 %v616_v14 }
 0x341   : > { %3500 = vmatpush1.bf16.msra.mxu0 %v1451_v29  ;;  %3337 = vmatprep.subr.bf16.mxu1 %v1472_v30  ;;  %v613_v29 = vld [vmem:[%s5389_s21 + $0x9f0] sm:$0xff]  ;;  %v615_v30 = vld [vmem:[%s5389_s21 + $0xa00] sm:$0xff] }
 0x342   : > { %3501 = vmatprep.subr.bf16.mxu0 %v1474_v31  ;;  %v1625_v31 = vunpack.c.l.s8.bf16 %v613_v29  ;;  %v1627_v32 = vunpack.c.l.s8.bf16 %v615_v30  ;;  %v1649_v42 = vunpack.c.h.s8.bf16 %v615_v30 }
 0x344   : > { %3338 = vmatpush1.bf16.msra.mxu1 %v1471_v34  ;;  %v1650_v34 = vunpack.c.h.s8.bf16 %v616_v14 }
 0x345   : > { %3502 = vmatpush1.bf16.msra.mxu0 %v1473_v38  ;;  %3339 = vmatprep.subr.bf16.mxu1 %v1494_v39  ;;  %v636_v38 = vld [vmem:[%s5389_s21 + $0xaa8] sm:$0xff]  ;;  %v638_v39 = vld [vmem:[%s5389_s21 + $0xab8] sm:$0xff] }
 0x346   : > { %3503 = vmatprep.subr.bf16.mxu0 %v1496_v40  ;;  %v1647_v40 = vunpack.c.h.s8.bf16 %v613_v29  ;;  %v1670_v43 = vunpack.c.l.s8.bf16 %v636_v38  ;;  %v1692_v50 = vunpack.c.h.s8.bf16 %v636_v38 }
 0x348   : > { %3340 = vmatpush1.bf16.msra.mxu1 %v1493_v44  ;;  %v1672_v44 = vunpack.c.l.s8.bf16 %v638_v39 }
 0x349   : > { %3504 = vmatpush1.bf16.msra.mxu0 %v1495_v45  ;;  %3341 = vmatprep.subr.bf16.mxu1 %v1516_v47  ;;  %v635_v45 = vld [vmem:[%s5389_s21 + $0xaa0] sm:$0xff]  ;;  %v637_v47 = vld [vmem:[%s5389_s21 + $0xab0] sm:$0xff] }
 0x34a   : > { %3505 = vmatprep.subr.bf16.mxu0 %v1518_v48  ;;  %v1669_v48 = vunpack.c.l.s8.bf16 %v635_v45  ;;  %v1671_v49 = vunpack.c.l.s8.bf16 %v637_v47  ;;  %v1693_v62 = vunpack.c.h.s8.bf16 %v637_v47 }
 0x34c   : > { %3342 = vmatpush1.bf16.msra.mxu1 %v1515_v51  ;;  %v1694_v51 = vunpack.c.h.s8.bf16 %v638_v39 }
 0x34d   : > { %3506 = vmatpush1.bf16.msra.mxu0 %v1517_v56  ;;  %3343 = vmatprep.subr.bf16.mxu1 %v1538_v60  ;;  %v658_v56 = vld [vmem:[%s5389_s21 + $0xb58] sm:$0xff]  ;;  %v660_v60 = vld [vmem:[%s5389_s21 + $0xb68] sm:$0xff] }
 0x34e   : > { %3507 = vmatprep.subr.bf16.mxu0 %v1540_v61  ;;  %v1691_v61 = vunpack.c.h.s8.bf16 %v635_v45  ;;  %v1714_v0 = vunpack.c.l.s8.bf16 %v658_v56  ;;  %v1736_v5 = vunpack.c.h.s8.bf16 %v658_v56 }
 0x350   : > { %3344 = vmatpush1.bf16.msra.mxu1 %v1537_v1  ;;  %v1716_v1 = vunpack.c.l.s8.bf16 %v660_v60 }
 0x351   : > { %3508 = vmatpush1.bf16.msra.mxu0 %v1539_v46  ;;  %3345 = vmatprep.subr.bf16.mxu1 %v1560_v2  ;;  %v657_v46 = vld [vmem:[%s5389_s21 + $0xb50] sm:$0xff]  ;;  %v659_v2 = vld [vmem:[%s5389_s21 + $0xb60] sm:$0xff] }
 0x352   : > { %3509 = vmatprep.subr.bf16.mxu0 %v1562_v3  ;;  %v1713_v3 = vunpack.c.l.s8.bf16 %v657_v46  ;;  %v1715_v4 = vunpack.c.l.s8.bf16 %v659_v2  ;;  %v1737_v25 = vunpack.c.h.s8.bf16 %v659_v2 }
 0x354   : > { %3346 = vmatpush1.bf16.msra.mxu1 %v1559_v6  ;;  %v1738_v6 = vunpack.c.h.s8.bf16 %v660_v60 }
 0x355   : > { %3510 = vmatpush1.bf16.msra.mxu0 %v1561_v7  ;;  %3347 = vmatprep.subr.bf16.mxu1 %v1582_v20  ;;  %v680_v7 = vld [vmem:[%s5389_s21 + $0xc08] sm:$0xff]  ;;  %v682_v20 = vld [vmem:[%s5389_s21 + $0xc18] sm:$0xff] }
 0x356   : > { %3511 = vmatprep.subr.bf16.mxu0 %v1584_v21  ;;  %v1735_v21 = vunpack.c.h.s8.bf16 %v657_v46  ;;  %v1758_v8 = vunpack.c.l.s8.bf16 %v680_v7  ;;  %v1780_v14 = vunpack.c.h.s8.bf16 %v680_v7 }
 0x358   : > { %3348 = vmatpush1.bf16.msra.mxu1 %v1581_v9  ;;  %v1760_v9 = vunpack.c.l.s8.bf16 %v682_v20 }
 0x359   : > { %3512 = vmatpush1.bf16.msra.mxu0 %v1583_v10  ;;  %3349 = vmatprep.subr.bf16.mxu1 %v1604_v11  ;;  %v679_v10 = vld [vmem:[%s5389_s21 + $0xc00] sm:$0xff]  ;;  %v681_v11 = vld [vmem:[%s5389_s21 + $0xc10] sm:$0xff] }
 0x35a   : > { %3513 = vmatprep.subr.bf16.mxu0 %v1606_v12  ;;  %v1757_v12 = vunpack.c.l.s8.bf16 %v679_v10  ;;  %v1759_v13 = vunpack.c.l.s8.bf16 %v681_v11  ;;  %v1781_v29 = vunpack.c.h.s8.bf16 %v681_v11 }
 0x35c   : > { %3350 = vmatpush1.bf16.msra.mxu1 %v1603_v15  ;;  %v1782_v15 = vunpack.c.h.s8.bf16 %v682_v20 }
 0x35d   : > { %3514 = vmatpush1.bf16.msra.mxu0 %v1605_v16  ;;  %3351 = vmatprep.subr.bf16.mxu1 %v1626_v23  ;;  %v702_v16 = vld [vmem:[%s5389_s21 + $0xcb8] sm:$0xff]  ;;  %v704_v23 = vld [vmem:[%s5389_s21 + $0xcc8] sm:$0xff] }
 0x35e   : > { %3515 = vmatprep.subr.bf16.mxu0 %v1628_v24  ;;  %v1779_v24 = vunpack.c.h.s8.bf16 %v679_v10  ;;  %v1802_v30 = vunpack.c.l.s8.bf16 %v702_v16  ;;  %v1824_v39 = vunpack.c.h.s8.bf16 %v702_v16 }
 0x360   : > { %3352 = vmatpush1.bf16.msra.mxu1 %v1625_v31  ;;  %v1804_v31 = vunpack.c.l.s8.bf16 %v704_v23 }
 0x361   : > { %3516 = vmatpush1.bf16.msra.mxu0 %v1627_v32  ;;  %3353 = vmatprep.subr.bf16.mxu1 %v1648_v33  ;;  %v701_v32 = vld [vmem:[%s5389_s21 + $0xcb0] sm:$0xff]  ;;  %v703_v33 = vld [vmem:[%s5389_s21 + $0xcc0] sm:$0xff] }
 0x362   : > { %3517 = vmatprep.subr.bf16.mxu0 %v1650_v34  ;;  %v1801_v34 = vunpack.c.l.s8.bf16 %v701_v32  ;;  %v1803_v38 = vunpack.c.l.s8.bf16 %v703_v33  ;;  %v1825_v45 = vunpack.c.h.s8.bf16 %v703_v33 }
 0x364   : > { %3354 = vmatpush1.bf16.msra.mxu1 %v1647_v40  ;;  %v1826_v40 = vunpack.c.h.s8.bf16 %v704_v23 }
 0x365   : > { %3518 = vmatpush1.bf16.msra.mxu0 %v1649_v42  ;;  %3355 = vmatprep.subr.bf16.mxu1 %v1670_v43  ;;  %v724_v42 = vld [vmem:[%s5389_s21 + $0xd68] sm:$0xff]  ;;  %v726_v43 = vld [vmem:[%s5389_s21 + $0xd78] sm:$0xff] }
 0x366   : > { %3519 = vmatprep.subr.bf16.mxu0 %v1672_v44  ;;  %v1823_v44 = vunpack.c.h.s8.bf16 %v701_v32  ;;  %v1846_v47 = vunpack.c.l.s8.bf16 %v724_v42  ;;  %v1868_v60 = vunpack.c.h.s8.bf16 %v724_v42 }
 0x368   : > { %3356 = vmatpush1.bf16.msra.mxu1 %v1669_v48  ;;  %v1848_v48 = vunpack.c.l.s8.bf16 %v726_v43 }
 0x369   : > { %3520 = vmatpush1.bf16.msra.mxu0 %v1671_v49  ;;  %3357 = vmatprep.subr.bf16.mxu1 %v1692_v50  ;;  %v723_v49 = vld [vmem:[%s5389_s21 + $0xd60] sm:$0xff]  ;;  %v725_v50 = vld [vmem:[%s5389_s21 + $0xd70] sm:$0xff] }
 0x36a   : > { %3521 = vmatprep.subr.bf16.mxu0 %v1694_v51  ;;  %v1845_v51 = vunpack.c.l.s8.bf16 %v723_v49  ;;  %v1847_v56 = vunpack.c.l.s8.bf16 %v725_v50  ;;  %v1869_v46 = vunpack.c.h.s8.bf16 %v725_v50 }
 0x36c   : > { %3358 = vmatpush1.bf16.msra.mxu1 %v1691_v61  ;;  %v1870_v61 = vunpack.c.h.s8.bf16 %v726_v43 }
 0x36d   : > { %3522 = vmatpush1.bf16.msra.mxu0 %v1693_v62  ;;  %3368 = vmatprep.subr.bf16.mxu1 %v1714_v0  ;;  %v746_v62 = vld [vmem:[%s5389_s21 + $0xe18] sm:$0xff]  ;;  %v748_v0 = vld [vmem:[%s5389_s21 + $0xe28] sm:$0xff] }
 0x36e   : > { %3532 = vmatprep.subr.bf16.mxu0 %v1716_v1  ;;  %v1867_v1 = vunpack.c.h.s8.bf16 %v723_v49  ;;  %v1890_v2 = vunpack.c.l.s8.bf16 %v746_v62  ;;  %v1912_v20 = vunpack.c.h.s8.bf16 %v746_v62 }
 0x36f   : > { %3360 = vmatmul.mubr.bf16.vlgmr.msra.gmra.mrb[12].mxu1 %v5521_v36 }
 0x370   : > { %3524 = vmatmul.mubr.bf16.vlgmr.msra.gmra.mrb[12].mxu0 %v5521_v36  ;;  %3369 = vmatpush1.bf16.msra.mxu1 %v1713_v3  ;;  %v1892_v3 = vunpack.c.l.s8.bf16 %v748_v0 }
 0x371   : > { %3533 = vmatpush1.bf16.msra.mxu0 %v1715_v4  ;;  %3370 = vmatprep.subr.bf16.mxu1 %v1736_v5  ;;  %v745_v4 = vld [vmem:[%s5389_s21 + $0xe10] sm:$0xff]  ;;  %v747_v5 = vld [vmem:[%s5389_s21 + $0xe20] sm:$0xff] }
 0x372   : > { %3534 = vmatprep.subr.bf16.mxu0 %v1738_v6  ;;  %3400 = vmatprep.mubr.bf16.mxu1 %v5444_v55  ;;  %v1889_v6 = vunpack.c.l.s8.bf16 %v745_v4  ;;  %v1891_v7 = vunpack.c.l.s8.bf16 %v747_v5  ;;  %v1913_v10 = vunpack.c.h.s8.bf16 %v747_v5 }
 0x373   : > { %3564 = vmatprep.mubr.bf16.mxu0 %v5444_v55 }
 0x374   : > { %3371 = vmatpush1.bf16.msra.mxu1 %v1735_v21  ;;  %v1914_v21 = vunpack.c.h.s8.bf16 %v748_v0 }
 0x375   : > { %3535 = vmatpush1.bf16.msra.mxu0 %v1737_v25  ;;  %3372 = vmatprep.subr.bf16.mxu1 %v1758_v8  ;;  %v768_v25 = vld [vmem:[%s5389_s21 + $0xec8] sm:$0xff]  ;;  %v770_v8 = vld [vmem:[%s5389_s21 + $0xed8] sm:$0xff] }
 0x376   : > { %3536 = vmatprep.subr.bf16.mxu0 %v1760_v9  ;;  %v1911_v9 = vunpack.c.h.s8.bf16 %v745_v4  ;;  %v1934_v11 = vunpack.c.l.s8.bf16 %v768_v25  ;;  %v1956_v23 = vunpack.c.h.s8.bf16 %v768_v25 }
 0x378   : > { %3373 = vmatpush1.bf16.msra.mxu1 %v1757_v12  ;;  %v1936_v12 = vunpack.c.l.s8.bf16 %v770_v8 }
 0x379   : > { %3537 = vmatpush1.bf16.msra.mxu0 %v1759_v13  ;;  %3374 = vmatprep.subr.bf16.mxu1 %v1780_v14  ;;  %v767_v13 = vld [vmem:[%s5389_s21 + $0xec0] sm:$0xff]  ;;  %v769_v14 = vld [vmem:[%s5389_s21 + $0xed0] sm:$0xff] }
 0x37a   : > { %3538 = vmatprep.subr.bf16.mxu0 %v1782_v15  ;;  %v1933_v15 = vunpack.c.l.s8.bf16 %v767_v13  ;;  %v1935_v16 = vunpack.c.l.s8.bf16 %v769_v14  ;;  %v1957_v32 = vunpack.c.h.s8.bf16 %v769_v14 }
 0x37c   : > { %3375 = vmatpush1.bf16.msra.mxu1 %v1779_v24  ;;  %v1958_v24 = vunpack.c.h.s8.bf16 %v770_v8 }
 0x37d   : > { %3539 = vmatpush1.bf16.msra.mxu0 %v1781_v29  ;;  %3376 = vmatprep.subr.bf16.mxu1 %v1802_v30  ;;  %v790_v29 = vld [vmem:[%s5389_s21 + $0xf78] sm:$0xff]  ;;  %v792_v30 = vld [vmem:[%s5389_s21 + $0xf88] sm:$0xff] }
 0x37e   : > { %3540 = vmatprep.subr.bf16.mxu0 %v1804_v31  ;;  %v1955_v31 = vunpack.c.h.s8.bf16 %v767_v13  ;;  %v1978_v33 = vunpack.c.l.s8.bf16 %v790_v29  ;;  %v2000_v43 = vunpack.c.h.s8.bf16 %v790_v29 }
 0x380   : > { %3377 = vmatpush1.bf16.msra.mxu1 %v1801_v34  ;;  %v1980_v34 = vunpack.c.l.s8.bf16 %v792_v30 }
 0x381   : > { %3541 = vmatpush1.bf16.msra.mxu0 %v1803_v38  ;;  %3378 = vmatprep.subr.bf16.mxu1 %v1824_v39  ;;  %v789_v38 = vld [vmem:[%s5389_s21 + $0xf70] sm:$0xff]  ;;  %v791_v39 = vld [vmem:[%s5389_s21 + $0xf80] sm:$0xff] }
 0x382   : > { %3542 = vmatprep.subr.bf16.mxu0 %v1826_v40  ;;  %v1977_v40 = vunpack.c.l.s8.bf16 %v789_v38  ;;  %v1979_v42 = vunpack.c.l.s8.bf16 %v791_v39  ;;  %v2001_v49 = vunpack.c.h.s8.bf16 %v791_v39 }
 0x384   : > { %3379 = vmatpush1.bf16.msra.mxu1 %v1823_v44  ;;  %v2002_v44 = vunpack.c.h.s8.bf16 %v792_v30 }
 0x385   : > { %3543 = vmatpush1.bf16.msra.mxu0 %v1825_v45  ;;  %3380 = vmatprep.subr.bf16.mxu1 %v1846_v47  ;;  %v812_v45 = vld [vmem:[%s5389_s21 + $0x1028] sm:$0xff]  ;;  %v814_v47 = vld [vmem:[%s5389_s21 + $0x1038] sm:$0xff] }
 0x386   : > { %3544 = vmatprep.subr.bf16.mxu0 %v1848_v48  ;;  %v1999_v48 = vunpack.c.h.s8.bf16 %v789_v38  ;;  %v2022_v50 = vunpack.c.l.s8.bf16 %v812_v45  ;;  %v2044_v0 = vunpack.c.h.s8.bf16 %v812_v45 }
 0x388   : > { %3381 = vmatpush1.bf16.msra.mxu1 %v1845_v51  ;;  %v2024_v51 = vunpack.c.l.s8.bf16 %v814_v47 }
 0x389   : > { %3545 = vmatpush1.bf16.msra.mxu0 %v1847_v56  ;;  %3382 = vmatprep.subr.bf16.mxu1 %v1868_v60  ;;  %v811_v56 = vld [vmem:[%s5389_s21 + $0x1020] sm:$0xff]  ;;  %v813_v60 = vld [vmem:[%s5389_s21 + $0x1030] sm:$0xff] }
 0x38a   : > { %3546 = vmatprep.subr.bf16.mxu0 %v1870_v61  ;;  %v2021_v61 = vunpack.c.l.s8.bf16 %v811_v56  ;;  %v2023_v62 = vunpack.c.l.s8.bf16 %v813_v60  ;;  %v2045_v4 = vunpack.c.h.s8.bf16 %v813_v60  ;;  %v900_v60 = vld [vmem:[%s5389_s21 + $0x12e8] sm:$0xff] }
 0x38c   : > { %3383 = vmatpush1.bf16.msra.mxu1 %v1867_v1  ;;  %v2046_v1 = vunpack.c.h.s8.bf16 %v814_v47 }
 0x38d   : > { %3547 = vmatpush1.bf16.msra.mxu0 %v1869_v46  ;;  %3384 = vmatprep.subr.bf16.mxu1 %v1890_v2  ;;  %v834_v46 = vld [vmem:[%s5389_s21 + $0x10d8] sm:$0xff]  ;;  %v836_v2 = vld [vmem:[%s5389_s21 + $0x10e8] sm:$0xff] }
 0x38e   : > { %3548 = vmatprep.subr.bf16.mxu0 %v1892_v3  ;;  %v2043_v3 = vunpack.c.h.s8.bf16 %v811_v56  ;;  %v2066_v5 = vunpack.c.l.s8.bf16 %v834_v46  ;;  %v2088_v8 = vunpack.c.h.s8.bf16 %v834_v46  ;;  %v4409_v56 = vld [vmem:[%s5658_s26 + $0x8] sm:$0xff] }
 0x390   : > { %3385 = vmatpush1.bf16.msra.mxu1 %v1889_v6  ;;  %v2068_v6 = vunpack.c.l.s8.bf16 %v836_v2 }
 0x391   : > { %3549 = vmatpush1.bf16.msra.mxu0 %v1891_v7  ;;  %3386 = vmatprep.subr.bf16.mxu1 %v1912_v20  ;;  %v833_v7 = vld [vmem:[%s5389_s21 + $0x10d0] sm:$0xff]  ;;  %v835_v20 = vld [vmem:[%s5389_s21 + $0x10e0] sm:$0xff] }
 0x392   : > { %3550 = vmatprep.subr.bf16.mxu0 %v1914_v21  ;;  %v2065_v21 = vunpack.c.l.s8.bf16 %v833_v7  ;;  %v2067_v25 = vunpack.c.l.s8.bf16 %v835_v20  ;;  %v2089_v13 = vunpack.c.h.s8.bf16 %v835_v20 }
 0x394   : > { %3387 = vmatpush1.bf16.msra.mxu1 %v1911_v9  ;;  %v2090_v9 = vunpack.c.h.s8.bf16 %v836_v2 }
 0x395   : > { %3551 = vmatpush1.bf16.msra.mxu0 %v1913_v10  ;;  %3388 = vmatprep.subr.bf16.mxu1 %v1934_v11  ;;  %v856_v10 = vld [vmem:[%s5389_s21 + $0x1188] sm:$0xff]  ;;  %v858_v11 = vld [vmem:[%s5389_s21 + $0x1198] sm:$0xff] }
 0x396   : > { %3552 = vmatprep.subr.bf16.mxu0 %v1936_v12  ;;  %v2087_v12 = vunpack.c.h.s8.bf16 %v833_v7  ;;  %v2110_v14 = vunpack.c.l.s8.bf16 %v856_v10  ;;  %v2132_v30 = vunpack.c.h.s8.bf16 %v856_v10  ;;  %v2198_v7 = vunpack.c.l.s8.bf16 %v900_v60 }
 0x398   : > { %3389 = vmatpush1.bf16.msra.mxu1 %v1933_v15  ;;  %v2112_v15 = vunpack.c.l.s8.bf16 %v858_v11 }
 0x399   : > { %3553 = vmatpush1.bf16.msra.mxu0 %v1935_v16  ;;  %3390 = vmatprep.subr.bf16.mxu1 %v1956_v23  ;;  %v855_v16 = vld [vmem:[%s5389_s21 + $0x1180] sm:$0xff]  ;;  %v857_v23 = vld [vmem:[%s5389_s21 + $0x1190] sm:$0xff] }
 0x39a   : > { %3554 = vmatprep.subr.bf16.mxu0 %v1958_v24  ;;  %v2109_v24 = vunpack.c.l.s8.bf16 %v855_v16  ;;  %v2111_v29 = vunpack.c.l.s8.bf16 %v857_v23  ;;  %v2133_v38 = vunpack.c.h.s8.bf16 %v857_v23 }
 0x39c   : > { %3391 = vmatpush1.bf16.msra.mxu1 %v1955_v31  ;;  %v2134_v31 = vunpack.c.h.s8.bf16 %v858_v11  ;;  %v4453_v11 = vrot.slane %v4409_v56, %v5652_v22 }
 0x39d   : > { %3555 = vmatpush1.bf16.msra.mxu0 %v1957_v32  ;;  %3392 = vmatprep.subr.bf16.mxu1 %v1978_v33  ;;  %v878_v32 = vld [vmem:[%s5389_s21 + $0x1238] sm:$0xff]  ;;  %v880_v33 = vld [vmem:[%s5389_s21 + $0x1248] sm:$0xff] }
 0x39e   : > { %3556 = vmatprep.subr.bf16.mxu0 %v1980_v34  ;;  %v2131_v34 = vunpack.c.h.s8.bf16 %v855_v16  ;;  %v2154_v39 = vunpack.c.l.s8.bf16 %v878_v32 }
 0x3a0   : > { %3393 = vmatpush1.bf16.msra.mxu1 %v1977_v40  ;;  %v2156_v40 = vunpack.c.l.s8.bf16 %v880_v33 }
 0x3a1   : > { %3557 = vmatpush1.bf16.msra.mxu0 %v1979_v42  ;;  %3394 = vmatprep.subr.bf16.mxu1 %v2000_v43  ;;  %v877_v42 = vld [vmem:[%s5389_s21 + $0x1230] sm:$0xff]  ;;  %v879_v43 = vld [vmem:[%s5389_s21 + $0x1240] sm:$0xff] }
 0x3a2   : > { %3558 = vmatprep.subr.bf16.mxu0 %v2002_v44  ;;  %v6004_v44 = vsub.s32 6, %v5413_v26  ;;  %v2153_v45 = vunpack.c.l.s8.bf16 %v877_v42  ;;  %v2155_v47 = vunpack.c.l.s8.bf16 %v879_v43  ;;  %v2175_v2 = vunpack.c.h.s8.bf16 %v877_v42 }
 0x3a4   : > { %3395 = vmatpush1.bf16.msra.mxu1 %v1999_v48  ;;  %v4271_v48 = vld [vmem:[%s5399_s14 + $0x8] sm:$0xff] }
 0x3a5   : > { %3559 = vmatpush1.bf16.msra.mxu0 %v2001_v49  ;;  %3396 = vmatprep.subr.bf16.mxu1 %v2022_v50  ;;  %v6008_v49 = vsub.s32 7, %v5413_v26  ;;  %v2176_v50 = vunpack.c.h.s8.bf16 %v878_v32  ;;  %v4315_v46 = vrot.slane %v4271_v48, %v5652_v22 }
 0x3a6   : > { %3560 = vmatprep.subr.bf16.mxu0 %v2024_v51  ;;  %v2178_v51 = vunpack.c.h.s8.bf16 %v880_v33 }
 0x3a8   : > { %3397 = vmatpush1.bf16.msra.mxu1 %v2021_v61  ;;  %v902_v61 = vld [vmem:[%s5389_s21 + $0x12f8] sm:$0xff] }
 0x3a9   : > { %3561 = vmatpush1.bf16.msra.mxu0 %v2023_v62  ;;  %3398 = vmatprep.subr.bf16.mxu1 %v2044_v0  ;;  %v5056_v62 = vld [vmem:[%s5399_s14] sm:$0xff]  ;;  %v2200_v20 = vunpack.c.l.s8.bf16 %v902_v61 }
 0x3aa   : > { %3562 = vmatprep.subr.bf16.mxu0 %v2046_v1  ;;  %v4303_v0 = vrot.slane %v5056_v62, %v6004_v44  ;;  %v4311_v1 = vrot.slane %v4271_v48, %v5648_v18  ;;  %v4307_v26 = vrot.slane %v5056_v62, %v6008_v49 }
 0x3ac   : > { %3399 = vmatpush1.bf16.msra.mxu1 %v2043_v3  ;;  %v2177_v3 = vunpack.c.h.s8.bf16 %v879_v43 }
 0x3ad   : > { %3563 = vmatpush1.bf16.msra.mxu0 %v2045_v4  ;;  %3409 = vmatprep.subr.bf16.mxu1 %v2066_v5  ;;  %v5057_v4 = vld [vmem:[%s5658_s26] sm:$0xff] }
 0x3ae   : > { %3573 = vmatprep.subr.bf16.mxu0 %v2068_v6  ;;  %v4441_v5 = vrot.slane %v5057_v4, %v6004_v44  ;;  %v4449_v6 = vrot.slane %v4409_v56, %v5648_v18  ;;  %v4445_v10 = vrot.slane %v5057_v4, %v6008_v49 }
 0x3af   : > { %3401 = vmatmul.mubr.bf16.vlgmr.msra.gmra.mrb[12].mxu1 %v5473_v59 }
 0x3b0   : > { %3565 = vmatmul.mubr.bf16.vlgmr.msra.gmra.mrb[12].mxu0 %v5473_v59  ;;  %3410 = vmatpush1.bf16.msra.mxu1 %v2065_v21  ;;  %v899_v21 = vld [vmem:[%s5389_s21 + $0x12e0] sm:$0xff] }
 0x3b1   : > { %3574 = vmatpush1.bf16.msra.mxu0 %v2067_v25  ;;  %3411 = vmatprep.subr.bf16.mxu1 %v2088_v8  ;;  %v901_v25 = vld [vmem:[%s5389_s21 + $0x12f0] sm:$0xff]  ;;  %v2219_v48 = vunpack.c.h.s8.bf16 %v899_v21 }
 0x3b2   : > { %3575 = vmatprep.subr.bf16.mxu0 %v2090_v9  ;;  %3441 = vmatprep.mubr.bf16.mxu1 %v5483_v35 }
 0x3b3   : > { %3605 = vmatprep.mubr.bf16.mxu0 %v5483_v35 }
 0x3b4   : > { %3412 = vmatpush1.bf16.msra.mxu1 %v2087_v12 }
 0x3b5   : > { %3576 = vmatpush1.bf16.msra.mxu0 %v2089_v13  ;;  %3413 = vmatprep.subr.bf16.mxu1 %v2110_v14 }
 0x3b6   : > { %3577 = vmatprep.subr.bf16.mxu0 %v2112_v15 }
 0x3b8   : > { %3414 = vmatpush1.bf16.msra.mxu1 %v2109_v24 }
 0x3b9   : > { %3578 = vmatpush1.bf16.msra.mxu0 %v2111_v29  ;;  %3415 = vmatprep.subr.bf16.mxu1 %v2132_v30  ;;  %v2197_v30 = vunpack.c.l.s8.bf16 %v899_v21  ;;  %v945_v21 = vld [vmem:[%s5389_s21 + $0x1450] sm:$0xff] }
 0x3ba   : > { %3579 = vmatprep.subr.bf16.mxu0 %v2134_v31  ;;  %v2199_v31 = vunpack.c.l.s8.bf16 %v901_v25 }
 0x3bc   : > { %3416 = vmatpush1.bf16.msra.mxu1 %v2131_v34 }
 0x3bd   : > { %3580 = vmatpush1.bf16.msra.mxu0 %v2133_v38  ;;  %3417 = vmatprep.subr.bf16.mxu1 %v2154_v39  ;;  %v2220_v39 = vunpack.c.h.s8.bf16 %v900_v60  ;;  %v921_v60 = vld [vmem:[%s5389_s21 + $0x1390] sm:$0xff] }
 0x3be   : > { %3581 = vmatprep.subr.bf16.mxu0 %v2156_v40  ;;  %v2222_v40 = vunpack.c.h.s8.bf16 %v902_v61  ;;  %v923_v61 = vld [vmem:[%s5389_s21 + $0x13a0] sm:$0xff]  ;;  %v2241_v62 = vunpack.c.l.s8.bf16 %v921_v60 }
 0x3bf   : > { %v2265_v4 = vunpack.c.h.s8.bf16 %v923_v61 }
 0x3c0   : > { %3418 = vmatpush1.bf16.msra.mxu1 %v2153_v45  ;;  %v922_v45 = vld [vmem:[%s5389_s21 + $0x1398] sm:$0xff] }
 0x3c1   : > { %3582 = vmatpush1.bf16.msra.mxu0 %v2155_v47  ;;  %3419 = vmatprep.subr.bf16.mxu1 %v2176_v50  ;;  %v924_v47 = vld [vmem:[%s5389_s21 + $0x13a8] sm:$0xff]  ;;  %v2221_v50 = vunpack.c.h.s8.bf16 %v901_v25 }
 0x3c2   : > { %3583 = vmatprep.subr.bf16.mxu0 %v2178_v51  ;;  %v3115_v8 = vpop.f32.mrb[8].mxu1  ;;  %v2242_v51 = vunpack.c.l.s8.bf16 %v922_v45  ;;  %v2244_v56 = vunpack.c.l.s8.bf16 %v924_v47 }
 0x3c3   : > { %v3279_v9 = vpop.f32.mrb[8].mxu0  ;;  %v4392_v12 = vmul.f32 %v4303_v0, %v3115_v8  ;;  %v3117_v14 = vpop.f32.mrb[9].mxu1  ;;  %v2243_v0 = vunpack.c.l.s8.bf16 %v923_v61 }
 0x3c4   : > { %v4394_v13 = vmul.f32 %v4311_v1, %v3279_v9  ;;  %v3281_v15 = vpop.f32.mrb[9].mxu0  ;;  %v4393_v16 = vmul.f32 %v4307_v26, %v3117_v14  ;;  %v3119_v24 = vpop.f32.mrb[10].mxu1  ;;  %3420 = vmatpush1.bf16.msra.mxu1 %v2175_v2  ;;  %v2264_v1 = vunpack.c.h.s8.bf16 %v922_v45  ;;  %v2266_v26 = vunpack.c.h.s8.bf16 %v924_v47  ;;  %v946_v2 = vld [vmem:[%s5389_s21 + $0x1458] sm:$0xff] }
 0x3c5   : > { %v4395_v23 = vmul.f32 %v4315_v46, %v3281_v15  ;;  %v3283_v29 = vpop.f32.mrb[10].mxu0  ;;  %3584 = vmatpush1.bf16.msra.mxu0 %v2177_v3  ;;  %v4530_v32 = vadd.f32 %v4441_v5, %v4392_v12  ;;  %v3120_v34 = vpop.f32.mrb[11].mxu1  ;;  %3421 = vmatprep.subr.bf16.mxu1 %v2198_v7  ;;  %v944_v46 = vld [vmem:[%s5389_s21 + $0x1448] sm:$0xff]  ;;  %v2263_v3 = vunpack.c.h.s8.bf16 %v921_v60  ;;  %v2288_v7 = vunpack.c.l.s8.bf16 %v946_v2  ;;  %v966_v24 = vld [vmem:[%s5389_s21 + $0x14f8] sm:$0xff] }
 0x3c6   : > { %v4532_v33 = vadd.f32 %v4449_v6, %v4394_v13  ;;  %v3284_v38 = vpop.f32.mrb[11].mxu0  ;;  %3585 = vmatprep.subr.bf16.mxu0 %v2200_v20  ;;  %v4531_v42 = vadd.f32 %v4445_v10, %v4393_v16  ;;  %v2286_v6 = vunpack.c.l.s8.bf16 %v944_v46  ;;  %v943_v20 = vld [vmem:[%s5389_s21 + $0x1440] sm:$0xff]  ;;  %v2287_v12 = vunpack.c.l.s8.bf16 %v945_v21  ;;  %v968_v29 = vld [vmem:[%s5389_s21 + $0x1508] sm:$0xff] }
 0x3c7   : > { %v4533_v43 = vadd.f32 %v4453_v11, %v4395_v23  ;;  %5022 = vtanh.f32 %v4530_v32  ;;  %v2285_v11 = vunpack.c.l.s8.bf16 %v943_v20  ;;  %v2308_v14 = vunpack.c.h.s8.bf16 %v944_v46  ;;  %v965_v38 = vld [vmem:[%s5389_s21 + $0x14f0] sm:$0xff] }
 0x3c8   : > { %5024 = vtanh.f32 %v4532_v33  ;;  %3422 = vmatpush1.bf16.msra.mxu1 %v2197_v30  ;;  %v2310_v15 = vunpack.c.h.s8.bf16 %v946_v2  ;;  %v4615_v16 = vrot.slane %v4607_v63, %v5853_v54  ;;  %v2309_v32 = vunpack.c.h.s8.bf16 %v945_v21 }
 0x3c9   : > { %3586 = vmatpush1.bf16.msra.mxu0 %v2199_v31  ;;  %5026 = vtanh.f32 %v4531_v42  ;;  %3423 = vmatprep.subr.bf16.mxu1 %v2220_v39  ;;  %v2307_v31 = vunpack.c.h.s8.bf16 %v943_v20  ;;  %v2330_v33 = vunpack.c.l.s8.bf16 %v966_v24  ;;  %v2332_v34 = vunpack.c.l.s8.bf16 %v968_v29  ;;  %v967_v39 = vld [vmem:[%s5389_s21 + $0x1500] sm:$0xff]  ;;  %v988_v42 = vld [vmem:[%s5389_s21 + $0x15a8] sm:$0xff] }
 0x3ca   : > { %3587 = vmatprep.subr.bf16.mxu0 %v2222_v40  ;;  %5028 = vtanh.f32 %v4533_v43  ;;  %v2329_v52 = vunpack.c.l.s8.bf16 %v965_v38  ;;  %v2331_v57 = vunpack.c.l.s8.bf16 %v967_v39  ;;  %v2352_v63 = vunpack.c.h.s8.bf16 %v966_v24  ;;  %v990_v43 = vld [vmem:[%s5389_s21 + $0x15b8] sm:$0xff]  ;;  %v333_v24 = vld [vmem:[%s5389_s21 + $0x130] sm:$0xff] }
 0x3cb   : > { %v2354_v40 = vunpack.c.h.s8.bf16 %v968_v29  ;;  %v2351_v45 = vunpack.c.h.s8.bf16 %v965_v38  ;;  %v2353_v47 = vunpack.c.h.s8.bf16 %v967_v39  ;;  %v1081_v39 = vunpack.c.h.s8.bf16 %v333_v24 }
 0x3cc   : > { %3424 = vmatpush1.bf16.msra.mxu1 %v2219_v48  ;;  %v2374_v48 = vunpack.c.l.s8.bf16 %v988_v42 }
 0x3cd   : > { %3588 = vmatpush1.bf16.msra.mxu0 %v2221_v50  ;;  %3425 = vmatprep.subr.bf16.mxu1 %v2242_v51  ;;  %v2376_v50 = vunpack.c.l.s8.bf16 %v990_v43  ;;  %v987_v51 = vld [vmem:[%s5389_s21 + $0x15a0] sm:$0xff] }
 0x3ce   : > { %3589 = vmatprep.subr.bf16.mxu0 %v2244_v56  ;;  %v989_v56 = vld [vmem:[%s5389_s21 + $0x15b0] sm:$0xff]  ;;  %v2373_v60 = vunpack.c.l.s8.bf16 %v987_v51  ;;  %v2395_v46 = vunpack.c.h.s8.bf16 %v987_v51 }
 0x3cf   : > { %v2375_v61 = vunpack.c.l.s8.bf16 %v989_v56  ;;  %v2397_v2 = vunpack.c.h.s8.bf16 %v989_v56 }
 0x3d0   : > { %3426 = vmatpush1.bf16.msra.mxu1 %v2241_v62  ;;  %v2396_v62 = vunpack.c.h.s8.bf16 %v988_v42 }
 0x3d1   : > { %3590 = vmatpush1.bf16.msra.mxu0 %v2243_v0  ;;  %v5023_v5 = vpop.eup %5022  ;;  %3427 = vmatprep.subr.bf16.mxu1 %v2264_v1  ;;  %v2398_v0 = vunpack.c.h.s8.bf16 %v990_v43  ;;  %v310_v1 = vld [vmem:[%s5389_s21 + $0x78] sm:$0xff] }
 0x3d2   : > { %3591 = vmatprep.subr.bf16.mxu0 %v2266_v26  ;;  %v6033_v25 = vpop.eup %5024  ;;  %v312_v26 = vld [vmem:[%s5389_s21 + $0x88] sm:$0xff]  ;;  %v1036_v21 = vunpack.c.h.s8.bf16 %v310_v1 }
 0x3d3   : > { %v5027_v8 = vpop.eup %5026 }
 0x3d4   : > { %v6035_v9 = vpop.eup %5028  ;;  %v4608_v10 = vcombine.low %v5023_v5, %v5027_v8  ;;  %3428 = vmatpush1.bf16.msra.mxu1 %v2263_v3  ;;  %v1014_v3 = vunpack.c.l.s8.bf16 %v310_v1  ;;  %v309_v5 = vld [vmem:[%s5389_s21 + $0x70] sm:$0xff]  ;;  %v1038_v8 = vunpack.c.h.s8.bf16 %v312_v26 }
 0x3d5   : > { %3592 = vmatpush1.bf16.msra.mxu0 %v2265_v4  ;;  %v4624_v13 = vcombine.low %v6033_v25, %v6035_v9  ;;  %3429 = vmatprep.subr.bf16.mxu1 %v2286_v6  ;;  %v1016_v4 = vunpack.c.l.s8.bf16 %v312_v26  ;;  %v311_v6 = vld [vmem:[%s5389_s21 + $0x80] sm:$0xff] }
 0x3d6   : > { %3593 = vmatprep.subr.bf16.mxu0 %v2288_v7  ;;  %v4622_v23 = vrot.slane %v4608_v10, %v5853_v54  ;;  %v1013_v7 = vunpack.c.l.s8.bf16 %v309_v5  ;;  %v1015_v20 = vunpack.c.l.s8.bf16 %v311_v6  ;;  %v332_v10 = vld [vmem:[%s5389_s21 + $0x128] sm:$0xff] }
 0x3d8   : > { %v4623_v30 = vcombine.low %v4615_v16, %v4622_v23  ;;  %3430 = vmatpush1.bf16.msra.mxu1 %v2285_v11  ;;  %v334_v11 = vld [vmem:[%s5389_s21 + $0x138] sm:$0xff]  ;;  %v331_v23 = vld [vmem:[%s5389_s21 + $0x120] sm:$0xff] }
 0x3d9   : > { %3594 = vmatpush1.bf16.msra.mxu0 %v2287_v12  ;;  %3431 = vmatprep.subr.bf16.mxu1 %v2308_v14  ;;  %v1035_v12 = vunpack.c.h.s8.bf16 %v309_v5  ;;  %v1037_v14 = vunpack.c.h.s8.bf16 %v311_v6  ;;  %v1060_v16 = vunpack.c.l.s8.bf16 %v334_v11  ;;  %v1057_v29 = vunpack.c.l.s8.bf16 %v331_v23 }
 0x3da   : > { %3595 = vmatprep.subr.bf16.mxu0 %v2310_v15  ;;  %4690 = vst [vmem:[%s5870_s29 + $0x8] sm:$0xff] %v4623_v30  ;;  %v1058_v15 = vunpack.c.l.s8.bf16 %v332_v10  ;;  %v1059_v30 = vunpack.c.l.s8.bf16 %v333_v24  ;;  %v1079_v38 = vunpack.c.h.s8.bf16 %v331_v23 }
 0x3dc   : > { %3432 = vmatpush1.bf16.msra.mxu1 %v2307_v31  ;;  %v1080_v31 = vunpack.c.h.s8.bf16 %v332_v10 }
 0x3dd   : > { %3596 = vmatpush1.bf16.msra.mxu0 %v2309_v32  ;;  %3433 = vmatprep.subr.bf16.mxu1 %v2330_v33  ;;  %v1082_v32 = vunpack.c.h.s8.bf16 %v334_v11  ;;  %v354_v33 = vld [vmem:[%s5389_s21 + $0x1d8] sm:$0xff] }
 0x3de   : > { %3597 = vmatprep.subr.bf16.mxu0 %v2332_v34  ;;  %v356_v34 = vld [vmem:[%s5389_s21 + $0x1e8] sm:$0xff] }
 0x3e0   : > { %3434 = vmatpush1.bf16.msra.mxu1 %v2329_v52  ;;  %v1102_v52 = vunpack.c.l.s8.bf16 %v354_v33 }
 0x3e1   : > { %3598 = vmatpush1.bf16.msra.mxu0 %v2331_v57  ;;  %3435 = vmatprep.subr.bf16.mxu1 %v2352_v63  ;;  %v1104_v57 = vunpack.c.l.s8.bf16 %v356_v34  ;;  %v353_v63 = vld [vmem:[%s5389_s21 + $0x1d0] sm:$0xff] }
 0x3e2   : > { %3599 = vmatprep.subr.bf16.mxu0 %v2354_v40  ;;  %v355_v40 = vld [vmem:[%s5389_s21 + $0x1e0] sm:$0xff]  ;;  %v1101_v42 = vunpack.c.l.s8.bf16 %v353_v63  ;;  %v1123_v51 = vunpack.c.h.s8.bf16 %v353_v63 }
 0x3e3   : > { %v1103_v43 = vunpack.c.l.s8.bf16 %v355_v40  ;;  %v1125_v56 = vunpack.c.h.s8.bf16 %v355_v40 }
 0x3e4   : > { %3436 = vmatpush1.bf16.msra.mxu1 %v2351_v45  ;;  %v1124_v45 = vunpack.c.h.s8.bf16 %v354_v33 }
 0x3e5   : > { %3600 = vmatpush1.bf16.msra.mxu0 %v2353_v47  ;;  %3437 = vmatprep.subr.bf16.mxu1 %v2374_v48  ;;  %v1126_v47 = vunpack.c.h.s8.bf16 %v356_v34  ;;  %v376_v48 = vld [vmem:[%s5389_s21 + $0x288] sm:$0xff] }
 0x3e6   : > { %3601 = vmatprep.subr.bf16.mxu0 %v2376_v50  ;;  %v378_v50 = vld [vmem:[%s5389_s21 + $0x298] sm:$0xff] }
 0x3e8   : > { %3438 = vmatpush1.bf16.msra.mxu1 %v2373_v60  ;;  %v1146_v60 = vunpack.c.l.s8.bf16 %v376_v48 }
 0x3e9   : > { %3602 = vmatpush1.bf16.msra.mxu0 %v2375_v61  ;;  %3439 = vmatprep.subr.bf16.mxu1 %v2396_v62  ;;  %v1148_v61 = vunpack.c.l.s8.bf16 %v378_v50  ;;  %v375_v62 = vld [vmem:[%s5389_s21 + $0x280] sm:$0xff] }
 0x3ea   : > { %3603 = vmatprep.subr.bf16.mxu0 %v2398_v0  ;;  %v377_v0 = vld [vmem:[%s5389_s21 + $0x290] sm:$0xff]  ;;  %v1145_v1 = vunpack.c.l.s8.bf16 %v375_v62  ;;  %v1167_v5 = vunpack.c.h.s8.bf16 %v375_v62 }
 0x3eb   : > { %v1147_v26 = vunpack.c.l.s8.bf16 %v377_v0  ;;  %v1169_v6 = vunpack.c.h.s8.bf16 %v377_v0 }
 0x3ec   : > { %3440 = vmatpush1.bf16.msra.mxu1 %v2395_v46  ;;  %v1168_v46 = vunpack.c.h.s8.bf16 %v376_v48 }
 0x3ed   : > { %3604 = vmatpush1.bf16.msra.mxu0 %v2397_v2  ;;  %3614 = vmatprep.subr.bf16.mxu1 %v1014_v3  ;;  %v1170_v2 = vunpack.c.h.s8.bf16 %v378_v50  ;;  %v398_v3 = vld [vmem:[%s5389_s21 + $0x338] sm:$0xff] }
 0x3ee   : > { %3778 = vmatprep.subr.bf16.mxu0 %v1016_v4  ;;  %v400_v4 = vld [vmem:[%s5389_s21 + $0x348] sm:$0xff] }
 0x3ef   : > { %3442 = vmatmul.mubr.bf16.vlgmr.msra.gmra.mrb[12].mxu1 %v5525_v37 }
 0x3f0   : > { %3606 = vmatmul.mubr.bf16.vlgmr.msra.gmra.mrb[12].mxu0 %v5525_v37  ;;  %3615 = vmatpush1.bf16.msra.mxu1 %v1013_v7  ;;  %v1190_v7 = vunpack.c.l.s8.bf16 %v398_v3 }
 0x3f1   : > { %3779 = vmatpush1.bf16.msra.mxu0 %v1015_v20  ;;  %3616 = vmatprep.subr.bf16.mxu1 %v1036_v21  ;;  %v1192_v20 = vunpack.c.l.s8.bf16 %v400_v4  ;;  %v397_v21 = vld [vmem:[%s5389_s21 + $0x330] sm:$0xff] }
 0x3f2   : > { %3780 = vmatprep.subr.bf16.mxu0 %v1038_v8  ;;  %3646 = vmatprep.mubr.bf16.mxu1 %v5438_v53  ;;  %v399_v8 = vld [vmem:[%s5389_s21 + $0x340] sm:$0xff]  ;;  %v1189_v10 = vunpack.c.l.s8.bf16 %v397_v21  ;;  %v1211_v23 = vunpack.c.h.s8.bf16 %v397_v21 }
 0x3f3   : > { %3810 = vmatprep.mubr.bf16.mxu0 %v5438_v53  ;;  %v1191_v11 = vunpack.c.l.s8.bf16 %v399_v8  ;;  %v1213_v24 = vunpack.c.h.s8.bf16 %v399_v8 }
 0x3f4   : > { %3617 = vmatpush1.bf16.msra.mxu1 %v1035_v12  ;;  %v1212_v12 = vunpack.c.h.s8.bf16 %v398_v3 }
 0x3f5   : > { %3781 = vmatpush1.bf16.msra.mxu0 %v1037_v14  ;;  %3618 = vmatprep.subr.bf16.mxu1 %v1058_v15  ;;  %v1214_v14 = vunpack.c.h.s8.bf16 %v400_v4  ;;  %v420_v15 = vld [vmem:[%s5389_s21 + $0x3e8] sm:$0xff] }
 0x3f6   : > { %3782 = vmatprep.subr.bf16.mxu0 %v1060_v16  ;;  %v422_v16 = vld [vmem:[%s5389_s21 + $0x3f8] sm:$0xff] }
 0x3f8   : > { %3619 = vmatpush1.bf16.msra.mxu1 %v1057_v29  ;;  %v1234_v29 = vunpack.c.l.s8.bf16 %v420_v15 }
 0x3f9   : > { %3783 = vmatpush1.bf16.msra.mxu0 %v1059_v30  ;;  %3620 = vmatprep.subr.bf16.mxu1 %v1080_v31  ;;  %v1236_v30 = vunpack.c.l.s8.bf16 %v422_v16  ;;  %v419_v31 = vld [vmem:[%s5389_s21 + $0x3e0] sm:$0xff] }
 0x3fa   : > { %3784 = vmatprep.subr.bf16.mxu0 %v1082_v32  ;;  %v421_v32 = vld [vmem:[%s5389_s21 + $0x3f0] sm:$0xff]  ;;  %v1233_v33 = vunpack.c.l.s8.bf16 %v419_v31  ;;  %v1255_v63 = vunpack.c.h.s8.bf16 %v419_v31 }
 0x3fb   : > { %v1235_v34 = vunpack.c.l.s8.bf16 %v421_v32  ;;  %v1257_v40 = vunpack.c.h.s8.bf16 %v421_v32 }
 0x3fc   : > { %3621 = vmatpush1.bf16.msra.mxu1 %v1079_v38  ;;  %v1256_v38 = vunpack.c.h.s8.bf16 %v420_v15 }
 0x3fd   : > { %3785 = vmatpush1.bf16.msra.mxu0 %v1081_v39  ;;  %3622 = vmatprep.subr.bf16.mxu1 %v1102_v52  ;;  %v1258_v39 = vunpack.c.h.s8.bf16 %v422_v16  ;;  %v442_v52 = vld [vmem:[%s5389_s21 + $0x498] sm:$0xff] }
 0x3fe   : > { %3786 = vmatprep.subr.bf16.mxu0 %v1104_v57  ;;  %v444_v57 = vld [vmem:[%s5389_s21 + $0x4a8] sm:$0xff] }
 0x400   : > { %3623 = vmatpush1.bf16.msra.mxu1 %v1101_v42  ;;  %v1278_v42 = vunpack.c.l.s8.bf16 %v442_v52 }
 0x401   : > { %3787 = vmatpush1.bf16.msra.mxu0 %v1103_v43  ;;  %3624 = vmatprep.subr.bf16.mxu1 %v1124_v45  ;;  %v1280_v43 = vunpack.c.l.s8.bf16 %v444_v57  ;;  %v441_v45 = vld [vmem:[%s5389_s21 + $0x490] sm:$0xff] }
 0x402   : > { %3788 = vmatprep.subr.bf16.mxu0 %v1126_v47  ;;  %v443_v47 = vld [vmem:[%s5389_s21 + $0x4a0] sm:$0xff]  ;;  %v1277_v48 = vunpack.c.l.s8.bf16 %v441_v45  ;;  %v1299_v62 = vunpack.c.h.s8.bf16 %v441_v45 }
 0x403   : > { %v1279_v50 = vunpack.c.l.s8.bf16 %v443_v47  ;;  %v1301_v0 = vunpack.c.h.s8.bf16 %v443_v47 }
 0x404   : > { %3625 = vmatpush1.bf16.msra.mxu1 %v1123_v51  ;;  %v1300_v51 = vunpack.c.h.s8.bf16 %v442_v52 }
 0x405   : > { %3789 = vmatpush1.bf16.msra.mxu0 %v1125_v56  ;;  %3626 = vmatprep.subr.bf16.mxu1 %v1146_v60  ;;  %v1302_v56 = vunpack.c.h.s8.bf16 %v444_v57  ;;  %v464_v60 = vld [vmem:[%s5389_s21 + $0x548] sm:$0xff] }
 0x406   : > { %3790 = vmatprep.subr.bf16.mxu0 %v1148_v61  ;;  %v466_v61 = vld [vmem:[%s5389_s21 + $0x558] sm:$0xff] }
 0x408   : > { %3627 = vmatpush1.bf16.msra.mxu1 %v1145_v1  ;;  %v1322_v1 = vunpack.c.l.s8.bf16 %v464_v60 }
 0x409   : > { %3791 = vmatpush1.bf16.msra.mxu0 %v1147_v26  ;;  %3628 = vmatprep.subr.bf16.mxu1 %v1168_v46  ;;  %v1324_v26 = vunpack.c.l.s8.bf16 %v466_v61  ;;  %v463_v46 = vld [vmem:[%s5389_s21 + $0x540] sm:$0xff] }
 0x40a   : > { %3792 = vmatprep.subr.bf16.mxu0 %v1170_v2  ;;  %v465_v2 = vld [vmem:[%s5389_s21 + $0x550] sm:$0xff]  ;;  %v1321_v3 = vunpack.c.l.s8.bf16 %v463_v46  ;;  %v1343_v21 = vunpack.c.h.s8.bf16 %v463_v46 }
 0x40b   : > { %v1323_v4 = vunpack.c.l.s8.bf16 %v465_v2  ;;  %v1345_v8 = vunpack.c.h.s8.bf16 %v465_v2 }
 0x40c   : > { %3629 = vmatpush1.bf16.msra.mxu1 %v1167_v5  ;;  %v1344_v5 = vunpack.c.h.s8.bf16 %v464_v60 }
 0x40d   : > { %3793 = vmatpush1.bf16.msra.mxu0 %v1169_v6  ;;  %3630 = vmatprep.subr.bf16.mxu1 %v1190_v7  ;;  %v1346_v6 = vunpack.c.h.s8.bf16 %v466_v61  ;;  %v486_v7 = vld [vmem:[%s5389_s21 + $0x5f8] sm:$0xff] }
 0x40e   : > { %3794 = vmatprep.subr.bf16.mxu0 %v1192_v20  ;;  %v488_v20 = vld [vmem:[%s5389_s21 + $0x608] sm:$0xff] }
 0x410   : > { %3631 = vmatpush1.bf16.msra.mxu1 %v1189_v10  ;;  %v1366_v10 = vunpack.c.l.s8.bf16 %v486_v7 }
 0x411   : > { %3795 = vmatpush1.bf16.msra.mxu0 %v1191_v11  ;;  %3632 = vmatprep.subr.bf16.mxu1 %v1212_v12  ;;  %v1368_v11 = vunpack.c.l.s8.bf16 %v488_v20  ;;  %v485_v12 = vld [vmem:[%s5389_s21 + $0x5f0] sm:$0xff] }
 0x412   : > { %3796 = vmatprep.subr.bf16.mxu0 %v1214_v14  ;;  %v487_v14 = vld [vmem:[%s5389_s21 + $0x600] sm:$0xff]  ;;  %v1365_v15 = vunpack.c.l.s8.bf16 %v485_v12  ;;  %v1387_v31 = vunpack.c.h.s8.bf16 %v485_v12 }
 0x413   : > { %v1367_v16 = vunpack.c.l.s8.bf16 %v487_v14  ;;  %v1389_v32 = vunpack.c.h.s8.bf16 %v487_v14 }
 0x414   : > { %3633 = vmatpush1.bf16.msra.mxu1 %v1211_v23  ;;  %v1388_v23 = vunpack.c.h.s8.bf16 %v486_v7 }
 0x415   : > { %3797 = vmatpush1.bf16.msra.mxu0 %v1213_v24  ;;  %3634 = vmatprep.subr.bf16.mxu1 %v1234_v29  ;;  %v1390_v24 = vunpack.c.h.s8.bf16 %v488_v20  ;;  %v508_v29 = vld [vmem:[%s5389_s21 + $0x6a8] sm:$0xff] }
 0x416   : > { %3798 = vmatprep.subr.bf16.mxu0 %v1236_v30  ;;  %v510_v30 = vld [vmem:[%s5389_s21 + $0x6b8] sm:$0xff] }
 0x418   : > { %3635 = vmatpush1.bf16.msra.mxu1 %v1233_v33  ;;  %v1410_v33 = vunpack.c.l.s8.bf16 %v508_v29 }
 0x419   : > { %3799 = vmatpush1.bf16.msra.mxu0 %v1235_v34  ;;  %3636 = vmatprep.subr.bf16.mxu1 %v1256_v38  ;;  %v1412_v34 = vunpack.c.l.s8.bf16 %v510_v30  ;;  %v507_v38 = vld [vmem:[%s5389_s21 + $0x6a0] sm:$0xff] }
 0x41a   : > { %3800 = vmatprep.subr.bf16.mxu0 %v1258_v39  ;;  %v509_v39 = vld [vmem:[%s5389_s21 + $0x6b0] sm:$0xff]  ;;  %v1409_v52 = vunpack.c.l.s8.bf16 %v507_v38  ;;  %v1431_v45 = vunpack.c.h.s8.bf16 %v507_v38 }
 0x41b   : > { %v1411_v57 = vunpack.c.l.s8.bf16 %v509_v39  ;;  %v1433_v47 = vunpack.c.h.s8.bf16 %v509_v39 }
 0x41c   : > { %3637 = vmatpush1.bf16.msra.mxu1 %v1255_v63  ;;  %v1432_v63 = vunpack.c.h.s8.bf16 %v508_v29 }
 0x41d   : > { %3801 = vmatpush1.bf16.msra.mxu0 %v1257_v40  ;;  %3638 = vmatprep.subr.bf16.mxu1 %v1278_v42  ;;  %v1434_v40 = vunpack.c.h.s8.bf16 %v510_v30  ;;  %v530_v42 = vld [vmem:[%s5389_s21 + $0x758] sm:$0xff] }
 0x41e   : > { %3802 = vmatprep.subr.bf16.mxu0 %v1280_v43  ;;  %v532_v43 = vld [vmem:[%s5389_s21 + $0x768] sm:$0xff] }
 0x420   : > { %3639 = vmatpush1.bf16.msra.mxu1 %v1277_v48  ;;  %v1454_v48 = vunpack.c.l.s8.bf16 %v530_v42 }
 0x421   : > { %3803 = vmatpush1.bf16.msra.mxu0 %v1279_v50  ;;  %3640 = vmatprep.subr.bf16.mxu1 %v1300_v51  ;;  %v1456_v50 = vunpack.c.l.s8.bf16 %v532_v43  ;;  %v529_v51 = vld [vmem:[%s5389_s21 + $0x750] sm:$0xff] }
 0x422   : > { %3804 = vmatprep.subr.bf16.mxu0 %v1302_v56  ;;  %v531_v56 = vld [vmem:[%s5389_s21 + $0x760] sm:$0xff]  ;;  %v1453_v60 = vunpack.c.l.s8.bf16 %v529_v51  ;;  %v1475_v46 = vunpack.c.h.s8.bf16 %v529_v51 }
 0x423   : > { %v1455_v61 = vunpack.c.l.s8.bf16 %v531_v56  ;;  %v1477_v2 = vunpack.c.h.s8.bf16 %v531_v56 }
 0x424   : > { %3641 = vmatpush1.bf16.msra.mxu1 %v1299_v62  ;;  %v1476_v62 = vunpack.c.h.s8.bf16 %v530_v42 }
 0x425   : > { %3805 = vmatpush1.bf16.msra.mxu0 %v1301_v0  ;;  %3642 = vmatprep.subr.bf16.mxu1 %v1322_v1  ;;  %v1478_v0 = vunpack.c.h.s8.bf16 %v532_v43  ;;  %v552_v1 = vld [vmem:[%s5389_s21 + $0x808] sm:$0xff] }
 0x426   : > { %3806 = vmatprep.subr.bf16.mxu0 %v1324_v26  ;;  %v554_v26 = vld [vmem:[%s5389_s21 + $0x818] sm:$0xff] }
 0x428   : > { %3643 = vmatpush1.bf16.msra.mxu1 %v1321_v3  ;;  %v1498_v3 = vunpack.c.l.s8.bf16 %v552_v1 }
 0x429   : > { %3807 = vmatpush1.bf16.msra.mxu0 %v1323_v4  ;;  %3644 = vmatprep.subr.bf16.mxu1 %v1344_v5  ;;  %v1500_v4 = vunpack.c.l.s8.bf16 %v554_v26  ;;  %v551_v5 = vld [vmem:[%s5389_s21 + $0x800] sm:$0xff] }
 0x42a   : > { %3808 = vmatprep.subr.bf16.mxu0 %v1346_v6  ;;  %v553_v6 = vld [vmem:[%s5389_s21 + $0x810] sm:$0xff]  ;;  %v1497_v7 = vunpack.c.l.s8.bf16 %v551_v5  ;;  %v1519_v12 = vunpack.c.h.s8.bf16 %v551_v5 }
 0x42b   : > { %v1499_v20 = vunpack.c.l.s8.bf16 %v553_v6  ;;  %v1521_v14 = vunpack.c.h.s8.bf16 %v553_v6 }
 0x42c   : > { %3645 = vmatpush1.bf16.msra.mxu1 %v1343_v21  ;;  %v1520_v21 = vunpack.c.h.s8.bf16 %v552_v1 }
 0x42d   : > { %3809 = vmatpush1.bf16.msra.mxu0 %v1345_v8  ;;  %3655 = vmatprep.subr.bf16.mxu1 %v1366_v10  ;;  %v1522_v8 = vunpack.c.h.s8.bf16 %v554_v26  ;;  %v574_v10 = vld [vmem:[%s5389_s21 + $0x8b8] sm:$0xff] }
 0x42e   : > { %3819 = vmatprep.subr.bf16.mxu0 %v1368_v11  ;;  %v576_v11 = vld [vmem:[%s5389_s21 + $0x8c8] sm:$0xff] }
 0x42f   : > { %3647 = vmatmul.mubr.bf16.vlgmr.msra.gmra.mrb[16].mxu1 %v5469_v58 }
 0x430   : > { %3811 = vmatmul.mubr.bf16.vlgmr.msra.gmra.mrb[16].mxu0 %v5469_v58  ;;  %3656 = vmatpush1.bf16.msra.mxu1 %v1365_v15  ;;  %v1542_v15 = vunpack.c.l.s8.bf16 %v574_v10 }
 0x431   : > { %3820 = vmatpush1.bf16.msra.mxu0 %v1367_v16  ;;  %3657 = vmatprep.subr.bf16.mxu1 %v1388_v23  ;;  %v1544_v16 = vunpack.c.l.s8.bf16 %v576_v11  ;;  %v573_v23 = vld [vmem:[%s5389_s21 + $0x8b0] sm:$0xff] }
 0x432   : > { %3821 = vmatprep.subr.bf16.mxu0 %v1390_v24  ;;  %3687 = vmatprep.mubr.bf16.mxu1 %v5479_v41  ;;  %v575_v24 = vld [vmem:[%s5389_s21 + $0x8c0] sm:$0xff]  ;;  %v1541_v29 = vunpack.c.l.s8.bf16 %v573_v23  ;;  %v1563_v38 = vunpack.c.h.s8.bf16 %v573_v23 }
 0x433   : > { %3851 = vmatprep.mubr.bf16.mxu0 %v5479_v41  ;;  %v1543_v30 = vunpack.c.l.s8.bf16 %v575_v24  ;;  %v1565_v39 = vunpack.c.h.s8.bf16 %v575_v24 }
 0x434   : > { %3658 = vmatpush1.bf16.msra.mxu1 %v1387_v31  ;;  %v1564_v31 = vunpack.c.h.s8.bf16 %v574_v10 }
 0x435   : > { %3822 = vmatpush1.bf16.msra.mxu0 %v1389_v32  ;;  %3659 = vmatprep.subr.bf16.mxu1 %v1410_v33  ;;  %v1566_v32 = vunpack.c.h.s8.bf16 %v576_v11  ;;  %v596_v33 = vld [vmem:[%s5389_s21 + $0x968] sm:$0xff] }
 0x436   : > { %3823 = vmatprep.subr.bf16.mxu0 %v1412_v34  ;;  %v598_v34 = vld [vmem:[%s5389_s21 + $0x978] sm:$0xff] }
 0x438   : > { %3660 = vmatpush1.bf16.msra.mxu1 %v1409_v52  ;;  %v1586_v52 = vunpack.c.l.s8.bf16 %v596_v33 }
 0x439   : > { %3824 = vmatpush1.bf16.msra.mxu0 %v1411_v57  ;;  %3661 = vmatprep.subr.bf16.mxu1 %v1432_v63  ;;  %v1588_v57 = vunpack.c.l.s8.bf16 %v598_v34  ;;  %v595_v63 = vld [vmem:[%s5389_s21 + $0x960] sm:$0xff] }
 0x43a   : > { %3825 = vmatprep.subr.bf16.mxu0 %v1434_v40  ;;  %v597_v40 = vld [vmem:[%s5389_s21 + $0x970] sm:$0xff]  ;;  %v1585_v42 = vunpack.c.l.s8.bf16 %v595_v63  ;;  %v1607_v51 = vunpack.c.h.s8.bf16 %v595_v63 }
 0x43b   : > { %v1587_v43 = vunpack.c.l.s8.bf16 %v597_v40  ;;  %v1609_v56 = vunpack.c.h.s8.bf16 %v597_v40 }
 0x43c   : > { %3662 = vmatpush1.bf16.msra.mxu1 %v1431_v45  ;;  %v1608_v45 = vunpack.c.h.s8.bf16 %v596_v33 }
 0x43d   : > { %3826 = vmatpush1.bf16.msra.mxu0 %v1433_v47  ;;  %3663 = vmatprep.subr.bf16.mxu1 %v1454_v48  ;;  %v1610_v47 = vunpack.c.h.s8.bf16 %v598_v34  ;;  %v618_v48 = vld [vmem:[%s5389_s21 + $0xa18] sm:$0xff] }
 0x43e   : > { %3827 = vmatprep.subr.bf16.mxu0 %v1456_v50  ;;  %v620_v50 = vld [vmem:[%s5389_s21 + $0xa28] sm:$0xff] }
 0x440   : > { %3664 = vmatpush1.bf16.msra.mxu1 %v1453_v60  ;;  %v1630_v60 = vunpack.c.l.s8.bf16 %v618_v48 }
 0x441   : > { %3828 = vmatpush1.bf16.msra.mxu0 %v1455_v61  ;;  %3665 = vmatprep.subr.bf16.mxu1 %v1476_v62  ;;  %v1632_v61 = vunpack.c.l.s8.bf16 %v620_v50  ;;  %v617_v62 = vld [vmem:[%s5389_s21 + $0xa10] sm:$0xff] }
 0x442   : > { %3829 = vmatprep.subr.bf16.mxu0 %v1478_v0  ;;  %v619_v0 = vld [vmem:[%s5389_s21 + $0xa20] sm:$0xff]  ;;  %v1629_v1 = vunpack.c.l.s8.bf16 %v617_v62  ;;  %v1651_v5 = vunpack.c.h.s8.bf16 %v617_v62 }
 0x443   : > { %v1631_v26 = vunpack.c.l.s8.bf16 %v619_v0  ;;  %v1653_v6 = vunpack.c.h.s8.bf16 %v619_v0 }
 0x444   : > { %3666 = vmatpush1.bf16.msra.mxu1 %v1475_v46  ;;  %v1652_v46 = vunpack.c.h.s8.bf16 %v618_v48 }
 0x445   : > { %3830 = vmatpush1.bf16.msra.mxu0 %v1477_v2  ;;  %3667 = vmatprep.subr.bf16.mxu1 %v1498_v3  ;;  %v1654_v2 = vunpack.c.h.s8.bf16 %v620_v50  ;;  %v640_v3 = vld [vmem:[%s5389_s21 + $0xac8] sm:$0xff] }
 0x446   : > { %3831 = vmatprep.subr.bf16.mxu0 %v1500_v4  ;;  %v642_v4 = vld [vmem:[%s5389_s21 + $0xad8] sm:$0xff] }
 0x448   : > { %3668 = vmatpush1.bf16.msra.mxu1 %v1497_v7  ;;  %v1674_v7 = vunpack.c.l.s8.bf16 %v640_v3 }
 0x449   : > { %3832 = vmatpush1.bf16.msra.mxu0 %v1499_v20  ;;  %3669 = vmatprep.subr.bf16.mxu1 %v1520_v21  ;;  %v1676_v20 = vunpack.c.l.s8.bf16 %v642_v4  ;;  %v639_v21 = vld [vmem:[%s5389_s21 + $0xac0] sm:$0xff] }
 0x44a   : > { %3833 = vmatprep.subr.bf16.mxu0 %v1522_v8  ;;  %v641_v8 = vld [vmem:[%s5389_s21 + $0xad0] sm:$0xff]  ;;  %v1673_v10 = vunpack.c.l.s8.bf16 %v639_v21  ;;  %v1695_v23 = vunpack.c.h.s8.bf16 %v639_v21 }
 0x44b   : > { %v1675_v11 = vunpack.c.l.s8.bf16 %v641_v8  ;;  %v1697_v24 = vunpack.c.h.s8.bf16 %v641_v8 }
 0x44c   : > { %3670 = vmatpush1.bf16.msra.mxu1 %v1519_v12  ;;  %v1696_v12 = vunpack.c.h.s8.bf16 %v640_v3 }
 0x44d   : > { %3834 = vmatpush1.bf16.msra.mxu0 %v1521_v14  ;;  %3671 = vmatprep.subr.bf16.mxu1 %v1542_v15  ;;  %v1698_v14 = vunpack.c.h.s8.bf16 %v642_v4  ;;  %v662_v15 = vld [vmem:[%s5389_s21 + $0xb78] sm:$0xff] }
 0x44e   : > { %3835 = vmatprep.subr.bf16.mxu0 %v1544_v16  ;;  %v664_v16 = vld [vmem:[%s5389_s21 + $0xb88] sm:$0xff] }
 0x450   : > { %3672 = vmatpush1.bf16.msra.mxu1 %v1541_v29  ;;  %v1718_v29 = vunpack.c.l.s8.bf16 %v662_v15 }
 0x451   : > { %3836 = vmatpush1.bf16.msra.mxu0 %v1543_v30  ;;  %3673 = vmatprep.subr.bf16.mxu1 %v1564_v31  ;;  %v1720_v30 = vunpack.c.l.s8.bf16 %v664_v16  ;;  %v661_v31 = vld [vmem:[%s5389_s21 + $0xb70] sm:$0xff] }
 0x452   : > { %3837 = vmatprep.subr.bf16.mxu0 %v1566_v32  ;;  %v663_v32 = vld [vmem:[%s5389_s21 + $0xb80] sm:$0xff]  ;;  %v1717_v33 = vunpack.c.l.s8.bf16 %v661_v31  ;;  %v1739_v63 = vunpack.c.h.s8.bf16 %v661_v31 }
 0x453   : > { %v1719_v34 = vunpack.c.l.s8.bf16 %v663_v32  ;;  %v1741_v40 = vunpack.c.h.s8.bf16 %v663_v32 }
 0x454   : > { %3674 = vmatpush1.bf16.msra.mxu1 %v1563_v38  ;;  %v1740_v38 = vunpack.c.h.s8.bf16 %v662_v15 }
 0x455   : > { %3838 = vmatpush1.bf16.msra.mxu0 %v1565_v39  ;;  %3675 = vmatprep.subr.bf16.mxu1 %v1586_v52  ;;  %v1742_v39 = vunpack.c.h.s8.bf16 %v664_v16  ;;  %v684_v52 = vld [vmem:[%s5389_s21 + $0xc28] sm:$0xff] }
 0x456   : > { %3839 = vmatprep.subr.bf16.mxu0 %v1588_v57  ;;  %v686_v57 = vld [vmem:[%s5389_s21 + $0xc38] sm:$0xff] }
 0x458   : > { %3676 = vmatpush1.bf16.msra.mxu1 %v1585_v42  ;;  %v1762_v42 = vunpack.c.l.s8.bf16 %v684_v52 }
 0x459   : > { %3840 = vmatpush1.bf16.msra.mxu0 %v1587_v43  ;;  %3677 = vmatprep.subr.bf16.mxu1 %v1608_v45  ;;  %v1764_v43 = vunpack.c.l.s8.bf16 %v686_v57  ;;  %v683_v45 = vld [vmem:[%s5389_s21 + $0xc20] sm:$0xff] }
 0x45a   : > { %3841 = vmatprep.subr.bf16.mxu0 %v1610_v47  ;;  %v685_v47 = vld [vmem:[%s5389_s21 + $0xc30] sm:$0xff]  ;;  %v1761_v48 = vunpack.c.l.s8.bf16 %v683_v45  ;;  %v1783_v62 = vunpack.c.h.s8.bf16 %v683_v45 }
 0x45b   : > { %v1763_v50 = vunpack.c.l.s8.bf16 %v685_v47  ;;  %v1785_v0 = vunpack.c.h.s8.bf16 %v685_v47 }
 0x45c   : > { %3678 = vmatpush1.bf16.msra.mxu1 %v1607_v51  ;;  %v1784_v51 = vunpack.c.h.s8.bf16 %v684_v52 }
 0x45d   : > { %3842 = vmatpush1.bf16.msra.mxu0 %v1609_v56  ;;  %3679 = vmatprep.subr.bf16.mxu1 %v1630_v60  ;;  %v1786_v56 = vunpack.c.h.s8.bf16 %v686_v57  ;;  %v706_v60 = vld [vmem:[%s5389_s21 + $0xcd8] sm:$0xff] }
 0x45e   : > { %3843 = vmatprep.subr.bf16.mxu0 %v1632_v61  ;;  %v708_v61 = vld [vmem:[%s5389_s21 + $0xce8] sm:$0xff] }
 0x460   : > { %3680 = vmatpush1.bf16.msra.mxu1 %v1629_v1  ;;  %v1806_v1 = vunpack.c.l.s8.bf16 %v706_v60 }
 0x461   : > { %3844 = vmatpush1.bf16.msra.mxu0 %v1631_v26  ;;  %3681 = vmatprep.subr.bf16.mxu1 %v1652_v46  ;;  %v1808_v26 = vunpack.c.l.s8.bf16 %v708_v61  ;;  %v705_v46 = vld [vmem:[%s5389_s21 + $0xcd0] sm:$0xff] }
 0x462   : > { %3845 = vmatprep.subr.bf16.mxu0 %v1654_v2  ;;  %v707_v2 = vld [vmem:[%s5389_s21 + $0xce0] sm:$0xff]  ;;  %v1805_v3 = vunpack.c.l.s8.bf16 %v705_v46  ;;  %v1827_v21 = vunpack.c.h.s8.bf16 %v705_v46 }
 0x463   : > { %v1807_v4 = vunpack.c.l.s8.bf16 %v707_v2  ;;  %v1829_v8 = vunpack.c.h.s8.bf16 %v707_v2 }
 0x464   : > { %3682 = vmatpush1.bf16.msra.mxu1 %v1651_v5  ;;  %v1828_v5 = vunpack.c.h.s8.bf16 %v706_v60 }
 0x465   : > { %3846 = vmatpush1.bf16.msra.mxu0 %v1653_v6  ;;  %3683 = vmatprep.subr.bf16.mxu1 %v1674_v7  ;;  %v1830_v6 = vunpack.c.h.s8.bf16 %v708_v61  ;;  %v728_v7 = vld [vmem:[%s5389_s21 + $0xd88] sm:$0xff] }
 0x466   : > { %3847 = vmatprep.subr.bf16.mxu0 %v1676_v20  ;;  %v730_v20 = vld [vmem:[%s5389_s21 + $0xd98] sm:$0xff] }
 0x468   : > { %3684 = vmatpush1.bf16.msra.mxu1 %v1673_v10  ;;  %v1850_v10 = vunpack.c.l.s8.bf16 %v728_v7 }
 0x469   : > { %3848 = vmatpush1.bf16.msra.mxu0 %v1675_v11  ;;  %3685 = vmatprep.subr.bf16.mxu1 %v1696_v12  ;;  %v1852_v11 = vunpack.c.l.s8.bf16 %v730_v20  ;;  %v727_v12 = vld [vmem:[%s5389_s21 + $0xd80] sm:$0xff] }
 0x46a   : > { %3849 = vmatprep.subr.bf16.mxu0 %v1698_v14  ;;  %v729_v14 = vld [vmem:[%s5389_s21 + $0xd90] sm:$0xff]  ;;  %v1849_v15 = vunpack.c.l.s8.bf16 %v727_v12  ;;  %v1871_v31 = vunpack.c.h.s8.bf16 %v727_v12 }
 0x46b   : > { %v1851_v16 = vunpack.c.l.s8.bf16 %v729_v14  ;;  %v1873_v32 = vunpack.c.h.s8.bf16 %v729_v14 }
 0x46c   : > { %3686 = vmatpush1.bf16.msra.mxu1 %v1695_v23  ;;  %v1872_v23 = vunpack.c.h.s8.bf16 %v728_v7 }
 0x46d   : > { %3850 = vmatpush1.bf16.msra.mxu0 %v1697_v24  ;;  %3696 = vmatprep.subr.bf16.mxu1 %v1718_v29  ;;  %v1874_v24 = vunpack.c.h.s8.bf16 %v730_v20  ;;  %v750_v29 = vld [vmem:[%s5389_s21 + $0xe38] sm:$0xff] }
 0x46e   : > { %3860 = vmatprep.subr.bf16.mxu0 %v1720_v30  ;;  %v752_v30 = vld [vmem:[%s5389_s21 + $0xe48] sm:$0xff] }
 0x46f   : > { %3688 = vmatmul.mubr.bf16.vlgmr.msra.gmra.mrb[16].mxu1 %v5521_v36 }
 0x470   : > { %3852 = vmatmul.mubr.bf16.vlgmr.msra.gmra.mrb[16].mxu0 %v5521_v36  ;;  %3697 = vmatpush1.bf16.msra.mxu1 %v1717_v33  ;;  %v1894_v33 = vunpack.c.l.s8.bf16 %v750_v29 }
 0x471   : > { %3861 = vmatpush1.bf16.msra.mxu0 %v1719_v34  ;;  %3698 = vmatprep.subr.bf16.mxu1 %v1740_v38  ;;  %v1896_v34 = vunpack.c.l.s8.bf16 %v752_v30  ;;  %v749_v38 = vld [vmem:[%s5389_s21 + $0xe30] sm:$0xff] }
 0x472   : > { %3862 = vmatprep.subr.bf16.mxu0 %v1742_v39  ;;  %3728 = vmatprep.mubr.bf16.mxu1 %v5444_v55  ;;  %v751_v39 = vld [vmem:[%s5389_s21 + $0xe40] sm:$0xff]  ;;  %v1893_v52 = vunpack.c.l.s8.bf16 %v749_v38  ;;  %v1915_v45 = vunpack.c.h.s8.bf16 %v749_v38 }
 0x473   : > { %3892 = vmatprep.mubr.bf16.mxu0 %v5444_v55  ;;  %v1895_v57 = vunpack.c.l.s8.bf16 %v751_v39  ;;  %v1917_v47 = vunpack.c.h.s8.bf16 %v751_v39 }
 0x474   : > { %3699 = vmatpush1.bf16.msra.mxu1 %v1739_v63  ;;  %v1916_v63 = vunpack.c.h.s8.bf16 %v750_v29 }
 0x475   : > { %3863 = vmatpush1.bf16.msra.mxu0 %v1741_v40  ;;  %3700 = vmatprep.subr.bf16.mxu1 %v1762_v42  ;;  %v1918_v40 = vunpack.c.h.s8.bf16 %v752_v30  ;;  %v772_v42 = vld [vmem:[%s5389_s21 + $0xee8] sm:$0xff] }
 0x476   : > { %3864 = vmatprep.subr.bf16.mxu0 %v1764_v43  ;;  %v774_v43 = vld [vmem:[%s5389_s21 + $0xef8] sm:$0xff] }
 0x478   : > { %3701 = vmatpush1.bf16.msra.mxu1 %v1761_v48  ;;  %v1938_v48 = vunpack.c.l.s8.bf16 %v772_v42 }
 0x479   : > { %3865 = vmatpush1.bf16.msra.mxu0 %v1763_v50  ;;  %3702 = vmatprep.subr.bf16.mxu1 %v1784_v51  ;;  %v1940_v50 = vunpack.c.l.s8.bf16 %v774_v43  ;;  %v771_v51 = vld [vmem:[%s5389_s21 + $0xee0] sm:$0xff] }
 0x47a   : > { %3866 = vmatprep.subr.bf16.mxu0 %v1786_v56  ;;  %v773_v56 = vld [vmem:[%s5389_s21 + $0xef0] sm:$0xff]  ;;  %v1937_v60 = vunpack.c.l.s8.bf16 %v771_v51  ;;  %v1959_v46 = vunpack.c.h.s8.bf16 %v771_v51 }
 0x47b   : > { %v1939_v61 = vunpack.c.l.s8.bf16 %v773_v56  ;;  %v1961_v2 = vunpack.c.h.s8.bf16 %v773_v56 }
 0x47c   : > { %3703 = vmatpush1.bf16.msra.mxu1 %v1783_v62  ;;  %v1960_v62 = vunpack.c.h.s8.bf16 %v772_v42 }
 0x47d   : > { %3867 = vmatpush1.bf16.msra.mxu0 %v1785_v0  ;;  %3704 = vmatprep.subr.bf16.mxu1 %v1806_v1  ;;  %v1962_v0 = vunpack.c.h.s8.bf16 %v774_v43  ;;  %v794_v1 = vld [vmem:[%s5389_s21 + $0xf98] sm:$0xff] }
 0x47e   : > { %3868 = vmatprep.subr.bf16.mxu0 %v1808_v26  ;;  %v796_v26 = vld [vmem:[%s5389_s21 + $0xfa8] sm:$0xff] }
 0x480   : > { %3705 = vmatpush1.bf16.msra.mxu1 %v1805_v3  ;;  %v1982_v3 = vunpack.c.l.s8.bf16 %v794_v1 }
 0x481   : > { %3869 = vmatpush1.bf16.msra.mxu0 %v1807_v4  ;;  %3706 = vmatprep.subr.bf16.mxu1 %v1828_v5  ;;  %v1984_v4 = vunpack.c.l.s8.bf16 %v796_v26  ;;  %v793_v5 = vld [vmem:[%s5389_s21 + $0xf90] sm:$0xff] }
 0x482   : > { %3870 = vmatprep.subr.bf16.mxu0 %v1830_v6  ;;  %v795_v6 = vld [vmem:[%s5389_s21 + $0xfa0] sm:$0xff]  ;;  %v1981_v7 = vunpack.c.l.s8.bf16 %v793_v5  ;;  %v2003_v12 = vunpack.c.h.s8.bf16 %v793_v5 }
 0x483   : > { %v1983_v20 = vunpack.c.l.s8.bf16 %v795_v6  ;;  %v2005_v14 = vunpack.c.h.s8.bf16 %v795_v6 }
 0x484   : > { %3707 = vmatpush1.bf16.msra.mxu1 %v1827_v21  ;;  %v2004_v21 = vunpack.c.h.s8.bf16 %v794_v1 }
 0x485   : > { %3871 = vmatpush1.bf16.msra.mxu0 %v1829_v8  ;;  %3708 = vmatprep.subr.bf16.mxu1 %v1850_v10  ;;  %v2006_v8 = vunpack.c.h.s8.bf16 %v796_v26  ;;  %v816_v10 = vld [vmem:[%s5389_s21 + $0x1048] sm:$0xff] }
 0x486   : > { %3872 = vmatprep.subr.bf16.mxu0 %v1852_v11  ;;  %v818_v11 = vld [vmem:[%s5389_s21 + $0x1058] sm:$0xff] }
 0x488   : > { %3709 = vmatpush1.bf16.msra.mxu1 %v1849_v15  ;;  %v2026_v15 = vunpack.c.l.s8.bf16 %v816_v10 }
 0x489   : > { %3873 = vmatpush1.bf16.msra.mxu0 %v1851_v16  ;;  %3710 = vmatprep.subr.bf16.mxu1 %v1872_v23  ;;  %v2028_v16 = vunpack.c.l.s8.bf16 %v818_v11  ;;  %v815_v23 = vld [vmem:[%s5389_s21 + $0x1040] sm:$0xff] }
 0x48a   : > { %3874 = vmatprep.subr.bf16.mxu0 %v1874_v24  ;;  %v817_v24 = vld [vmem:[%s5389_s21 + $0x1050] sm:$0xff]  ;;  %v2025_v29 = vunpack.c.l.s8.bf16 %v815_v23  ;;  %v2047_v38 = vunpack.c.h.s8.bf16 %v815_v23  ;;  %v5058_v23 = vld [vmem:[%s5399_s14 + $0x8] sm:$0xff] }
 0x48b   : > { %v2027_v30 = vunpack.c.l.s8.bf16 %v817_v24  ;;  %v2049_v39 = vunpack.c.h.s8.bf16 %v817_v24  ;;  %v4319_v24 = vrot.slane %v5058_v23, %v5814_v17 }
 0x48c   : > { %3711 = vmatpush1.bf16.msra.mxu1 %v1871_v31  ;;  %v2048_v31 = vunpack.c.h.s8.bf16 %v816_v10 }
 0x48d   : > { %3875 = vmatpush1.bf16.msra.mxu0 %v1873_v32  ;;  %3712 = vmatprep.subr.bf16.mxu1 %v1894_v33  ;;  %v2050_v32 = vunpack.c.h.s8.bf16 %v818_v11  ;;  %v838_v33 = vld [vmem:[%s5389_s21 + $0x10f8] sm:$0xff] }
 0x48e   : > { %3876 = vmatprep.subr.bf16.mxu0 %v1896_v34  ;;  %v840_v34 = vld [vmem:[%s5389_s21 + $0x1108] sm:$0xff] }
 0x490   : > { %3713 = vmatpush1.bf16.msra.mxu1 %v1893_v52  ;;  %v2070_v52 = vunpack.c.l.s8.bf16 %v838_v33 }
 0x491   : > { %3877 = vmatpush1.bf16.msra.mxu0 %v1895_v57  ;;  %3714 = vmatprep.subr.bf16.mxu1 %v1916_v63  ;;  %v2072_v57 = vunpack.c.l.s8.bf16 %v840_v34  ;;  %v837_v63 = vld [vmem:[%s5389_s21 + $0x10f0] sm:$0xff] }
 0x492   : > { %3878 = vmatprep.subr.bf16.mxu0 %v1918_v40  ;;  %v839_v40 = vld [vmem:[%s5389_s21 + $0x1100] sm:$0xff]  ;;  %v2069_v42 = vunpack.c.l.s8.bf16 %v837_v63  ;;  %v2091_v51 = vunpack.c.h.s8.bf16 %v837_v63 }
 0x493   : > { %v2071_v43 = vunpack.c.l.s8.bf16 %v839_v40  ;;  %v2093_v56 = vunpack.c.h.s8.bf16 %v839_v40  ;;  %v903_v63 = vld [vmem:[%s5389_s21 + $0x1300] sm:$0xff]  ;;  %v905_v40 = vld [vmem:[%s5389_s21 + $0x1310] sm:$0xff] }
 0x494   : > { %3715 = vmatpush1.bf16.msra.mxu1 %v1915_v45  ;;  %v2092_v45 = vunpack.c.h.s8.bf16 %v838_v33 }
 0x495   : > { %3879 = vmatpush1.bf16.msra.mxu0 %v1917_v47  ;;  %3716 = vmatprep.subr.bf16.mxu1 %v1938_v48  ;;  %v2094_v47 = vunpack.c.h.s8.bf16 %v840_v34  ;;  %v860_v48 = vld [vmem:[%s5389_s21 + $0x11a8] sm:$0xff] }
 0x496   : > { %3880 = vmatprep.subr.bf16.mxu0 %v1940_v50  ;;  %v862_v50 = vld [vmem:[%s5389_s21 + $0x11b8] sm:$0xff] }
 0x497   : > { %v5059_v34 = vld [vmem:[%s5658_s26 + $0x8] sm:$0xff] }
 0x498   : > { %3717 = vmatpush1.bf16.msra.mxu1 %v1937_v60  ;;  %v2114_v60 = vunpack.c.l.s8.bf16 %v860_v48 }
 0x499   : > { %3881 = vmatpush1.bf16.msra.mxu0 %v1939_v61  ;;  %3718 = vmatprep.subr.bf16.mxu1 %v1960_v62  ;;  %v2116_v61 = vunpack.c.l.s8.bf16 %v862_v50  ;;  %v859_v62 = vld [vmem:[%s5389_s21 + $0x11a0] sm:$0xff] }
 0x49a   : > { %3882 = vmatprep.subr.bf16.mxu0 %v1962_v0  ;;  %v861_v0 = vld [vmem:[%s5389_s21 + $0x11b0] sm:$0xff]  ;;  %v2113_v1 = vunpack.c.l.s8.bf16 %v859_v62  ;;  %v2135_v5 = vunpack.c.h.s8.bf16 %v859_v62 }
 0x49b   : > { %v2115_v26 = vunpack.c.l.s8.bf16 %v861_v0  ;;  %v2137_v6 = vunpack.c.h.s8.bf16 %v861_v0 }
 0x49c   : > { %3719 = vmatpush1.bf16.msra.mxu1 %v1959_v46  ;;  %v2136_v46 = vunpack.c.h.s8.bf16 %v860_v48 }
 0x49d   : > { %3883 = vmatpush1.bf16.msra.mxu0 %v1961_v2  ;;  %3720 = vmatprep.subr.bf16.mxu1 %v1982_v3  ;;  %v2138_v2 = vunpack.c.h.s8.bf16 %v862_v50  ;;  %v882_v3 = vld [vmem:[%s5389_s21 + $0x1258] sm:$0xff] }
 0x49e   : > { %3884 = vmatprep.subr.bf16.mxu0 %v1984_v4  ;;  %v884_v4 = vld [vmem:[%s5389_s21 + $0x1268] sm:$0xff] }
 0x4a0   : > { %3721 = vmatpush1.bf16.msra.mxu1 %v1981_v7  ;;  %v2158_v7 = vunpack.c.l.s8.bf16 %v882_v3 }
 0x4a1   : > { %3885 = vmatpush1.bf16.msra.mxu0 %v1983_v20  ;;  %3722 = vmatprep.subr.bf16.mxu1 %v2004_v21  ;;  %v2160_v20 = vunpack.c.l.s8.bf16 %v884_v4  ;;  %v881_v21 = vld [vmem:[%s5389_s21 + $0x1250] sm:$0xff] }
 0x4a2   : > { %3886 = vmatprep.subr.bf16.mxu0 %v2006_v8  ;;  %v883_v8 = vld [vmem:[%s5389_s21 + $0x1260] sm:$0xff]  ;;  %v2157_v10 = vunpack.c.l.s8.bf16 %v881_v21 }
 0x4a3   : > { %v2159_v11 = vunpack.c.l.s8.bf16 %v883_v8  ;;  %v2181_v33 = vunpack.c.h.s8.bf16 %v883_v8  ;;  %v928_v8 = vld [vmem:[%s5389_s21 + $0x13c8] sm:$0xff] }
 0x4a4   : > { %3723 = vmatpush1.bf16.msra.mxu1 %v2003_v12  ;;  %v2180_v12 = vunpack.c.h.s8.bf16 %v882_v3 }
 0x4a5   : > { %3887 = vmatpush1.bf16.msra.mxu0 %v2005_v14  ;;  %3724 = vmatprep.subr.bf16.mxu1 %v2026_v15  ;;  %v2182_v14 = vunpack.c.h.s8.bf16 %v884_v4  ;;  %v904_v15 = vld [vmem:[%s5389_s21 + $0x1308] sm:$0xff] }
 0x4a6   : > { %3888 = vmatprep.subr.bf16.mxu0 %v2028_v16  ;;  %v906_v16 = vld [vmem:[%s5389_s21 + $0x1318] sm:$0xff] }
 0x4a8   : > { %3725 = vmatpush1.bf16.msra.mxu1 %v2025_v29  ;;  %v4327_v29 = vrot.slane %v5058_v23, %v5817_v19 }
 0x4a9   : > { %3889 = vmatpush1.bf16.msra.mxu0 %v2027_v30  ;;  %3726 = vmatprep.subr.bf16.mxu1 %v2048_v31  ;;  %v4323_v30 = vrot.slane %v5058_v23, %v5820_v27  ;;  %v4331_v31 = vrot.slane %v5058_v23, %v5823_v28 }
 0x4aa   : > { %3890 = vmatprep.subr.bf16.mxu0 %v2050_v32  ;;  %v2179_v32 = vunpack.c.h.s8.bf16 %v881_v21  ;;  %v926_v21 = vld [vmem:[%s5389_s21 + $0x13b8] sm:$0xff] }
 0x4ac   : > { %3727 = vmatpush1.bf16.msra.mxu1 %v2047_v38  ;;  %v4457_v38 = vrot.slane %v5059_v34, %v5814_v17 }
 0x4ad   : > { %3891 = vmatpush1.bf16.msra.mxu0 %v2049_v39  ;;  %3737 = vmatprep.subr.bf16.mxu1 %v2070_v52  ;;  %v4465_v39 = vrot.slane %v5059_v34, %v5817_v19  ;;  %v2202_v52 = vunpack.c.l.s8.bf16 %v904_v15 }
 0x4ae   : > { %3901 = vmatprep.subr.bf16.mxu0 %v2072_v57  ;;  %v2204_v57 = vunpack.c.l.s8.bf16 %v906_v16 }
 0x4af   : > { %3729 = vmatmul.mubr.bf16.vlgmr.msra.gmra.mrb[16].mxu1 %v5473_v59 }
 0x4b0   : > { %3893 = vmatmul.mubr.bf16.vlgmr.msra.gmra.mrb[16].mxu0 %v5473_v59  ;;  %3738 = vmatpush1.bf16.msra.mxu1 %v2069_v42 }
 0x4b1   : > { %3902 = vmatpush1.bf16.msra.mxu0 %v2071_v43  ;;  %3739 = vmatprep.subr.bf16.mxu1 %v2092_v45  ;;  %v4461_v45 = vrot.slane %v5059_v34, %v5820_v27 }
 0x4b2   : > { %3903 = vmatprep.subr.bf16.mxu0 %v2094_v47  ;;  %3769 = vmatprep.mubr.bf16.mxu1 %v5483_v35  ;;  %v4469_v47 = vrot.slane %v5059_v34, %v5823_v28 }
 0x4b3   : > { %3933 = vmatprep.mubr.bf16.mxu0 %v5483_v35 }
 0x4b4   : > { %3740 = vmatpush1.bf16.msra.mxu1 %v2091_v51 }
 0x4b5   : > { %3904 = vmatpush1.bf16.msra.mxu0 %v2093_v56  ;;  %3741 = vmatprep.subr.bf16.mxu1 %v2114_v60 }
 0x4b6   : > { %3905 = vmatprep.subr.bf16.mxu0 %v2116_v61 }
 0x4b8   : > { %3742 = vmatpush1.bf16.msra.mxu1 %v2113_v1  ;;  %v2201_v1 = vunpack.c.l.s8.bf16 %v903_v63 }
 0x4b9   : > { %3906 = vmatpush1.bf16.msra.mxu0 %v2115_v26  ;;  %3743 = vmatprep.subr.bf16.mxu1 %v2136_v46  ;;  %v2203_v26 = vunpack.c.l.s8.bf16 %v905_v40 }
 0x4ba   : > { %3907 = vmatprep.subr.bf16.mxu0 %v2138_v2 }
 0x4bc   : > { %3744 = vmatpush1.bf16.msra.mxu1 %v2135_v5  ;;  %v2224_v5 = vunpack.c.h.s8.bf16 %v904_v15  ;;  %v925_v15 = vld [vmem:[%s5389_s21 + $0x13b0] sm:$0xff] }
 0x4bd   : > { %3908 = vmatpush1.bf16.msra.mxu0 %v2137_v6  ;;  %3745 = vmatprep.subr.bf16.mxu1 %v2158_v7  ;;  %v2226_v6 = vunpack.c.h.s8.bf16 %v906_v16  ;;  %v927_v16 = vld [vmem:[%s5389_s21 + $0x13c0] sm:$0xff]  ;;  %v2245_v23 = vunpack.c.l.s8.bf16 %v925_v15 }
 0x4be   : > { %3909 = vmatprep.subr.bf16.mxu0 %v2160_v20  ;;  %v2269_v34 = vunpack.c.h.s8.bf16 %v927_v16 }
 0x4c0   : > { %3746 = vmatpush1.bf16.msra.mxu1 %v2157_v10  ;;  %v2223_v10 = vunpack.c.h.s8.bf16 %v903_v63  ;;  %v949_v63 = vld [vmem:[%s5389_s21 + $0x1470] sm:$0xff] }
 0x4c1   : > { %3910 = vmatpush1.bf16.msra.mxu0 %v2159_v11  ;;  %3747 = vmatprep.subr.bf16.mxu1 %v2180_v12  ;;  %v2225_v11 = vunpack.c.h.s8.bf16 %v905_v40  ;;  %v2246_v12 = vunpack.c.l.s8.bf16 %v926_v21 }
 0x4c2   : > { %3911 = vmatprep.subr.bf16.mxu0 %v2182_v14  ;;  %v3443_v42 = vpop.f32.mrb[12].mxu1  ;;  %v2248_v14 = vunpack.c.l.s8.bf16 %v928_v8 }
 0x4c3   : > { %v3607_v43 = vpop.f32.mrb[12].mxu0  ;;  %v4396_v48 = vmul.f32 %v4319_v24, %v3443_v42  ;;  %v3445_v51 = vpop.f32.mrb[13].mxu1  ;;  %v2247_v24 = vunpack.c.l.s8.bf16 %v927_v16 }
 0x4c4   : > { %v4398_v50 = vmul.f32 %v4327_v29, %v3607_v43  ;;  %v3609_v56 = vpop.f32.mrb[13].mxu0  ;;  %v4397_v60 = vmul.f32 %v4323_v30, %v3445_v51  ;;  %v3447_v62 = vpop.f32.mrb[14].mxu1  ;;  %3748 = vmatpush1.bf16.msra.mxu1 %v2179_v32  ;;  %v2268_v29 = vunpack.c.h.s8.bf16 %v926_v21  ;;  %v2270_v30 = vunpack.c.h.s8.bf16 %v928_v8  ;;  %v950_v32 = vld [vmem:[%s5389_s21 + $0x1478] sm:$0xff] }
 0x4c5   : > { %v4399_v61 = vmul.f32 %v4331_v31, %v3609_v56  ;;  %v3611_v0 = vpop.f32.mrb[14].mxu0  ;;  %3912 = vmatpush1.bf16.msra.mxu0 %v2181_v33  ;;  %v4534_v46 = vadd.f32 %v4457_v38, %v4396_v48  ;;  %v3448_v3 = vpop.f32.mrb[15].mxu1  ;;  %3749 = vmatprep.subr.bf16.mxu1 %v2202_v52  ;;  %v948_v31 = vld [vmem:[%s5389_s21 + $0x1468] sm:$0xff]  ;;  %v2267_v33 = vunpack.c.h.s8.bf16 %v925_v15  ;;  %v2292_v52 = vunpack.c.l.s8.bf16 %v950_v32  ;;  %v970_v62 = vld [vmem:[%s5389_s21 + $0x1518] sm:$0xff] }
 0x4c6   : > { %v4536_v2 = vadd.f32 %v4465_v39, %v4398_v50  ;;  %v3612_v4 = vpop.f32.mrb[15].mxu0  ;;  %3913 = vmatprep.subr.bf16.mxu0 %v2204_v57  ;;  %v4535_v7 = vadd.f32 %v4461_v45, %v4397_v60  ;;  %v2290_v39 = vunpack.c.l.s8.bf16 %v948_v31  ;;  %v947_v57 = vld [vmem:[%s5389_s21 + $0x1460] sm:$0xff]  ;;  %v2291_v48 = vunpack.c.l.s8.bf16 %v949_v63  ;;  %v972_v0 = vld [vmem:[%s5389_s21 + $0x1528] sm:$0xff] }
 0x4c7   : > { %v4537_v20 = vadd.f32 %v4469_v47, %v4399_v61  ;;  %5030 = vtanh.f32 %v4534_v46  ;;  %v2289_v47 = vunpack.c.l.s8.bf16 %v947_v57  ;;  %v2312_v51 = vunpack.c.h.s8.bf16 %v948_v31  ;;  %v969_v4 = vld [vmem:[%s5389_s21 + $0x1510] sm:$0xff] }
 0x4c8   : > { %5032 = vtanh.f32 %v4536_v2  ;;  %3750 = vmatpush1.bf16.msra.mxu1 %v2201_v1  ;;  %v2314_v56 = vunpack.c.h.s8.bf16 %v950_v32  ;;  %v4632_v60 = vrot.slane %v4624_v13, %v5853_v54  ;;  %v2313_v46 = vunpack.c.h.s8.bf16 %v949_v63 }
 0x4c9   : > { %3914 = vmatpush1.bf16.msra.mxu0 %v2203_v26  ;;  %5034 = vtanh.f32 %v4535_v7  ;;  %3751 = vmatprep.subr.bf16.mxu1 %v2224_v5  ;;  %v2311_v26 = vunpack.c.h.s8.bf16 %v947_v57  ;;  %v2334_v2 = vunpack.c.l.s8.bf16 %v970_v62  ;;  %v2336_v3 = vunpack.c.l.s8.bf16 %v972_v0  ;;  %v971_v5 = vld [vmem:[%s5389_s21 + $0x1520] sm:$0xff]  ;;  %v992_v7 = vld [vmem:[%s5389_s21 + $0x15c8] sm:$0xff] }
 0x4ca   : > { %3915 = vmatprep.subr.bf16.mxu0 %v2226_v6  ;;  %5036 = vtanh.f32 %v4537_v20  ;;  %v2333_v25 = vunpack.c.l.s8.bf16 %v969_v4  ;;  %v2335_v9 = vunpack.c.l.s8.bf16 %v971_v5  ;;  %v2356_v13 = vunpack.c.h.s8.bf16 %v970_v62  ;;  %v994_v20 = vld [vmem:[%s5389_s21 + $0x15d8] sm:$0xff]  ;;  %v337_v62 = vld [vmem:[%s5389_s21 + $0x150] sm:$0xff] }
 0x4cb   : > { %v2358_v6 = vunpack.c.h.s8.bf16 %v972_v0  ;;  %v2355_v21 = vunpack.c.h.s8.bf16 %v969_v4  ;;  %v2357_v8 = vunpack.c.h.s8.bf16 %v971_v5  ;;  %v1085_v5 = vunpack.c.h.s8.bf16 %v337_v62 }
 0x4cc   : > { %3752 = vmatpush1.bf16.msra.mxu1 %v2223_v10  ;;  %v2378_v10 = vunpack.c.l.s8.bf16 %v992_v7 }
 0x4cd   : > { %3916 = vmatpush1.bf16.msra.mxu0 %v2225_v11  ;;  %3753 = vmatprep.subr.bf16.mxu1 %v2246_v12  ;;  %v2380_v11 = vunpack.c.l.s8.bf16 %v994_v20  ;;  %v991_v12 = vld [vmem:[%s5389_s21 + $0x15c0] sm:$0xff] }
 0x4ce   : > { %3917 = vmatprep.subr.bf16.mxu0 %v2248_v14  ;;  %v993_v14 = vld [vmem:[%s5389_s21 + $0x15d0] sm:$0xff]  ;;  %v2377_v15 = vunpack.c.l.s8.bf16 %v991_v12  ;;  %v2399_v31 = vunpack.c.h.s8.bf16 %v991_v12 }
 0x4cf   : > { %v2379_v16 = vunpack.c.l.s8.bf16 %v993_v14  ;;  %v2401_v32 = vunpack.c.h.s8.bf16 %v993_v14 }
 0x4d0   : > { %3754 = vmatpush1.bf16.msra.mxu1 %v2245_v23  ;;  %v2400_v23 = vunpack.c.h.s8.bf16 %v992_v7 }
 0x4d1   : > { %3918 = vmatpush1.bf16.msra.mxu0 %v2247_v24  ;;  %v5031_v38 = vpop.eup %5030  ;;  %3755 = vmatprep.subr.bf16.mxu1 %v2268_v29  ;;  %v2402_v24 = vunpack.c.h.s8.bf16 %v994_v20  ;;  %v314_v29 = vld [vmem:[%s5389_s21 + $0x98] sm:$0xff] }
 0x4d2   : > { %3919 = vmatprep.subr.bf16.mxu0 %v2270_v30  ;;  %v6199_v40 = vpop.eup %5032  ;;  %v316_v30 = vld [vmem:[%s5389_s21 + $0xa8] sm:$0xff]  ;;  %v1040_v63 = vunpack.c.h.s8.bf16 %v314_v29 }
 0x4d3   : > { %v5035_v42 = vpop.eup %5034 }
 0x4d4   : > { %v6201_v43 = vpop.eup %5036  ;;  %v4625_v45 = vcombine.low %v5031_v38, %v5035_v42  ;;  %3756 = vmatpush1.bf16.msra.mxu1 %v2267_v33  ;;  %v1018_v33 = vunpack.c.l.s8.bf16 %v314_v29  ;;  %v313_v38 = vld [vmem:[%s5389_s21 + $0x90] sm:$0xff]  ;;  %v1042_v42 = vunpack.c.h.s8.bf16 %v316_v30 }
 0x4d5   : > { %3920 = vmatpush1.bf16.msra.mxu0 %v2269_v34  ;;  %v4641_v50 = vcombine.low %v6199_v40, %v6201_v43  ;;  %3757 = vmatprep.subr.bf16.mxu1 %v2290_v39  ;;  %v1020_v34 = vunpack.c.l.s8.bf16 %v316_v30  ;;  %v315_v39 = vld [vmem:[%s5389_s21 + $0xa0] sm:$0xff] }
 0x4d6   : > { %3921 = vmatprep.subr.bf16.mxu0 %v2292_v52  ;;  %v4639_v61 = vrot.slane %v4625_v45, %v5853_v54  ;;  %v1017_v52 = vunpack.c.l.s8.bf16 %v313_v38  ;;  %v1019_v57 = vunpack.c.l.s8.bf16 %v315_v39  ;;  %v336_v45 = vld [vmem:[%s5389_s21 + $0x148] sm:$0xff] }
 0x4d8   : > { %v4640_v1 = vcombine.low %v4632_v60, %v4639_v61  ;;  %3758 = vmatpush1.bf16.msra.mxu1 %v2289_v47  ;;  %v338_v47 = vld [vmem:[%s5389_s21 + $0x158] sm:$0xff]  ;;  %v335_v61 = vld [vmem:[%s5389_s21 + $0x140] sm:$0xff] }
 0x4d9   : > { %3922 = vmatpush1.bf16.msra.mxu0 %v2291_v48  ;;  %3759 = vmatprep.subr.bf16.mxu1 %v2312_v51  ;;  %v1039_v48 = vunpack.c.h.s8.bf16 %v313_v38  ;;  %v1041_v51 = vunpack.c.h.s8.bf16 %v315_v39  ;;  %v1064_v60 = vunpack.c.l.s8.bf16 %v338_v47  ;;  %v1061_v0 = vunpack.c.l.s8.bf16 %v335_v61 }
 0x4da   : > { %3923 = vmatprep.subr.bf16.mxu0 %v2314_v56  ;;  %4691 = vst [vmem:[%s5870_s29 + $0x10] sm:$0xff] %v4640_v1  ;;  %v1062_v56 = vunpack.c.l.s8.bf16 %v336_v45  ;;  %v1063_v1 = vunpack.c.l.s8.bf16 %v337_v62  ;;  %v1083_v4 = vunpack.c.h.s8.bf16 %v335_v61 }
 0x4dc   : > { %3760 = vmatpush1.bf16.msra.mxu1 %v2311_v26  ;;  %v1084_v26 = vunpack.c.h.s8.bf16 %v336_v45 }
 0x4dd   : > { %3924 = vmatpush1.bf16.msra.mxu0 %v2313_v46  ;;  %3761 = vmatprep.subr.bf16.mxu1 %v2334_v2  ;;  %v1086_v46 = vunpack.c.h.s8.bf16 %v338_v47  ;;  %v358_v2 = vld [vmem:[%s5389_s21 + $0x1f8] sm:$0xff] }
 0x4de   : > { %3925 = vmatprep.subr.bf16.mxu0 %v2336_v3  ;;  %v360_v3 = vld [vmem:[%s5389_s21 + $0x208] sm:$0xff]  ;;  %v1128_v20 = vunpack.c.h.s8.bf16 %v358_v2 }
 0x4e0   : > { %3762 = vmatpush1.bf16.msra.mxu1 %v2333_v25  ;;  %v1108_v25 = vunpack.c.l.s8.bf16 %v360_v3 }
 0x4e1   : > { %3926 = vmatpush1.bf16.msra.mxu0 %v2335_v9  ;;  %3763 = vmatprep.subr.bf16.mxu1 %v2356_v13  ;;  %v357_v9 = vld [vmem:[%s5389_s21 + $0x1f0] sm:$0xff]  ;;  %v359_v13 = vld [vmem:[%s5389_s21 + $0x200] sm:$0xff] }
 0x4e2   : > { %3927 = vmatprep.subr.bf16.mxu0 %v2358_v6  ;;  %v1105_v6 = vunpack.c.l.s8.bf16 %v357_v9  ;;  %v1107_v7 = vunpack.c.l.s8.bf16 %v359_v13  ;;  %v1129_v12 = vunpack.c.h.s8.bf16 %v359_v13 }
 0x4e4   : > { %3764 = vmatpush1.bf16.msra.mxu1 %v2355_v21  ;;  %v1130_v21 = vunpack.c.h.s8.bf16 %v360_v3 }
 0x4e5   : > { %3928 = vmatpush1.bf16.msra.mxu0 %v2357_v8  ;;  %3765 = vmatprep.subr.bf16.mxu1 %v2378_v10  ;;  %v380_v8 = vld [vmem:[%s5389_s21 + $0x2a8] sm:$0xff]  ;;  %v382_v10 = vld [vmem:[%s5389_s21 + $0x2b8] sm:$0xff] }
 0x4e6   : > { %3929 = vmatprep.subr.bf16.mxu0 %v2380_v11  ;;  %v1127_v11 = vunpack.c.h.s8.bf16 %v357_v9  ;;  %v1150_v14 = vunpack.c.l.s8.bf16 %v380_v8  ;;  %v1172_v30 = vunpack.c.h.s8.bf16 %v380_v8 }
 0x4e8   : > { %3766 = vmatpush1.bf16.msra.mxu1 %v2377_v15  ;;  %v1152_v15 = vunpack.c.l.s8.bf16 %v382_v10 }
 0x4e9   : > { %3930 = vmatpush1.bf16.msra.mxu0 %v2379_v16  ;;  %3767 = vmatprep.subr.bf16.mxu1 %v2400_v23  ;;  %v379_v16 = vld [vmem:[%s5389_s21 + $0x2a0] sm:$0xff]  ;;  %v381_v23 = vld [vmem:[%s5389_s21 + $0x2b0] sm:$0xff] }
 0x4ea   : > { %3931 = vmatprep.subr.bf16.mxu0 %v2402_v24  ;;  %v1149_v24 = vunpack.c.l.s8.bf16 %v379_v16  ;;  %v1151_v29 = vunpack.c.l.s8.bf16 %v381_v23  ;;  %v1173_v38 = vunpack.c.h.s8.bf16 %v381_v23 }
 0x4ec   : > { %3768 = vmatpush1.bf16.msra.mxu1 %v2399_v31  ;;  %v1174_v31 = vunpack.c.h.s8.bf16 %v382_v10 }
 0x4ed   : > { %3932 = vmatpush1.bf16.msra.mxu0 %v2401_v32  ;;  %3942 = vmatprep.subr.bf16.mxu1 %v1018_v33  ;;  %v402_v32 = vld [vmem:[%s5389_s21 + $0x358] sm:$0xff]  ;;  %v404_v33 = vld [vmem:[%s5389_s21 + $0x368] sm:$0xff] }
 0x4ee   : > { %4106 = vmatprep.subr.bf16.mxu0 %v1020_v34  ;;  %v1171_v34 = vunpack.c.h.s8.bf16 %v379_v16  ;;  %v1194_v39 = vunpack.c.l.s8.bf16 %v402_v32  ;;  %v1216_v47 = vunpack.c.h.s8.bf16 %v402_v32 }
 0x4ef   : > { %3770 = vmatmul.mubr.bf16.vlgmr.msra.gmra.mrb[16].mxu1 %v5525_v37 }
 0x4f0   : > { %3934 = vmatmul.mubr.bf16.vlgmr.msra.gmra.mrb[16].mxu0 %v5525_v37  ;;  %3943 = vmatpush1.bf16.msra.mxu1 %v1017_v52  ;;  %v1196_v52 = vunpack.c.l.s8.bf16 %v404_v33 }
 0x4f1   : > { %4107 = vmatpush1.bf16.msra.mxu0 %v1019_v57  ;;  %3944 = vmatprep.subr.bf16.mxu1 %v1040_v63  ;;  %v401_v57 = vld [vmem:[%s5389_s21 + $0x350] sm:$0xff]  ;;  %v403_v63 = vld [vmem:[%s5389_s21 + $0x360] sm:$0xff] }
 0x4f2   : > { %4108 = vmatprep.subr.bf16.mxu0 %v1042_v42  ;;  %3974 = vmatprep.mubr.bf16.mxu1 %v5438_v53  ;;  %v1193_v42 = vunpack.c.l.s8.bf16 %v401_v57  ;;  %v1195_v45 = vunpack.c.l.s8.bf16 %v403_v63  ;;  %v1217_v61 = vunpack.c.h.s8.bf16 %v403_v63 }
 0x4f3   : > { %4138 = vmatprep.mubr.bf16.mxu0 %v5438_v53  ;;  %v1106_v53 = vunpack.c.l.s8.bf16 %v358_v2 }
 0x4f4   : > { %3945 = vmatpush1.bf16.msra.mxu1 %v1039_v48  ;;  %v1218_v48 = vunpack.c.h.s8.bf16 %v404_v33 }
 0x4f5   : > { %4109 = vmatpush1.bf16.msra.mxu0 %v1041_v51  ;;  %3946 = vmatprep.subr.bf16.mxu1 %v1062_v56  ;;  %v424_v51 = vld [vmem:[%s5389_s21 + $0x408] sm:$0xff]  ;;  %v426_v56 = vld [vmem:[%s5389_s21 + $0x418] sm:$0xff] }
 0x4f6   : > { %4110 = vmatprep.subr.bf16.mxu0 %v1064_v60  ;;  %v1215_v60 = vunpack.c.h.s8.bf16 %v401_v57  ;;  %v1238_v62 = vunpack.c.l.s8.bf16 %v424_v51  ;;  %v1260_v3 = vunpack.c.h.s8.bf16 %v424_v51 }
 0x4f8   : > { %3947 = vmatpush1.bf16.msra.mxu1 %v1061_v0  ;;  %v1240_v0 = vunpack.c.l.s8.bf16 %v426_v56 }
 0x4f9   : > { %4111 = vmatpush1.bf16.msra.mxu0 %v1063_v1  ;;  %3948 = vmatprep.subr.bf16.mxu1 %v1084_v26  ;;  %v423_v1 = vld [vmem:[%s5389_s21 + $0x400] sm:$0xff]  ;;  %v425_v26 = vld [vmem:[%s5389_s21 + $0x410] sm:$0xff] }
 0x4fa   : > { %4112 = vmatprep.subr.bf16.mxu0 %v1086_v46  ;;  %v1237_v46 = vunpack.c.l.s8.bf16 %v423_v1  ;;  %v1239_v2 = vunpack.c.l.s8.bf16 %v425_v26  ;;  %v1261_v9 = vunpack.c.h.s8.bf16 %v425_v26 }
 0x4fc   : > { %3949 = vmatpush1.bf16.msra.mxu1 %v1083_v4  ;;  %v1262_v4 = vunpack.c.h.s8.bf16 %v426_v56 }
 0x4fd   : > { %4113 = vmatpush1.bf16.msra.mxu0 %v1085_v5  ;;  %3950 = vmatprep.subr.bf16.mxu1 %v1106_v53  ;;  %v446_v5 = vld [vmem:[%s5389_s21 + $0x4b8] sm:$0xff]  ;;  %v448_v53 = vld [vmem:[%s5389_s21 + $0x4c8] sm:$0xff] }
 0x4fe   : > { %4114 = vmatprep.subr.bf16.mxu0 %v1108_v25  ;;  %v1259_v25 = vunpack.c.h.s8.bf16 %v423_v1  ;;  %v1282_v13 = vunpack.c.l.s8.bf16 %v446_v5  ;;  %v1304_v10 = vunpack.c.h.s8.bf16 %v446_v5 }
 0x500   : > { %3951 = vmatpush1.bf16.msra.mxu1 %v1105_v6  ;;  %v1284_v6 = vunpack.c.l.s8.bf16 %v448_v53 }
 0x501   : > { %4115 = vmatpush1.bf16.msra.mxu0 %v1107_v7  ;;  %3952 = vmatprep.subr.bf16.mxu1 %v1128_v20  ;;  %v445_v7 = vld [vmem:[%s5389_s21 + $0x4b0] sm:$0xff]  ;;  %v447_v20 = vld [vmem:[%s5389_s21 + $0x4c0] sm:$0xff] }
 0x502   : > { %4116 = vmatprep.subr.bf16.mxu0 %v1130_v21  ;;  %v1281_v21 = vunpack.c.l.s8.bf16 %v445_v7  ;;  %v1283_v8 = vunpack.c.l.s8.bf16 %v447_v20  ;;  %v1305_v16 = vunpack.c.h.s8.bf16 %v447_v20  ;;  %v533_v20 = vld [vmem:[%s5389_s21 + $0x770] sm:$0xff] }
 0x504   : > { %3953 = vmatpush1.bf16.msra.mxu1 %v1127_v11  ;;  %v1306_v11 = vunpack.c.h.s8.bf16 %v448_v53 }
 0x505   : > { %4117 = vmatpush1.bf16.msra.mxu0 %v1129_v12  ;;  %3954 = vmatprep.subr.bf16.mxu1 %v1150_v14  ;;  %v468_v12 = vld [vmem:[%s5389_s21 + $0x568] sm:$0xff]  ;;  %v470_v14 = vld [vmem:[%s5389_s21 + $0x578] sm:$0xff] }
 0x506   : > { %4118 = vmatprep.subr.bf16.mxu0 %v1152_v15  ;;  %v1303_v15 = vunpack.c.h.s8.bf16 %v445_v7  ;;  %v1326_v23 = vunpack.c.l.s8.bf16 %v468_v12  ;;  %v1348_v33 = vunpack.c.h.s8.bf16 %v468_v12 }
 0x508   : > { %3955 = vmatpush1.bf16.msra.mxu1 %v1149_v24  ;;  %v1328_v24 = vunpack.c.l.s8.bf16 %v470_v14 }
 0x509   : > { %4119 = vmatpush1.bf16.msra.mxu0 %v1151_v29  ;;  %3956 = vmatprep.subr.bf16.mxu1 %v1172_v30  ;;  %v467_v29 = vld [vmem:[%s5389_s21 + $0x560] sm:$0xff]  ;;  %v469_v30 = vld [vmem:[%s5389_s21 + $0x570] sm:$0xff] }
 0x50a   : > { %4120 = vmatprep.subr.bf16.mxu0 %v1174_v31  ;;  %v1325_v31 = vunpack.c.l.s8.bf16 %v467_v29  ;;  %v1327_v32 = vunpack.c.l.s8.bf16 %v469_v30  ;;  %v1349_v57 = vunpack.c.h.s8.bf16 %v469_v30  ;;  %v555_v30 = vld [vmem:[%s5389_s21 + $0x820] sm:$0xff] }
 0x50c   : > { %3957 = vmatpush1.bf16.msra.mxu1 %v1171_v34  ;;  %v1350_v34 = vunpack.c.h.s8.bf16 %v470_v14  ;;  %v556_v14 = vld [vmem:[%s5389_s21 + $0x828] sm:$0xff] }
 0x50d   : > { %4121 = vmatpush1.bf16.msra.mxu0 %v1173_v38  ;;  %3958 = vmatprep.subr.bf16.mxu1 %v1194_v39  ;;  %v490_v38 = vld [vmem:[%s5389_s21 + $0x618] sm:$0xff]  ;;  %v492_v39 = vld [vmem:[%s5389_s21 + $0x628] sm:$0xff] }
 0x50e   : > { %4122 = vmatprep.subr.bf16.mxu0 %v1196_v52  ;;  %v1347_v52 = vunpack.c.h.s8.bf16 %v467_v29  ;;  %v1370_v63 = vunpack.c.l.s8.bf16 %v490_v38  ;;  %v1392_v56 = vunpack.c.h.s8.bf16 %v490_v38 }
 0x510   : > { %3959 = vmatpush1.bf16.msra.mxu1 %v1193_v42  ;;  %v1372_v42 = vunpack.c.l.s8.bf16 %v492_v39 }
 0x511   : > { %4123 = vmatpush1.bf16.msra.mxu0 %v1195_v45  ;;  %3960 = vmatprep.subr.bf16.mxu1 %v1216_v47  ;;  %v489_v45 = vld [vmem:[%s5389_s21 + $0x610] sm:$0xff]  ;;  %v491_v47 = vld [vmem:[%s5389_s21 + $0x620] sm:$0xff] }
 0x512   : > { %4124 = vmatprep.subr.bf16.mxu0 %v1218_v48  ;;  %v1369_v48 = vunpack.c.l.s8.bf16 %v489_v45  ;;  %v1371_v51 = vunpack.c.l.s8.bf16 %v491_v47  ;;  %v1393_v1 = vunpack.c.h.s8.bf16 %v491_v47  ;;  %v577_v47 = vld [vmem:[%s5389_s21 + $0x8d0] sm:$0xff] }
 0x514   : > { %3961 = vmatpush1.bf16.msra.mxu1 %v1215_v60  ;;  %v1394_v60 = vunpack.c.h.s8.bf16 %v492_v39  ;;  %v578_v39 = vld [vmem:[%s5389_s21 + $0x8d8] sm:$0xff] }
 0x515   : > { %4125 = vmatpush1.bf16.msra.mxu0 %v1217_v61  ;;  %3962 = vmatprep.subr.bf16.mxu1 %v1238_v62  ;;  %v512_v61 = vld [vmem:[%s5389_s21 + $0x6c8] sm:$0xff]  ;;  %v514_v62 = vld [vmem:[%s5389_s21 + $0x6d8] sm:$0xff] }
 0x516   : > { %4126 = vmatprep.subr.bf16.mxu0 %v1240_v0  ;;  %v1391_v0 = vunpack.c.h.s8.bf16 %v489_v45  ;;  %v1414_v26 = vunpack.c.l.s8.bf16 %v512_v61  ;;  %v1436_v5 = vunpack.c.h.s8.bf16 %v512_v61  ;;  %v1438_v53 = vunpack.c.h.s8.bf16 %v514_v62 }
 0x518   : > { %3963 = vmatpush1.bf16.msra.mxu1 %v1237_v46  ;;  %v1416_v46 = vunpack.c.l.s8.bf16 %v514_v62  ;;  %v600_v62 = vld [vmem:[%s5389_s21 + $0x988] sm:$0xff] }
 0x519   : > { %4127 = vmatpush1.bf16.msra.mxu0 %v1239_v2  ;;  %3964 = vmatprep.subr.bf16.mxu1 %v1260_v3  ;;  %v511_v2 = vld [vmem:[%s5389_s21 + $0x6c0] sm:$0xff]  ;;  %v513_v3 = vld [vmem:[%s5389_s21 + $0x6d0] sm:$0xff] }
 0x51a   : > { %4128 = vmatprep.subr.bf16.mxu0 %v1262_v4  ;;  %v1413_v4 = vunpack.c.l.s8.bf16 %v511_v2 }
 0x51c   : > { %3965 = vmatpush1.bf16.msra.mxu1 %v1259_v25  ;;  %v534_v25 = vld [vmem:[%s5389_s21 + $0x778] sm:$0xff] }
 0x51d   : > { %4129 = vmatpush1.bf16.msra.mxu0 %v1261_v9  ;;  %3966 = vmatprep.subr.bf16.mxu1 %v1282_v13  ;;  %v536_v9 = vld [vmem:[%s5389_s21 + $0x788] sm:$0xff]  ;;  %v1435_v13 = vunpack.c.h.s8.bf16 %v511_v2 }
 0x51e   : > { %4130 = vmatprep.subr.bf16.mxu0 %v1284_v6  ;;  %v1437_v6 = vunpack.c.h.s8.bf16 %v513_v3  ;;  %v1460_v7 = vunpack.c.l.s8.bf16 %v536_v9  ;;  %v1482_v12 = vunpack.c.h.s8.bf16 %v536_v9  ;;  %v622_v9 = vld [vmem:[%s5389_s21 + $0xa38] sm:$0xff] }
 0x520   : > { %3967 = vmatpush1.bf16.msra.mxu1 %v1281_v21  ;;  %v535_v21 = vld [vmem:[%s5389_s21 + $0x780] sm:$0xff] }
 0x521   : > { %4131 = vmatpush1.bf16.msra.mxu0 %v1283_v8  ;;  %3968 = vmatprep.subr.bf16.mxu1 %v1304_v10  ;;  %v1457_v8 = vunpack.c.l.s8.bf16 %v533_v20  ;;  %v1459_v10 = vunpack.c.l.s8.bf16 %v535_v21 }
 0x522   : > { %4132 = vmatprep.subr.bf16.mxu0 %v1306_v11  ;;  %v1480_v11 = vunpack.c.h.s8.bf16 %v534_v25 }
 0x524   : > { %3969 = vmatpush1.bf16.msra.mxu1 %v1303_v15  ;;  %v558_v15 = vld [vmem:[%s5389_s21 + $0x838] sm:$0xff] }
 0x525   : > { %4133 = vmatpush1.bf16.msra.mxu0 %v1305_v16  ;;  %3970 = vmatprep.subr.bf16.mxu1 %v1326_v23  ;;  %v1479_v16 = vunpack.c.h.s8.bf16 %v533_v20  ;;  %v1481_v23 = vunpack.c.h.s8.bf16 %v535_v21  ;;  %v1504_v29 = vunpack.c.l.s8.bf16 %v558_v15  ;;  %v1526_v38 = vunpack.c.h.s8.bf16 %v558_v15  ;;  %v621_v21 = vld [vmem:[%s5389_s21 + $0xa30] sm:$0xff]  ;;  %v644_v15 = vld [vmem:[%s5389_s21 + $0xae8] sm:$0xff] }
 0x526   : > { %4134 = vmatprep.subr.bf16.mxu0 %v1328_v24  ;;  %v1502_v24 = vunpack.c.l.s8.bf16 %v556_v14 }
 0x528   : > { %3971 = vmatpush1.bf16.msra.mxu1 %v1325_v31  ;;  %v557_v31 = vld [vmem:[%s5389_s21 + $0x830] sm:$0xff] }
 0x529   : > { %4135 = vmatpush1.bf16.msra.mxu0 %v1327_v32  ;;  %3972 = vmatprep.subr.bf16.mxu1 %v1348_v33  ;;  %v1501_v32 = vunpack.c.l.s8.bf16 %v555_v30  ;;  %v1503_v33 = vunpack.c.l.s8.bf16 %v557_v31 }
 0x52a   : > { %4136 = vmatprep.subr.bf16.mxu0 %v1350_v34  ;;  %v1524_v34 = vunpack.c.h.s8.bf16 %v556_v14 }
 0x52c   : > { %3973 = vmatpush1.bf16.msra.mxu1 %v1347_v52  ;;  %v580_v52 = vld [vmem:[%s5389_s21 + $0x8e8] sm:$0xff] }
 0x52d   : > { %4137 = vmatpush1.bf16.msra.mxu0 %v1349_v57  ;;  %3983 = vmatprep.subr.bf16.mxu1 %v1370_v63  ;;  %v1523_v57 = vunpack.c.h.s8.bf16 %v555_v30  ;;  %v1525_v63 = vunpack.c.h.s8.bf16 %v557_v31  ;;  %v1548_v45 = vunpack.c.l.s8.bf16 %v580_v52  ;;  %v1570_v61 = vunpack.c.h.s8.bf16 %v580_v52  ;;  %v643_v31 = vld [vmem:[%s5389_s21 + $0xae0] sm:$0xff]  ;;  %v666_v52 = vld [vmem:[%s5389_s21 + $0xb98] sm:$0xff] }
 0x52e   : > { %4147 = vmatprep.subr.bf16.mxu0 %v1372_v42  ;;  %v1546_v42 = vunpack.c.l.s8.bf16 %v578_v39 }
 0x52f   : > { %3975 = vmatmul.mubr.bf16.vlgmr.msra.gmra.mrb[20].mxu1 %v5469_v58 }
 0x530   : > { %4139 = vmatmul.mubr.bf16.vlgmr.msra.gmra.mrb[20].mxu0 %v5469_v58  ;;  %3984 = vmatpush1.bf16.msra.mxu1 %v1369_v48  ;;  %v1415_v58 = vunpack.c.l.s8.bf16 %v513_v3  ;;  %v579_v48 = vld [vmem:[%s5389_s21 + $0x8e0] sm:$0xff] }
 0x531   : > { %4148 = vmatpush1.bf16.msra.mxu0 %v1371_v51  ;;  %3985 = vmatprep.subr.bf16.mxu1 %v1392_v56  ;;  %v1545_v51 = vunpack.c.l.s8.bf16 %v577_v47  ;;  %v1547_v56 = vunpack.c.l.s8.bf16 %v579_v48  ;;  %v599_v3 = vld [vmem:[%s5389_s21 + $0x980] sm:$0xff] }
 0x532   : > { %4149 = vmatprep.subr.bf16.mxu0 %v1394_v60  ;;  %4015 = vmatprep.mubr.bf16.mxu1 %v5479_v41  ;;  %v1568_v60 = vunpack.c.h.s8.bf16 %v578_v39 }
 0x533   : > { %4179 = vmatprep.mubr.bf16.mxu0 %v5479_v41  ;;  %v1458_v41 = vunpack.c.l.s8.bf16 %v534_v25 }
 0x534   : > { %3986 = vmatpush1.bf16.msra.mxu1 %v1391_v0  ;;  %v602_v0 = vld [vmem:[%s5389_s21 + $0x998] sm:$0xff] }
 0x535   : > { %4150 = vmatpush1.bf16.msra.mxu0 %v1393_v1  ;;  %3987 = vmatprep.subr.bf16.mxu1 %v1414_v26  ;;  %v1567_v1 = vunpack.c.h.s8.bf16 %v577_v47  ;;  %v1569_v26 = vunpack.c.h.s8.bf16 %v579_v48  ;;  %v1592_v2 = vunpack.c.l.s8.bf16 %v602_v0  ;;  %v1614_v25 = vunpack.c.h.s8.bf16 %v602_v0  ;;  %v665_v48 = vld [vmem:[%s5389_s21 + $0xb90] sm:$0xff]  ;;  %v688_v0 = vld [vmem:[%s5389_s21 + $0xc48] sm:$0xff] }
 0x536   : > { %4151 = vmatprep.subr.bf16.mxu0 %v1416_v46  ;;  %v1590_v46 = vunpack.c.l.s8.bf16 %v600_v62 }
 0x538   : > { %3988 = vmatpush1.bf16.msra.mxu1 %v1413_v4  ;;  %v601_v4 = vld [vmem:[%s5389_s21 + $0x990] sm:$0xff] }
 0x539   : > { %4152 = vmatpush1.bf16.msra.mxu0 %v1415_v58  ;;  %3989 = vmatprep.subr.bf16.mxu1 %v1436_v5  ;;  %v1589_v58 = vunpack.c.l.s8.bf16 %v599_v3  ;;  %v1591_v5 = vunpack.c.l.s8.bf16 %v601_v4 }
 0x53a   : > { %4153 = vmatprep.subr.bf16.mxu0 %v1438_v53  ;;  %v1612_v53 = vunpack.c.h.s8.bf16 %v600_v62 }
 0x53c   : > { %3990 = vmatpush1.bf16.msra.mxu1 %v1435_v13  ;;  %v624_v13 = vld [vmem:[%s5389_s21 + $0xa48] sm:$0xff] }
 0x53d   : > { %4154 = vmatpush1.bf16.msra.mxu0 %v1437_v6  ;;  %3991 = vmatprep.subr.bf16.mxu1 %v1458_v41  ;;  %v1611_v6 = vunpack.c.h.s8.bf16 %v599_v3  ;;  %v1613_v41 = vunpack.c.h.s8.bf16 %v601_v4  ;;  %v1636_v20 = vunpack.c.l.s8.bf16 %v624_v13  ;;  %v1658_v14 = vunpack.c.h.s8.bf16 %v624_v13  ;;  %v687_v4 = vld [vmem:[%s5389_s21 + $0xc40] sm:$0xff]  ;;  %v712_v13 = vld [vmem:[%s5389_s21 + $0xd08] sm:$0xff] }
 0x53e   : > { %4155 = vmatprep.subr.bf16.mxu0 %v1460_v7  ;;  %v1634_v7 = vunpack.c.l.s8.bf16 %v622_v9 }
 0x540   : > { %3992 = vmatpush1.bf16.msra.mxu1 %v1457_v8  ;;  %v623_v8 = vld [vmem:[%s5389_s21 + $0xa40] sm:$0xff] }
 0x541   : > { %4156 = vmatpush1.bf16.msra.mxu0 %v1459_v10  ;;  %3993 = vmatprep.subr.bf16.mxu1 %v1480_v11  ;;  %v1633_v10 = vunpack.c.l.s8.bf16 %v621_v21  ;;  %v1635_v11 = vunpack.c.l.s8.bf16 %v623_v8 }
 0x542   : > { %4157 = vmatprep.subr.bf16.mxu0 %v1482_v12  ;;  %v1656_v12 = vunpack.c.h.s8.bf16 %v622_v9  ;;  %v710_v9 = vld [vmem:[%s5389_s21 + $0xcf8] sm:$0xff] }
 0x544   : > { %3994 = vmatpush1.bf16.msra.mxu1 %v1479_v16  ;;  %v646_v16 = vld [vmem:[%s5389_s21 + $0xaf8] sm:$0xff] }
 0x545   : > { %4158 = vmatpush1.bf16.msra.mxu0 %v1481_v23  ;;  %3995 = vmatprep.subr.bf16.mxu1 %v1502_v24  ;;  %v1655_v23 = vunpack.c.h.s8.bf16 %v621_v21  ;;  %v1657_v24 = vunpack.c.h.s8.bf16 %v623_v8  ;;  %v1680_v30 = vunpack.c.l.s8.bf16 %v646_v16  ;;  %v1702_v39 = vunpack.c.h.s8.bf16 %v646_v16  ;;  %v711_v21 = vld [vmem:[%s5389_s21 + $0xd00] sm:$0xff] }
 0x546   : > { %4159 = vmatprep.subr.bf16.mxu0 %v1504_v29  ;;  %v1678_v29 = vunpack.c.l.s8.bf16 %v644_v15 }
 0x548   : > { %3996 = vmatpush1.bf16.msra.mxu1 %v1501_v32  ;;  %v645_v32 = vld [vmem:[%s5389_s21 + $0xaf0] sm:$0xff] }
 0x549   : > { %4160 = vmatpush1.bf16.msra.mxu0 %v1503_v33  ;;  %3997 = vmatprep.subr.bf16.mxu1 %v1524_v34  ;;  %v1677_v33 = vunpack.c.l.s8.bf16 %v643_v31  ;;  %v1679_v34 = vunpack.c.l.s8.bf16 %v645_v32 }
 0x54a   : > { %4161 = vmatprep.subr.bf16.mxu0 %v1526_v38  ;;  %v1700_v38 = vunpack.c.h.s8.bf16 %v644_v15  ;;  %v734_v15 = vld [vmem:[%s5389_s21 + $0xdb8] sm:$0xff] }
 0x54c   : > { %3998 = vmatpush1.bf16.msra.mxu1 %v1523_v57  ;;  %v668_v57 = vld [vmem:[%s5389_s21 + $0xba8] sm:$0xff] }
 0x54d   : > { %4162 = vmatpush1.bf16.msra.mxu0 %v1525_v63  ;;  %3999 = vmatprep.subr.bf16.mxu1 %v1546_v42  ;;  %v1699_v63 = vunpack.c.h.s8.bf16 %v643_v31  ;;  %v1701_v42 = vunpack.c.h.s8.bf16 %v645_v32  ;;  %v1724_v47 = vunpack.c.l.s8.bf16 %v668_v57  ;;  %v1746_v62 = vunpack.c.h.s8.bf16 %v668_v57  ;;  %v733_v31 = vld [vmem:[%s5389_s21 + $0xdb0] sm:$0xff] }
 0x54e   : > { %4163 = vmatprep.subr.bf16.mxu0 %v1548_v45  ;;  %v1722_v45 = vunpack.c.l.s8.bf16 %v666_v52 }
 0x550   : > { %4000 = vmatpush1.bf16.msra.mxu1 %v1545_v51  ;;  %v667_v51 = vld [vmem:[%s5389_s21 + $0xba0] sm:$0xff] }
 0x551   : > { %4164 = vmatpush1.bf16.msra.mxu0 %v1547_v56  ;;  %4001 = vmatprep.subr.bf16.mxu1 %v1568_v60  ;;  %v1721_v56 = vunpack.c.l.s8.bf16 %v665_v48  ;;  %v1723_v60 = vunpack.c.l.s8.bf16 %v667_v51 }
 0x552   : > { %4165 = vmatprep.subr.bf16.mxu0 %v1570_v61  ;;  %v1744_v61 = vunpack.c.h.s8.bf16 %v666_v52  ;;  %v756_v52 = vld [vmem:[%s5389_s21 + $0xe68] sm:$0xff] }
 0x554   : > { %4002 = vmatpush1.bf16.msra.mxu1 %v1567_v1  ;;  %v690_v1 = vld [vmem:[%s5389_s21 + $0xc58] sm:$0xff] }
 0x555   : > { %4166 = vmatpush1.bf16.msra.mxu0 %v1569_v26  ;;  %4003 = vmatprep.subr.bf16.mxu1 %v1590_v46  ;;  %v1743_v26 = vunpack.c.h.s8.bf16 %v665_v48  ;;  %v1745_v46 = vunpack.c.h.s8.bf16 %v667_v51  ;;  %v1768_v3 = vunpack.c.l.s8.bf16 %v690_v1  ;;  %v755_v48 = vld [vmem:[%s5389_s21 + $0xe60] sm:$0xff] }
 0x556   : > { %4167 = vmatprep.subr.bf16.mxu0 %v1592_v2  ;;  %v1766_v2 = vunpack.c.l.s8.bf16 %v688_v0 }
 0x558   : > { %4004 = vmatpush1.bf16.msra.mxu1 %v1589_v58  ;;  %v689_v58 = vld [vmem:[%s5389_s21 + $0xc50] sm:$0xff] }
 0x559   : > { %4168 = vmatpush1.bf16.msra.mxu0 %v1591_v5  ;;  %4005 = vmatprep.subr.bf16.mxu1 %v1612_v53  ;;  %v1765_v5 = vunpack.c.l.s8.bf16 %v687_v4  ;;  %v1788_v53 = vunpack.c.h.s8.bf16 %v688_v0  ;;  %v778_v0 = vld [vmem:[%s5389_s21 + $0xf18] sm:$0xff] }
 0x55a   : > { %4169 = vmatprep.subr.bf16.mxu0 %v1614_v25  ;;  %v1790_v25 = vunpack.c.h.s8.bf16 %v690_v1 }
 0x55c   : > { %4006 = vmatpush1.bf16.msra.mxu1 %v1611_v6  ;;  %v1787_v6 = vunpack.c.h.s8.bf16 %v687_v4  ;;  %v777_v4 = vld [vmem:[%s5389_s21 + $0xf10] sm:$0xff] }
 0x55d   : > { %4170 = vmatpush1.bf16.msra.mxu0 %v1613_v41  ;;  %4007 = vmatprep.subr.bf16.mxu1 %v1634_v7  ;;  %v1789_v41 = vunpack.c.h.s8.bf16 %v689_v58  ;;  %v1812_v7 = vunpack.c.l.s8.bf16 %v712_v13 }
 0x55e   : > { %4171 = vmatprep.subr.bf16.mxu0 %v1636_v20  ;;  %v709_v20 = vld [vmem:[%s5389_s21 + $0xcf0] sm:$0xff] }
 0x55f   : > { %v1809_v8 = vunpack.c.l.s8.bf16 %v709_v20  ;;  %v1831_v16 = vunpack.c.h.s8.bf16 %v709_v20  ;;  %v799_v20 = vld [vmem:[%s5389_s21 + $0xfc0] sm:$0xff] }
 0x560   : > { %4008 = vmatpush1.bf16.msra.mxu1 %v1633_v10  ;;  %v1811_v10 = vunpack.c.l.s8.bf16 %v711_v21 }
 0x561   : > { %4172 = vmatpush1.bf16.msra.mxu0 %v1635_v11  ;;  %4009 = vmatprep.subr.bf16.mxu1 %v1656_v12  ;;  %v1832_v11 = vunpack.c.h.s8.bf16 %v710_v9  ;;  %v1834_v12 = vunpack.c.h.s8.bf16 %v712_v13 }
 0x562   : > { %4173 = vmatprep.subr.bf16.mxu0 %v1658_v14  ;;  %v732_v14 = vld [vmem:[%s5389_s21 + $0xda8] sm:$0xff] }
 0x564   : > { %4010 = vmatpush1.bf16.msra.mxu1 %v1655_v23  ;;  %v1833_v23 = vunpack.c.h.s8.bf16 %v711_v21 }
 0x565   : > { %4174 = vmatpush1.bf16.msra.mxu0 %v1657_v24  ;;  %4011 = vmatprep.subr.bf16.mxu1 %v1678_v29  ;;  %v1854_v24 = vunpack.c.l.s8.bf16 %v732_v14  ;;  %v1856_v29 = vunpack.c.l.s8.bf16 %v734_v15 }
 0x566   : > { %4175 = vmatprep.subr.bf16.mxu0 %v1680_v30  ;;  %v731_v30 = vld [vmem:[%s5389_s21 + $0xda0] sm:$0xff] }
 0x567   : > { %v1853_v32 = vunpack.c.l.s8.bf16 %v731_v30  ;;  %v1875_v57 = vunpack.c.h.s8.bf16 %v731_v30  ;;  %v821_v30 = vld [vmem:[%s5389_s21 + $0x1070] sm:$0xff] }
 0x568   : > { %4012 = vmatpush1.bf16.msra.mxu1 %v1677_v33  ;;  %v1855_v33 = vunpack.c.l.s8.bf16 %v733_v31 }
 0x569   : > { %4176 = vmatpush1.bf16.msra.mxu0 %v1679_v34  ;;  %4013 = vmatprep.subr.bf16.mxu1 %v1700_v38  ;;  %v1876_v34 = vunpack.c.h.s8.bf16 %v732_v14  ;;  %v1878_v38 = vunpack.c.h.s8.bf16 %v734_v15  ;;  %v822_v14 = vld [vmem:[%s5389_s21 + $0x1078] sm:$0xff] }
 0x56a   : > { %4177 = vmatprep.subr.bf16.mxu0 %v1702_v39  ;;  %v754_v39 = vld [vmem:[%s5389_s21 + $0xe58] sm:$0xff] }
 0x56c   : > { %4014 = vmatpush1.bf16.msra.mxu1 %v1699_v63  ;;  %v1877_v63 = vunpack.c.h.s8.bf16 %v733_v31 }
 0x56d   : > { %4178 = vmatpush1.bf16.msra.mxu0 %v1701_v42  ;;  %4024 = vmatprep.subr.bf16.mxu1 %v1722_v45  ;;  %v1898_v42 = vunpack.c.l.s8.bf16 %v754_v39  ;;  %v1900_v45 = vunpack.c.l.s8.bf16 %v756_v52 }
 0x56e   : > { %4188 = vmatprep.subr.bf16.mxu0 %v1724_v47  ;;  %v753_v47 = vld [vmem:[%s5389_s21 + $0xe50] sm:$0xff] }
 0x56f   : > { %4016 = vmatmul.mubr.bf16.vlgmr.msra.gmra.mrb[20].mxu1 %v5521_v36  ;;  %v1897_v51 = vunpack.c.l.s8.bf16 %v753_v47  ;;  %v1919_v1 = vunpack.c.h.s8.bf16 %v753_v47  ;;  %v843_v47 = vld [vmem:[%s5389_s21 + $0x1120] sm:$0xff] }
 0x570   : > { %4180 = vmatmul.mubr.bf16.vlgmr.msra.gmra.mrb[20].mxu0 %v5521_v36  ;;  %4025 = vmatpush1.bf16.msra.mxu1 %v1721_v56  ;;  %v1767_v36 = vunpack.c.l.s8.bf16 %v689_v58  ;;  %v1899_v56 = vunpack.c.l.s8.bf16 %v755_v48 }
 0x571   : > { %4189 = vmatpush1.bf16.msra.mxu0 %v1723_v60  ;;  %4026 = vmatprep.subr.bf16.mxu1 %v1744_v61  ;;  %v1920_v60 = vunpack.c.h.s8.bf16 %v754_v39  ;;  %v1922_v61 = vunpack.c.h.s8.bf16 %v756_v52  ;;  %v844_v39 = vld [vmem:[%s5389_s21 + $0x1128] sm:$0xff] }
 0x572   : > { %4190 = vmatprep.subr.bf16.mxu0 %v1746_v62  ;;  %4056 = vmatprep.mubr.bf16.mxu1 %v5444_v55  ;;  %v776_v62 = vld [vmem:[%s5389_s21 + $0xf08] sm:$0xff] }
 0x573   : > { %4220 = vmatprep.mubr.bf16.mxu0 %v5444_v55  ;;  %v1810_v55 = vunpack.c.l.s8.bf16 %v710_v9  ;;  %v800_v9 = vld [vmem:[%s5389_s21 + $0xfc8] sm:$0xff] }
 0x574   : > { %4027 = vmatpush1.bf16.msra.mxu1 %v1743_v26  ;;  %v1921_v26 = vunpack.c.h.s8.bf16 %v755_v48 }
 0x575   : > { %4191 = vmatpush1.bf16.msra.mxu0 %v1745_v46  ;;  %4028 = vmatprep.subr.bf16.mxu1 %v1766_v2  ;;  %v1942_v46 = vunpack.c.l.s8.bf16 %v776_v62  ;;  %v1944_v2 = vunpack.c.l.s8.bf16 %v778_v0 }
 0x576   : > { %4192 = vmatprep.subr.bf16.mxu0 %v1768_v3  ;;  %v775_v3 = vld [vmem:[%s5389_s21 + $0xf00] sm:$0xff] }
 0x577   : > { %v1941_v58 = vunpack.c.l.s8.bf16 %v775_v3  ;;  %v1963_v13 = vunpack.c.h.s8.bf16 %v775_v3  ;;  %v865_v3 = vld [vmem:[%s5389_s21 + $0x11d0] sm:$0xff] }
 0x578   : > { %4029 = vmatpush1.bf16.msra.mxu1 %v1765_v5  ;;  %v1943_v5 = vunpack.c.l.s8.bf16 %v777_v4 }
 0x579   : > { %4193 = vmatpush1.bf16.msra.mxu0 %v1767_v36  ;;  %4030 = vmatprep.subr.bf16.mxu1 %v1788_v53  ;;  %v1964_v36 = vunpack.c.h.s8.bf16 %v776_v62  ;;  %v1966_v53 = vunpack.c.h.s8.bf16 %v778_v0  ;;  %v866_v62 = vld [vmem:[%s5389_s21 + $0x11d8] sm:$0xff] }
 0x57a   : > { %4194 = vmatprep.subr.bf16.mxu0 %v1790_v25  ;;  %v798_v25 = vld [vmem:[%s5389_s21 + $0xfb8] sm:$0xff] }
 0x57c   : > { %4031 = vmatpush1.bf16.msra.mxu1 %v1787_v6  ;;  %v1965_v6 = vunpack.c.h.s8.bf16 %v777_v4 }
 0x57d   : > { %4195 = vmatpush1.bf16.msra.mxu0 %v1789_v41  ;;  %4032 = vmatprep.subr.bf16.mxu1 %v1810_v55  ;;  %v1986_v41 = vunpack.c.l.s8.bf16 %v798_v25  ;;  %v1988_v55 = vunpack.c.l.s8.bf16 %v800_v9 }
 0x57e   : > { %4196 = vmatprep.subr.bf16.mxu0 %v1812_v7  ;;  %v797_v7 = vld [vmem:[%s5389_s21 + $0xfb0] sm:$0xff] }
 0x57f   : > { %v1985_v21 = vunpack.c.l.s8.bf16 %v797_v7  ;;  %v2007_v15 = vunpack.c.h.s8.bf16 %v797_v7 }
 0x580   : > { %4033 = vmatpush1.bf16.msra.mxu1 %v1809_v8  ;;  %v1987_v8 = vunpack.c.l.s8.bf16 %v799_v20 }
 0x581   : > { %4197 = vmatpush1.bf16.msra.mxu0 %v1811_v10  ;;  %4034 = vmatprep.subr.bf16.mxu1 %v1832_v11  ;;  %v2008_v10 = vunpack.c.h.s8.bf16 %v798_v25  ;;  %v2010_v11 = vunpack.c.h.s8.bf16 %v800_v9  ;;  %v2141_v9 = vunpack.c.h.s8.bf16 %v865_v3 }
 0x582   : > { %4198 = vmatprep.subr.bf16.mxu0 %v1834_v12  ;;  %v820_v12 = vld [vmem:[%s5389_s21 + $0x1068] sm:$0xff] }
 0x584   : > { %4035 = vmatpush1.bf16.msra.mxu1 %v1831_v16  ;;  %v2009_v16 = vunpack.c.h.s8.bf16 %v799_v20  ;;  %v6344_v20 = vld [vmem:[%s5399_s14 + $0x10] sm:$0x3f] }
 0x585   : > { %4199 = vmatpush1.bf16.msra.mxu0 %v1833_v23  ;;  %4036 = vmatprep.subr.bf16.mxu1 %v1854_v24  ;;  %v2030_v23 = vunpack.c.l.s8.bf16 %v820_v12  ;;  %v2032_v24 = vunpack.c.l.s8.bf16 %v822_v14 }
 0x586   : > { %4200 = vmatprep.subr.bf16.mxu0 %v1856_v29  ;;  %v819_v29 = vld [vmem:[%s5389_s21 + $0x1060] sm:$0xff] }
 0x587   : > { %v2029_v31 = vunpack.c.l.s8.bf16 %v819_v29  ;;  %v2051_v52 = vunpack.c.h.s8.bf16 %v819_v29 }
 0x588   : > { %4037 = vmatpush1.bf16.msra.mxu1 %v1853_v32  ;;  %v2031_v32 = vunpack.c.l.s8.bf16 %v821_v30 }
 0x589   : > { %4201 = vmatpush1.bf16.msra.mxu0 %v1855_v33  ;;  %4038 = vmatprep.subr.bf16.mxu1 %v1876_v34  ;;  %v2052_v33 = vunpack.c.h.s8.bf16 %v820_v12  ;;  %v2054_v34 = vunpack.c.h.s8.bf16 %v822_v14  ;;  %v910_v12 = vld [vmem:[%s5389_s21 + $0x1338] sm:$0xff] }
 0x58a   : > { %4202 = vmatprep.subr.bf16.mxu0 %v1878_v38  ;;  %v842_v38 = vld [vmem:[%s5389_s21 + $0x1118] sm:$0xff] }
 0x58b   : > { %v5060_v14 = vld [vmem:[%s5399_s14 + $0x8] sm:$0xff] }
 0x58c   : > { %4039 = vmatpush1.bf16.msra.mxu1 %v1875_v57  ;;  %v2053_v57 = vunpack.c.h.s8.bf16 %v821_v30 }
 0x58d   : > { %4203 = vmatpush1.bf16.msra.mxu0 %v1877_v63  ;;  %4040 = vmatprep.subr.bf16.mxu1 %v1898_v42  ;;  %v2074_v63 = vunpack.c.l.s8.bf16 %v842_v38  ;;  %v2076_v42 = vunpack.c.l.s8.bf16 %v844_v39 }
 0x58e   : > { %4204 = vmatprep.subr.bf16.mxu0 %v1900_v45  ;;  %v841_v45 = vld [vmem:[%s5389_s21 + $0x1110] sm:$0xff] }
 0x58f   : > { %v2073_v48 = vunpack.c.l.s8.bf16 %v841_v45  ;;  %v2095_v0 = vunpack.c.h.s8.bf16 %v841_v45 }
 0x590   : > { %4041 = vmatpush1.bf16.msra.mxu1 %v1897_v51  ;;  %v2075_v51 = vunpack.c.l.s8.bf16 %v843_v47 }
 0x591   : > { %4205 = vmatpush1.bf16.msra.mxu0 %v1899_v56  ;;  %4042 = vmatprep.subr.bf16.mxu1 %v1920_v60  ;;  %v2096_v56 = vunpack.c.h.s8.bf16 %v842_v38  ;;  %v2098_v60 = vunpack.c.h.s8.bf16 %v844_v39  ;;  %v2208_v38 = vunpack.c.l.s8.bf16 %v910_v12  ;;  %v907_v39 = vld [vmem:[%s5389_s21 + $0x1320] sm:$0xff] }
 0x592   : > { %4206 = vmatprep.subr.bf16.mxu0 %v1922_v61  ;;  %v864_v61 = vld [vmem:[%s5389_s21 + $0x11c8] sm:$0xff] }
 0x594   : > { %4043 = vmatpush1.bf16.msra.mxu1 %v1919_v1  ;;  %v2097_v1 = vunpack.c.h.s8.bf16 %v843_v47 }
 0x595   : > { %4207 = vmatpush1.bf16.msra.mxu0 %v1921_v26  ;;  %4044 = vmatprep.subr.bf16.mxu1 %v1942_v46  ;;  %v2118_v26 = vunpack.c.l.s8.bf16 %v864_v61  ;;  %v2120_v46 = vunpack.c.l.s8.bf16 %v866_v62 }
 0x596   : > { %4208 = vmatprep.subr.bf16.mxu0 %v1944_v2  ;;  %v863_v2 = vld [vmem:[%s5389_s21 + $0x11c0] sm:$0xff] }
 0x597   : > { %v2117_v4 = vunpack.c.l.s8.bf16 %v863_v2  ;;  %v2139_v25 = vunpack.c.h.s8.bf16 %v863_v2  ;;  %v2230_v2 = vunpack.c.h.s8.bf16 %v910_v12 }
 0x598   : > { %4045 = vmatpush1.bf16.msra.mxu1 %v1941_v58  ;;  %v2140_v58 = vunpack.c.h.s8.bf16 %v864_v61 }
 0x599   : > { %4209 = vmatpush1.bf16.msra.mxu0 %v1943_v5  ;;  %4046 = vmatprep.subr.bf16.mxu1 %v1964_v36  ;;  %v2142_v5 = vunpack.c.h.s8.bf16 %v866_v62  ;;  %v886_v36 = vld [vmem:[%s5389_s21 + $0x1278] sm:$0xff]  ;;  %v2205_v62 = vunpack.c.l.s8.bf16 %v907_v39 }
 0x59a   : > { %4210 = vmatprep.subr.bf16.mxu0 %v1966_v53  ;;  %v888_v53 = vld [vmem:[%s5389_s21 + $0x1288] sm:$0xff] }
 0x59c   : > { %4047 = vmatpush1.bf16.msra.mxu1 %v1963_v13  ;;  %v2164_v13 = vunpack.c.l.s8.bf16 %v888_v53 }
 0x59d   : > { %4211 = vmatpush1.bf16.msra.mxu0 %v1965_v6  ;;  %4048 = vmatprep.subr.bf16.mxu1 %v1986_v41  ;;  %v885_v6 = vld [vmem:[%s5389_s21 + $0x1270] sm:$0xff]  ;;  %v887_v41 = vld [vmem:[%s5389_s21 + $0x1280] sm:$0xff] }
 0x59e   : > { %4212 = vmatprep.subr.bf16.mxu0 %v1988_v55  ;;  %v2161_v55 = vunpack.c.l.s8.bf16 %v885_v6  ;;  %v2163_v7 = vunpack.c.l.s8.bf16 %v887_v41  ;;  %v2183_v29 = vunpack.c.h.s8.bf16 %v885_v6  ;;  %v2185_v30 = vunpack.c.h.s8.bf16 %v887_v41 }
 0x5a0   : > { %4049 = vmatpush1.bf16.msra.mxu1 %v1985_v21  ;;  %v2184_v21 = vunpack.c.h.s8.bf16 %v886_v36 }
 0x5a1   : > { %4213 = vmatpush1.bf16.msra.mxu0 %v1987_v8  ;;  %4050 = vmatprep.subr.bf16.mxu1 %v2008_v10  ;;  %v2186_v8 = vunpack.c.h.s8.bf16 %v888_v53  ;;  %v6347_v10 = vld [vmem:[%s5658_s26 + $0x10] sm:$0x3f] }
 0x5a2   : > { %4214 = vmatprep.subr.bf16.mxu0 %v2010_v11  ;;  %v908_v11 = vld [vmem:[%s5389_s21 + $0x1328] sm:$0xff]  ;;  %v4485_v45 = vrot.slane %v6347_v10, %v5652_v22 }
 0x5a4   : > { %4051 = vmatpush1.bf16.msra.mxu1 %v2007_v15  ;;  %v4335_v15 = vrot.slane %v5060_v14, %v6004_v44 }
 0x5a5   : > { %4215 = vmatpush1.bf16.msra.mxu0 %v2009_v16  ;;  %4052 = vmatprep.subr.bf16.mxu1 %v2030_v23  ;;  %v4343_v16 = vrot.slane %v6344_v20, %v5648_v18  ;;  %v4339_v23 = vrot.slane %v5060_v14, %v6008_v49 }
 0x5a6   : > { %4216 = vmatprep.subr.bf16.mxu0 %v2032_v24  ;;  %v4347_v24 = vrot.slane %v6344_v20, %v5652_v22  ;;  %v2228_v22 = vunpack.c.h.s8.bf16 %v908_v11 }
 0x5a8   : > { %4053 = vmatpush1.bf16.msra.mxu1 %v2029_v31  ;;  %v5061_v31 = vld [vmem:[%s5658_s26 + $0x8] sm:$0xff] }
 0x5a9   : > { %4217 = vmatpush1.bf16.msra.mxu0 %v2031_v32  ;;  %4054 = vmatprep.subr.bf16.mxu1 %v2052_v33  ;;  %v4473_v32 = vrot.slane %v5061_v31, %v6004_v44  ;;  %v4481_v33 = vrot.slane %v6347_v10, %v5648_v18 }
 0x5aa   : > { %4218 = vmatprep.subr.bf16.mxu0 %v2054_v34  ;;  %v2206_v34 = vunpack.c.l.s8.bf16 %v908_v11 }
 0x5ac   : > { %4055 = vmatpush1.bf16.msra.mxu1 %v2051_v52  ;;  %v909_v52 = vld [vmem:[%s5389_s21 + $0x1330] sm:$0xff] }
 0x5ad   : > { %4219 = vmatpush1.bf16.msra.mxu0 %v2053_v57  ;;  %4065 = vmatprep.subr.bf16.mxu1 %v2074_v63 }
 0x5ae   : > { %4229 = vmatprep.subr.bf16.mxu0 %v2076_v42  ;;  %v4477_v42 = vrot.slane %v5061_v31, %v6008_v49 }
 0x5af   : > { %4057 = vmatmul.mubr.bf16.vlgmr.msra.gmra.mrb[20].mxu1 %v5473_v59 }
 0x5b0   : > { %4221 = vmatmul.mubr.bf16.vlgmr.msra.gmra.mrb[20].mxu0 %v5473_v59  ;;  %4066 = vmatpush1.bf16.msra.mxu1 %v2073_v48  ;;  %v2119_v59 = vunpack.c.l.s8.bf16 %v865_v3 }
 0x5b1   : > { %4230 = vmatpush1.bf16.msra.mxu0 %v2075_v51  ;;  %4067 = vmatprep.subr.bf16.mxu1 %v2096_v56 }
 0x5b2   : > { %4231 = vmatprep.subr.bf16.mxu0 %v2098_v60  ;;  %4097 = vmatprep.mubr.bf16.mxu1 %v5483_v35 }
 0x5b3   : > { %4261 = vmatprep.mubr.bf16.mxu0 %v5483_v35  ;;  %v2162_v35 = vunpack.c.l.s8.bf16 %v886_v36  ;;  %v2229_v36 = vunpack.c.h.s8.bf16 %v909_v52 }
 0x5b4   : > { %4068 = vmatpush1.bf16.msra.mxu1 %v2095_v0  ;;  %v2207_v0 = vunpack.c.l.s8.bf16 %v909_v52  ;;  %v4649_v52 = vrot.slane %v4641_v50, %v5853_v54 }
 0x5b5   : > { %4232 = vmatpush1.bf16.msra.mxu0 %v2097_v1  ;;  %4069 = vmatprep.subr.bf16.mxu1 %v2118_v26 }
 0x5b6   : > { %4233 = vmatprep.subr.bf16.mxu0 %v2120_v46 }
 0x5b8   : > { %4070 = vmatpush1.bf16.msra.mxu1 %v2117_v4 }
 0x5b9   : > { %4234 = vmatpush1.bf16.msra.mxu0 %v2119_v59  ;;  %4071 = vmatprep.subr.bf16.mxu1 %v2140_v58  ;;  %v930_v59 = vld [vmem:[%s5389_s21 + $0x13d8] sm:$0xff]  ;;  %v932_v58 = vld [vmem:[%s5389_s21 + $0x13e8] sm:$0xff] }
 0x5ba   : > { %4235 = vmatprep.subr.bf16.mxu0 %v2142_v5  ;;  %v2227_v5 = vunpack.c.h.s8.bf16 %v907_v39  ;;  %v2250_v53 = vunpack.c.l.s8.bf16 %v930_v59  ;;  %v2272_v41 = vunpack.c.h.s8.bf16 %v930_v59 }
 0x5bc   : > { %4072 = vmatpush1.bf16.msra.mxu1 %v2139_v25  ;;  %v2252_v25 = vunpack.c.l.s8.bf16 %v932_v58 }
 0x5bd   : > { %4236 = vmatpush1.bf16.msra.mxu0 %v2141_v9  ;;  %4073 = vmatprep.subr.bf16.mxu1 %v2162_v35  ;;  %v929_v9 = vld [vmem:[%s5389_s21 + $0x13d0] sm:$0xff]  ;;  %v931_v35 = vld [vmem:[%s5389_s21 + $0x13e0] sm:$0xff] }
 0x5be   : > { %4237 = vmatprep.subr.bf16.mxu0 %v2164_v13  ;;  %v2249_v13 = vunpack.c.l.s8.bf16 %v929_v9  ;;  %v2251_v6 = vunpack.c.l.s8.bf16 %v931_v35  ;;  %v2273_v11 = vunpack.c.h.s8.bf16 %v931_v35  ;;  %v4489_v35 = vrot.slane %v6347_v10, %v5814_v17 }
 0x5c0   : > { %4074 = vmatpush1.bf16.msra.mxu1 %v2161_v55  ;;  %v2274_v55 = vunpack.c.h.s8.bf16 %v932_v58 }
 0x5c1   : > { %4238 = vmatpush1.bf16.msra.mxu0 %v2163_v7  ;;  %4075 = vmatprep.subr.bf16.mxu1 %v2184_v21  ;;  %v952_v7 = vld [vmem:[%s5389_s21 + $0x1488] sm:$0xff]  ;;  %v954_v21 = vld [vmem:[%s5389_s21 + $0x1498] sm:$0xff] }
 0x5c2   : > { %4239 = vmatprep.subr.bf16.mxu0 %v2186_v8  ;;  %v3771_v57 = vpop.f32.mrb[16].mxu1  ;;  %v2271_v8 = vunpack.c.h.s8.bf16 %v929_v9  ;;  %v2294_v14 = vunpack.c.l.s8.bf16 %v952_v7  ;;  %v2318_v39 = vunpack.c.h.s8.bf16 %v954_v21  ;;  %v4363_v9 = vrot.slane %v6344_v20, %v5823_v28 }
 0x5c3   : > { %v3935_v63 = vpop.f32.mrb[16].mxu0  ;;  %v4400_v47 = vmul.f32 %v4335_v15, %v3771_v57  ;;  %v3773_v51 = vpop.f32.mrb[17].mxu1  ;;  %v2296_v15 = vunpack.c.l.s8.bf16 %v954_v21 }
 0x5c4   : > { %v4402_v48 = vmul.f32 %v4343_v16, %v3935_v63  ;;  %v3937_v44 = vpop.f32.mrb[17].mxu0  ;;  %v4401_v56 = vmul.f32 %v4339_v23, %v3773_v51  ;;  %v3775_v18 = vpop.f32.mrb[18].mxu1  ;;  %4076 = vmatpush1.bf16.msra.mxu1 %v2183_v29  ;;  %v951_v16 = vld [vmem:[%s5389_s21 + $0x1480] sm:$0xff]  ;;  %v953_v23 = vld [vmem:[%s5389_s21 + $0x1490] sm:$0xff]  ;;  %v974_v63 = vld [vmem:[%s5389_s21 + $0x1538] sm:$0xff] }
 0x5c5   : > { %v4403_v60 = vmul.f32 %v4347_v24, %v3937_v44  ;;  %v3939_v61 = vpop.f32.mrb[18].mxu0  ;;  %4240 = vmatpush1.bf16.msra.mxu0 %v2185_v30  ;;  %v4538_v1 = vadd.f32 %v4473_v32, %v4400_v47  ;;  %v3776_v49 = vpop.f32.mrb[19].mxu1  ;;  %4077 = vmatprep.subr.bf16.mxu1 %v2206_v34  ;;  %v2293_v32 = vunpack.c.l.s8.bf16 %v951_v16  ;;  %v2315_v47 = vunpack.c.h.s8.bf16 %v951_v16 }
 0x5c6   : > { %v4540_v26 = vadd.f32 %v4481_v33, %v4402_v48  ;;  %v3940_v46 = vpop.f32.mrb[19].mxu0  ;;  %4241 = vmatprep.subr.bf16.mxu0 %v2208_v38  ;;  %v4539_v3 = vadd.f32 %v4477_v42, %v4401_v56  ;;  %v2295_v33 = vunpack.c.l.s8.bf16 %v953_v23  ;;  %v2316_v38 = vunpack.c.h.s8.bf16 %v952_v7  ;;  %v976_v42 = vld [vmem:[%s5389_s21 + $0x1548] sm:$0xff]  ;;  %v973_v56 = vld [vmem:[%s5389_s21 + $0x1530] sm:$0xff] }
 0x5c7   : > { %v4541_v4 = vadd.f32 %v4485_v45, %v4403_v60  ;;  %5038 = vtanh.f32 %v4538_v1  ;;  %v2317_v48 = vunpack.c.h.s8.bf16 %v953_v23  ;;  %v2338_v51 = vunpack.c.l.s8.bf16 %v974_v63  ;;  %v975_v60 = vld [vmem:[%s5389_s21 + $0x1540] sm:$0xff]  ;;  %v996_v61 = vld [vmem:[%s5389_s21 + $0x15e8] sm:$0xff] }
 0x5c8   : > { %5040 = vtanh.f32 %v4540_v26  ;;  %4078 = vmatpush1.bf16.msra.mxu1 %v2205_v62  ;;  %v2340_v44 = vunpack.c.l.s8.bf16 %v976_v42  ;;  %v2337_v40 = vunpack.c.l.s8.bf16 %v973_v56  ;;  %v2339_v43 = vunpack.c.l.s8.bf16 %v975_v60  ;;  %v998_v62 = vld [vmem:[%s5389_s21 + $0x15f8] sm:$0xff]  ;;  %v995_v46 = vld [vmem:[%s5389_s21 + $0x15e0] sm:$0xff] }
 0x5c9   : > { %4242 = vmatpush1.bf16.msra.mxu0 %v2207_v0  ;;  %5042 = vtanh.f32 %v4539_v3  ;;  %4079 = vmatprep.subr.bf16.mxu1 %v2228_v22  ;;  %v2360_v50 = vunpack.c.h.s8.bf16 %v974_v63  ;;  %v2362_v18 = vunpack.c.h.s8.bf16 %v976_v42  ;;  %v2359_v0 = vunpack.c.h.s8.bf16 %v973_v56  ;;  %v997_v22 = vld [vmem:[%s5389_s21 + $0x15f0] sm:$0xff] }
 0x5ca   : > { %4243 = vmatprep.subr.bf16.mxu0 %v2230_v2  ;;  %5044 = vtanh.f32 %v4541_v4  ;;  %v2361_v1 = vunpack.c.h.s8.bf16 %v975_v60  ;;  %v2382_v26 = vunpack.c.l.s8.bf16 %v996_v61  ;;  %v2384_v49 = vunpack.c.l.s8.bf16 %v998_v62 }
 0x5cb   : > { %v2381_v2 = vunpack.c.l.s8.bf16 %v995_v46  ;;  %v2383_v3 = vunpack.c.l.s8.bf16 %v997_v22  ;;  %v2404_v4 = vunpack.c.h.s8.bf16 %v996_v61  ;;  %v2406_v59 = vunpack.c.h.s8.bf16 %v998_v62 }
 0x5cc   : > { %4080 = vmatpush1.bf16.msra.mxu1 %v2227_v5  ;;  %v2403_v58 = vunpack.c.h.s8.bf16 %v995_v46  ;;  %v2405_v5 = vunpack.c.h.s8.bf16 %v997_v22 }
 0x5cd   : > { %4244 = vmatpush1.bf16.msra.mxu0 %v2229_v36  ;;  %4081 = vmatprep.subr.bf16.mxu1 %v2250_v53  ;;  %v4351_v36 = vrot.slane %v6344_v20, %v5814_v17  ;;  %v4359_v53 = vrot.slane %v6344_v20, %v5817_v19 }
 0x5ce   : > { %4245 = vmatprep.subr.bf16.mxu0 %v2252_v25  ;;  %v4355_v25 = vrot.slane %v6344_v20, %v5820_v27 }
 0x5d0   : > { %4082 = vmatpush1.bf16.msra.mxu1 %v2249_v13  ;;  %v4497_v13 = vrot.slane %v6347_v10, %v5817_v19 }
 0x5d1   : > { %4246 = vmatpush1.bf16.msra.mxu0 %v2251_v6  ;;  %v5039_v12 = vpop.eup %5038  ;;  %4083 = vmatprep.subr.bf16.mxu1 %v2272_v41  ;;  %v4493_v41 = vrot.slane %v6347_v10, %v5820_v27 }
 0x5d2   : > { %4247 = vmatprep.subr.bf16.mxu0 %v2274_v55  ;;  %v6375_v24 = vpop.eup %5040  ;;  %v4501_v55 = vrot.slane %v6347_v10, %v5823_v28 }
 0x5d3   : > { %v5043_v29 = vpop.eup %5042 }
 0x5d4   : > { %v6377_v30 = vpop.eup %5044  ;;  %v4642_v31 = vcombine.low %v5039_v12, %v5043_v29  ;;  %4084 = vmatpush1.bf16.msra.mxu1 %v2271_v8 }
 0x5d5   : > { %4248 = vmatpush1.bf16.msra.mxu0 %v2273_v11  ;;  %v4658_v34 = vcombine.low %v6375_v24, %v6377_v30  ;;  %4085 = vmatprep.subr.bf16.mxu1 %v2294_v14 }
 0x5d6   : > { %4249 = vmatprep.subr.bf16.mxu0 %v2296_v15  ;;  %v4656_v57 = vrot.slane %v4642_v31, %v5853_v54 }
 0x5d8   : > { %v4657_v45 = vcombine.low %v4649_v52, %v4656_v57  ;;  %4086 = vmatpush1.bf16.msra.mxu1 %v2293_v32 }
 0x5d9   : > { %4250 = vmatpush1.bf16.msra.mxu0 %v2295_v33  ;;  %4087 = vmatprep.subr.bf16.mxu1 %v2316_v38 }
 0x5da   : > { %4251 = vmatprep.subr.bf16.mxu0 %v2318_v39  ;;  %4692 = vst [vmem:[%s5870_s29 + $0x18] sm:$0xff] %v4657_v45  ;;  %v4666_v39 = vrot.slane %v4658_v34, %v5853_v54 }
 0x5dc   : > { %4088 = vmatpush1.bf16.msra.mxu1 %v2315_v47 }
 0x5dd   : > { %4252 = vmatpush1.bf16.msra.mxu0 %v2317_v48  ;;  %4089 = vmatprep.subr.bf16.mxu1 %v2338_v51 }
 0x5de   : > { %4253 = vmatprep.subr.bf16.mxu0 %v2340_v44 }
 0x5e0   : > { %4090 = vmatpush1.bf16.msra.mxu1 %v2337_v40 }
 0x5e1   : > { %4254 = vmatpush1.bf16.msra.mxu0 %v2339_v43  ;;  %4091 = vmatprep.subr.bf16.mxu1 %v2360_v50 }
 0x5e2   : > { %4255 = vmatprep.subr.bf16.mxu0 %v2362_v18 }
 0x5e4   : > { %4092 = vmatpush1.bf16.msra.mxu1 %v2359_v0 }
 0x5e5   : > { %4256 = vmatpush1.bf16.msra.mxu0 %v2361_v1  ;;  %4093 = vmatprep.subr.bf16.mxu1 %v2382_v26 }
 0x5e6   : > { %4257 = vmatprep.subr.bf16.mxu0 %v2384_v49 }
 0x5e8   : > { %4094 = vmatpush1.bf16.msra.mxu1 %v2381_v2 }
 0x5e9   : > { %4258 = vmatpush1.bf16.msra.mxu0 %v2383_v3  ;;  %4095 = vmatprep.subr.bf16.mxu1 %v2404_v4 }
 0x5ea   : > { %4259 = vmatprep.subr.bf16.mxu0 %v2406_v59 }
 0x5ec   : > { %4096 = vmatpush1.bf16.msra.mxu1 %v2403_v58 }
 0x5ed   : > { %4260 = vmatpush1.bf16.msra.mxu0 %v2405_v5 }
 0x5ef   : > { %4098 = vmatmul.mubr.bf16.vlgmr.msra.gmra.mrb[20].mxu1 %v5525_v37 }
 0x5f0   : > { %4262 = vmatmul.mubr.bf16.vlgmr.msra.gmra.mrb[20].mxu0 %v5525_v37 }
 0x6c2   : > { %v4099_v6 = vpop.f32.mrb[20].mxu1 }
 0x6c3   : > { %v4263_v37 = vpop.f32.mrb[20].mxu0  ;;  %v4404_v7 = vmul.f32 %v4351_v36, %v4099_v6  ;;  %v4101_v8 = vpop.f32.mrb[21].mxu1 }
 0x6c4   : > { %v4406_v21 = vmul.f32 %v4359_v53, %v4263_v37  ;;  %v4265_v11 = vpop.f32.mrb[21].mxu0  ;;  %v4405_v12 = vmul.f32 %v4355_v25, %v4101_v8  ;;  %v4103_v14 = vpop.f32.mrb[22].mxu1 }
 0x6c5   : > { %v4407_v20 = vmul.f32 %v4363_v9, %v4265_v11  ;;  %v4267_v15 = vpop.f32.mrb[22].mxu0  ;;  %v4542_v17 = vadd.f32 %v4489_v35, %v4404_v7  ;;  %v4104_v23 = vpop.f32.mrb[23].mxu1 }
 0x6c6   : > { %v4544_v16 = vadd.f32 %v4497_v13, %v4406_v21  ;;  %v4268_v19 = vpop.f32.mrb[23].mxu0  ;;  %v4543_v29 = vadd.f32 %v4493_v41, %v4405_v12 }
 0x6c7   : > { %v4545_v31 = vadd.f32 %v4501_v55, %v4407_v20  ;;  %5046 = vtanh.f32 %v4542_v17 }
 0x6c8   : > { %5048 = vtanh.f32 %v4544_v16 }
 0x6c9   : > { %5050 = vtanh.f32 %v4543_v29 }
 0x6ca   : > { %5052 = vtanh.f32 %v4545_v31 }
 0x6d1   : > { %v5047_v27 = vpop.eup %5046 }
 0x6d2   : > { %v5049_v28 = vpop.eup %5048 }
 0x6d3   : > { %v5051_v10 = vpop.eup %5050 }
 0x6d4   : > { %v5053_v32 = vpop.eup %5052  ;;  %v4659_v33 = vcombine.low %v5047_v27, %v5051_v10 }
 0x6d5   : > { %v4675_v38 = vcombine.low %v5049_v28, %v5053_v32 }
 0x6d6   : > { %v4673_v52 = vrot.slane %v4659_v33, %v5853_v54 }
 0x6d7   : > { %4814 = vst.sshfl [vmem:[%s5870_s29 + $0x28] sm:$0x33 pattern:$0x76325410] %v4675_v38 }
 0x6d8   : > { %v4674_v57 = vcombine.low %v4666_v39, %v4673_v52 }
 0x6da   : > { %4693 = vst [vmem:[%s5870_s29 + $0x20] sm:$0xff] %v4674_v57 }
 0x6db PF: > { %p17_p0 = scmp.ge.s32.totalorder %s5247_s20, 10   ;;  %s6447_s15 = smov %s5182_s16 }
 0x6dc   : > { %s6448_s16 = smov %s5186_s17  ;;  %s6449_s17 = smov %s5257_s23 }
 0x6dd   : > { %s6450_s18 = smov %s5247_s20  ;;  %19 = sbr.rel (!%p17_p0) target bundleno = 5 (0x5), region = 100 }
 0x6e4   :  { %4717 = vsyncpa [#allocation3], 1 }
 0x6e5   :  { %4719 = vsyncpa [#allocation3 + $0x1], 1 }
 0x6e6   :  { %4720 = vsyncpa [#allocation5], 1 }
 0x6e7   :  { %4722 = vsyncpa [#allocation5 + $0x1], 1 }

</bundles_post_ra>
